<compile_context>
chip_gen: v7x
topology: tpu7x:2x2x1
jax: 0.10.0
libtpu: 0.0.40
codegen_flags: <defaults>
</compile_context>

<pallas_src>
import functools

import jax
import jax.numpy as jnp
from jax.experimental import pallas as pl
from jax.experimental.pallas import tpu as pltpu


# ----------------------------------------------------------------------------
# helpers
# ----------------------------------------------------------------------------
@functools.lru_cache(maxsize=None)
def _vmem_limit_bytes():
    """Per-generation VMEM limit: ~96 MiB on v5e/v6e, ~56 MiB on v7x."""
    default = 48 * 1024 * 1024          # safe on every generation
    try:
        cap = int(pltpu.get_tpu_info().vmem_capacity_bytes)
        if cap <= 0:
            return default
        return max(min(cap - 8 * 1024 * 1024, 96 * 1024 * 1024),
                   16 * 1024 * 1024)
    except Exception:
        return default


def _layernorm(x, g, b, eps):
    mu = jnp.mean(x, axis=-1, keepdims=True)
    xc = x - mu
    var = jnp.mean(xc * xc, axis=-1, keepdims=True)
    return xc * jax.lax.rsqrt(var + eps) * g + b


def _const_spec(shape):
    """Whole-array block whose block index never changes over the grid."""
    def index_map(*_args):
        return (0,) * len(shape)
    return pl.BlockSpec(shape, index_map)


def _pick_row_tile(rows):
    for t in (512, 256, 128):
        if rows % t == 0:
            return t
    return rows                          # small case: whole array as one tile


def _pick_hidden_chunk(h):
    for t in (512, 256, 128):
        if h % t == 0:
            return t
    return h


# ----------------------------------------------------------------------------
# Pallas kernels
# ----------------------------------------------------------------------------
def _attn_kernel(x_ref, ln1g_ref, ln1b_ref, wqkv_ref, wo_ref, o_ref,
                 *, eps, n_head):
    """ln_1 + multi-head self-attention + residual for one batch element.

    x_ref: (1, S, E) f32.  wqkv: (E, 3E) bf16 (Q|K|V fused, stored (in,out)).
    """
    x = x_ref[0].astype(jnp.float32)                      # (S, E)
    S, E = x.shape
    d_head = E // n_head
    scale = 1.0 / float(d_head) ** 0.5

    xn = _layernorm(x, ln1g_ref[...].astype(jnp.float32),
                    ln1b_ref[...].astype(jnp.float32), eps)

    # Fused q/k/v projection: one (S,E)@(E,3E) MXU pass, bf16-in / f32-acc.
    qkv = jnp.dot(xn.astype(jnp.bfloat16), wqkv_ref[...],
                  preferred_element_type=jnp.float32)     # (S, 3E) f32
    q = qkv[:, :E] * scale           # fold 1/sqrt(d_head) into q
    k = qkv[:, E:2 * E]
    v = qkv[:, 2 * E:]

    # torch `.view(B, n_head, S, d_head)` on contiguous (B, S, E) is a raw
    # row-major reshape -> (n_head, S, d_head) per batch element.
    q3 = q.reshape(n_head, S, d_head).astype(jnp.bfloat16)
    k3 = k.reshape(n_head, S, d_head).astype(jnp.bfloat16)
    v3 = v.reshape(n_head, S, d_head).astype(jnp.bfloat16)

    # Batched-over-heads scores: (h, S, S), f32 accumulation.
    s = jax.lax.dot_general(q3, k3, (((2,), (2,)), ((0,), (0,))),
                            preferred_element_type=jnp.float32)
    s = s - jnp.max(s, axis=-1, keepdims=True)
    p = jnp.exp(s)
    p = p * pl.reciprocal(jnp.sum(p, axis=-1, keepdims=True), approx=True)

    # Batched (h, S, S) @ (h, S, d_head) -> (h, S, d_head).
    o3 = jax.lax.dot_general(p.astype(jnp.bfloat16), v3,
                             (((2,), (1,)), ((0,), (0,))),
                             preferred_element_type=jnp.float32)

    # permute(0,2,1,3).view(B,S,E): head h -> output columns [h*Dh,(h+1)*Dh).
    attn = jnp.concatenate([o3[h] for h in range(n_head)], axis=-1)  # (S, E)
    attn = jnp.dot(attn.astype(jnp.bfloat16), wo_ref[...],
                   preferred_element_type=jnp.float32)

    o_ref[0] = (x + attn).astype(o_ref.dtype)             # residual 1


def _ffn_kernel(x_ref, ln2g_ref, ln2b_ref, w1_ref, b1_ref, w2_ref, b2_ref,
                *rest, eps, final_ln):
    """ln_2 + positionwise FFN + residual for one row tile.

    Grid = (row_tiles, hidden_chunks); the hidden-chunk axis is a reduction
    ("arbitrary") over the 4*E FFN hidden dimension, accumulated in VMEM.
    """
    if final_ln:
        lnfg_ref, lnfb_ref, o_ref, acc_ref, xn_ref = rest
    else:
        o_ref, acc_ref, xn_ref = rest

    c = pl.program_id(1)

    @pl.when(c == 0)
    def _():
        x = x_ref[...].astype(jnp.float32)                # (tm, E)
        xn = _layernorm(x, ln2g_ref[...].astype(jnp.float32),
                        ln2b_ref[...].astype(jnp.float32), eps)
        xn_ref[...] = xn.astype(jnp.bfloat16)             # reused across chunks
        acc_ref[...] = x                                   # start from residual

    h = jnp.dot(xn_ref[...], w1_ref[...],
                preferred_element_type=jnp.float32)        # (tm, chunk)
    h = jnp.maximum(h + b1_ref[...].astype(jnp.float32), 0.0)   # ReLU
    acc_ref[...] += jnp.dot(h.astype(jnp.bfloat16), w2_ref[...],
                            preferred_element_type=jnp.float32)

    @pl.when(c == pl.num_programs(1) - 1)
    def _():
        y = acc_ref[...] + b2_ref[...].astype(jnp.float32)  # residual 2 done
        if final_ln:                                        # fused ln_f epilogue
            y = _layernorm(y, lnfg_ref[...].astype(jnp.float32),
                           lnfb_ref[...].astype(jnp.float32), eps)
        o_ref[...] = y.astype(o_ref.dtype)


# ----------------------------------------------------------------------------
# Wrappers around pallas_call
# ----------------------------------------------------------------------------
def _attention_layer(x, p, n_head, eps):
    B, S, E = x.shape
    kern = functools.partial(_attn_kernel, eps=float(eps), n_head=n_head)
    return pl.pallas_call(
        kern,
        out_shape=jax.ShapeDtypeStruct((B, S, E), x.dtype),
        grid=(B,),
        in_specs=[
            pl.BlockSpec((1, S, E), lambda b: (b, 0, 0)),   # x
            _const_spec((1, E)), _const_spec((1, E)),        # ln_1 gamma/beta
            _const_spec((E, 3 * E)),                         # fused Wq|Wk|Wv
            _const_spec((E, E)),                             # Wproj
        ],
        out_specs=pl.BlockSpec((1, S, E), lambda b: (b, 0, 0)),
        compiler_params=pltpu.CompilerParams(
            dimension_semantics=("parallel",),
            vmem_limit_bytes=_vmem_limit_bytes(),
        ),
    )(x, p["ln1_g"], p["ln1_b"], p["wqkv"], p["wo"])


def _ffn_layer(x, p, eps, final_ln_params=None):
    B, S, E = x.shape
    rows = B * S
    x2 = x.reshape(rows, E)
    H = p["w1"].shape[1]                                   # 4*E
    tm = _pick_row_tile(rows)
    tc = _pick_hidden_chunk(H)
    final_ln = final_ln_params is not None

    kern = functools.partial(_ffn_kernel, eps=float(eps), final_ln=final_ln)

    in_specs = [
        pl.BlockSpec((tm, E), lambda r, c: (r, 0)),         # x row tile
        _const_spec((1, E)), _const_spec((1, E)),            # ln_2 gamma/beta
        pl.BlockSpec((E, tc), lambda r, c: (0, c)),          # fc_1 W chunk
        pl.BlockSpec((1, tc), lambda r, c: (0, c)),          # fc_1 b chunk
        pl.BlockSpec((tc, E), lambda r, c: (c, 0)),          # fc_2 W chunk
        _const_spec((1, E)),                                 # fc_2 b
    ]
    args = [x2, p["ln2_g"], p["ln2_b"], p["w1"], p["b1"], p["w2"], p["b2"]]
    if final_ln:
        in_specs += [_const_spec((1, E)), _const_spec((1, E))]   # ln_f gamma/beta
        args += [final_ln_params[0], final_ln_params[1]]

    out = pl.pallas_call(
        kern,
        out_shape=jax.ShapeDtypeStruct((rows, E), x.dtype),
        grid=(rows // tm, H // tc),
        in_specs=in_specs,
        out_specs=pl.BlockSpec((tm, E), lambda r, c: (r, 0)),
        scratch_shapes=[
            pltpu.VMEM((tm, E), jnp.float32),    # residual + FFN accumulator
            pltpu.VMEM((tm, E), jnp.bfloat16),   # ln_2(x), reused across chunks
        ],
        compiler_params=pltpu.CompilerParams(
            dimension_semantics=("parallel", "arbitrary"),
            vmem_limit_bytes=_vmem_limit_bytes(),
        ),
    )(*args)
    return out.reshape(B, S, E)


# ----------------------------------------------------------------------------
# Parameter init + full model forward
# ----------------------------------------------------------------------------
def init_params(key, config):
    E = config["n_embed"]
    V = config["vocab_size"]
    P = config["n_positions"]
    L = config["n_layer"]

    def nrm(k, shape, std=0.02, dtype=jnp.float32):
        return (std * jax.random.normal(k, shape)).astype(dtype)

    keys = jax.random.split(key, 2 + 8 * L)
    params = {
        "wte": nrm(keys[0], (V, E)),
        "wpe": nrm(keys[1], (P, E)),
        "ln_f_g": jnp.ones((1, E), jnp.float32),
        "ln_f_b": jnp.zeros((1, E), jnp.float32),
        "blocks": [],
    }
    ki = 2
    for _ in range(L):
        # Attention linear weights stored as (in, out); Q|K|V fused; bf16.
        wq = nrm(keys[ki + 0], (E, E))
        wk = nrm(keys[ki + 1], (E, E))
        wv = nrm(keys[ki + 2], (E, E))
        blk = {
            "ln1_g": jnp.ones((1, E), jnp.float32),
            "ln1_b": jnp.zeros((1, E), jnp.float32),
            "wqkv": jnp.concatenate([wq, wk, wv], axis=1).astype(jnp.bfloat16),
            "wo": nrm(keys[ki + 3], (E, E), dtype=jnp.bfloat16),
            "ln2_g": jnp.ones((1, E), jnp.float32),
            "ln2_b": jnp.zeros((1, E), jnp.float32),
            "w1": nrm(keys[ki + 4], (E, 4 * E), dtype=jnp.bfloat16),
            "b1": jnp.zeros((1, 4 * E), jnp.float32),
            "w2": nrm(keys[ki + 5], (4 * E, E), dtype=jnp.bfloat16),
            "b2": jnp.zeros((1, E), jnp.float32),
        }
        params["blocks"].append(blk)
        ki += 8
    return params


def gpt2_forward(params, input_ids, config):
    B, S = input_ids.shape
    eps = config["layer_norm_epsilon"]
    n_head = config["n_head"]

    position_ids = jnp.arange(S, dtype=jnp.int32)
    inputs_embeds = jnp.take(params["wte"], input_ids, axis=0)        # (B,S,E)
    position_embeds = jnp.take(params["wpe"], position_ids, axis=0)   # (S,E)
    hidden = inputs_embeds + position_embeds[None, :, :]
    # self.drop -> identity (eval mode)

    n_layer = len(params["blocks"])
    for i, blk in enumerate(params["blocks"]):
        hidden = _attention_layer(hidden, blk, n_head, eps)
        lnf = (params["ln_f_g"], params["ln_f_b"]) if i == n_layer - 1 else None
        hidden = _ffn_layer(hidden, blk, eps, final_ln_params=lnf)   # ln_f fused
    return (hidden,)


# ----------------------------------------------------------------------------
if __name__ == "__main__":
    config = {
        "vocab_size": 100,
        "n_embed": 256,
        "n_positions": 64,
        "n_layer": 2,
        "n_head": 2,
        "layer_norm_epsilon": 1e-5,
        "dropout": 0.1,   # unused at inference (identity)
    }

    key = jax.random.PRNGKey(0)
    k_param, k_ids = jax.random.split(key)
    params = init_params(k_param, config)

    batch, seq = 2, 8
    input_ids = jax.random.randint(k_ids, (batch, seq), 0,
                                   config["vocab_size"], dtype=jnp.int32)

    fwd = jax.jit(functools.partial(gpt2_forward, config=config))
    out = fwd(params, input_ids)[0]
    out = jax.block_until_ready(out)

    assert out.shape == (batch, seq, config["n_embed"])
    assert bool(jnp.all(jnp.isfinite(out)))
    print("KERNEL_OK")
</pallas_src>

<mosaic_0001>
module attributes {stable_mosaic.version = 11 : i64} {
  func.func @_ffn_kernel(%arg0: i32, %arg1: i32, %arg2: memref<16x256xf32, #tpu.memory_space<vmem>>, %arg3: memref<1x256xf32, #tpu.memory_space<vmem>>, %arg4: memref<1x256xf32, #tpu.memory_space<vmem>>, %arg5: memref<256x512xbf16, #tpu.memory_space<vmem>>, %arg6: memref<1x512xf32, #tpu.memory_space<vmem>>, %arg7: memref<512x256xbf16, #tpu.memory_space<vmem>>, %arg8: memref<1x256xf32, #tpu.memory_space<vmem>>, %arg9: memref<1x256xf32, #tpu.memory_space<vmem>>, %arg10: memref<1x256xf32, #tpu.memory_space<vmem>>, %arg11: memref<16x256xf32, #tpu.memory_space<vmem>>, %arg12: memref<16x256xf32, #tpu.memory_space<vmem>>, %arg13: memref<16x256xbf16, #tpu.memory_space<vmem>>) attributes {dimension_semantics = [#tpu.dimension_semantics<parallel>, #tpu.dimension_semantics<arbitrary>], iteration_bounds = array<i64: 1, 2>, scalar_prefetch = 0 : i64, scratch_operands = 2 : i64, tpu.core_type = #tpu.core_type<tc>, window_params = [{transform_indices = @transform_0, window_bounds = array<i64: 16, 256>}, {pipeline_mode = #tpu.pipeline_mode<synchronous>, transform_indices = @transform_1, window_bounds = array<i64: 1, 256>}, {pipeline_mode = #tpu.pipeline_mode<synchronous>, transform_indices = @transform_2, window_bounds = array<i64: 1, 256>}, {transform_indices = @transform_3, window_bounds = array<i64: 256, 512>}, {transform_indices = @transform_4, window_bounds = array<i64: 1, 512>}, {transform_indices = @transform_5, window_bounds = array<i64: 512, 256>}, {pipeline_mode = #tpu.pipeline_mode<synchronous>, transform_indices = @transform_6, window_bounds = array<i64: 1, 256>}, {pipeline_mode = #tpu.pipeline_mode<synchronous>, transform_indices = @transform_7, window_bounds = array<i64: 1, 256>}, {pipeline_mode = #tpu.pipeline_mode<synchronous>, transform_indices = @transform_8, window_bounds = array<i64: 1, 256>}, {transform_indices = @transform_9, window_bounds = array<i64: 16, 256>}]} {
    %c0_i32 = arith.constant 0 : i32
    %0 = arith.cmpi eq, %arg1, %c0_i32 : i32
    %1 = arith.extui %0 : i1 to i32
    %c0_i32_0 = arith.constant 0 : i32
    %2 = arith.cmpi ne, %1, %c0_i32_0 : i32
    scf.if %2 {
      %c0_15 = arith.constant 0 : index
      %c0_16 = arith.constant 0 : index
      %20 = vector.load %arg2[%c0_15, %c0_16] : memref<16x256xf32, #tpu.memory_space<vmem>>, vector<16x256xf32>
      %c0_17 = arith.constant 0 : index
      %c0_18 = arith.constant 0 : index
      %21 = vector.load %arg3[%c0_17, %c0_18] : memref<1x256xf32, #tpu.memory_space<vmem>>, vector<1x256xf32>
      %c0_19 = arith.constant 0 : index
      %c0_20 = arith.constant 0 : index
      %22 = vector.load %arg4[%c0_19, %c0_20] : memref<1x256xf32, #tpu.memory_space<vmem>>, vector<1x256xf32>
      %cst_21 = arith.constant dense<0.000000e+00> : vector<16xf32>
      %23 = vector.multi_reduction <add>, %20, %cst_21 [1] : vector<16x256xf32> to vector<16xf32>
      %24 = vector.shape_cast %23 : vector<16xf32> to vector<16x1xf32>
      %cst_22 = arith.constant 2.560000e+02 : f32
      %25 = vector.broadcast %cst_22 : f32 to vector<16x1xf32>
      %26 = arith.divf %24, %25 : vector<16x1xf32>
      %27 = vector.broadcast %26 : vector<16x1xf32> to vector<16x256xf32>
      %28 = arith.subf %20, %27 : vector<16x256xf32>
      %29 = arith.mulf %28, %28 : vector<16x256xf32>
      %cst_23 = arith.constant dense<0.000000e+00> : vector<16xf32>
      %30 = vector.multi_reduction <add>, %29, %cst_23 [1] : vector<16x256xf32> to vector<16xf32>
      %31 = vector.shape_cast %30 : vector<16xf32> to vector<16x1xf32>
      %cst_24 = arith.constant 2.560000e+02 : f32
      %32 = vector.broadcast %cst_24 : f32 to vector<16x1xf32>
      %33 = arith.divf %31, %32 : vector<16x1xf32>
      %cst_25 = arith.constant 9.99999974E-6 : f32
      %34 = vector.broadcast %cst_25 : f32 to vector<16x1xf32>
      %35 = arith.addf %33, %34 : vector<16x1xf32>
      %36 = math.rsqrt %35 : vector<16x1xf32>
      %37 = vector.broadcast %36 : vector<16x1xf32> to vector<16x256xf32>
      %38 = arith.mulf %28, %37 : vector<16x256xf32>
      %39 = vector.broadcast %21 : vector<1x256xf32> to vector<16x256xf32>
      %40 = arith.mulf %38, %39 : vector<16x256xf32>
      %41 = vector.broadcast %22 : vector<1x256xf32> to vector<16x256xf32>
      %42 = arith.addf %40, %41 : vector<16x256xf32>
      %43 = arith.truncf %42 : vector<16x256xf32> to vector<16x256xbf16>
      %c0_26 = arith.constant 0 : index
      %c0_27 = arith.constant 0 : index
      %44 = vector.load %arg13[%c0_26, %c0_27] : memref<16x256xbf16, #tpu.memory_space<vmem>>, vector<16x256xbf16>
      tpu.vector_store %arg13[%c0_26, %c0_27], %43 {strides = array<i32>} : memref<16x256xbf16, #tpu.memory_space<vmem>>, vector<16x256xbf16>,
      %c0_28 = arith.constant 0 : index
      %c0_29 = arith.constant 0 : index
      %45 = vector.load %arg12[%c0_28, %c0_29] : memref<16x256xf32, #tpu.memory_space<vmem>>, vector<16x256xf32>
      tpu.vector_store %arg12[%c0_28, %c0_29], %20 {strides = array<i32>} : memref<16x256xf32, #tpu.memory_space<vmem>>, vector<16x256xf32>,
    } else {
    }
    %c0 = arith.constant 0 : index
    %c0_1 = arith.constant 0 : index
    %3 = vector.load %arg13[%c0, %c0_1] : memref<16x256xbf16, #tpu.memory_space<vmem>>, vector<16x256xbf16>
    %c0_2 = arith.constant 0 : index
    %c0_3 = arith.constant 0 : index
    %4 = vector.load %arg5[%c0_2, %c0_3] : memref<256x512xbf16, #tpu.memory_space<vmem>>, vector<256x512xbf16>
    %cst = arith.constant dense<0.000000e+00> : vector<16x512xf32>
    %5 = tpu.matmul %3, %4, %cst {dimension_numbers = #tpu.dot_dimension_numbers<[1], [0], [0], [1], [0, 0, 1, 1], [], []>} : vector<16x256xbf16>, vector<256x512xbf16>, vector<16x512xf32> -> vector<16x512xf32>
    %c0_4 = arith.constant 0 : index
    %c0_5 = arith.constant 0 : index
    %6 = vector.load %arg6[%c0_4, %c0_5] : memref<1x512xf32, #tpu.memory_space<vmem>>, vector<1x512xf32>
    %7 = vector.broadcast %6 : vector<1x512xf32> to vector<16x512xf32>
    %8 = arith.addf %5, %7 : vector<16x512xf32>
    %cst_6 = arith.constant 0.000000e+00 : f32
    %9 = vector.broadcast %cst_6 : f32 to vector<16x512xf32>
    %10 = arith.maximumf %8, %9 : vector<16x512xf32>
    %c0_7 = arith.constant 0 : index
    %c0_8 = arith.constant 0 : index
    %11 = vector.load %arg12[%c0_7, %c0_8] : memref<16x256xf32, #tpu.memory_space<vmem>>, vector<16x256xf32>
    %12 = arith.truncf %10 : vector<16x512xf32> to vector<16x512xbf16>
    %c0_9 = arith.constant 0 : index
    %c0_10 = arith.constant 0 : index
    %13 = vector.load %arg7[%c0_9, %c0_10] : memref<512x256xbf16, #tpu.memory_space<vmem>>, vector<512x256xbf16>
    %cst_11 = arith.constant dense<0.000000e+00> : vector<16x256xf32>
    %14 = tpu.matmul %12, %13, %cst_11 {dimension_numbers = #tpu.dot_dimension_numbers<[1], [0], [0], [1], [0, 0, 1, 1], [], []>} : vector<16x512xbf16>, vector<512x256xbf16>, vector<16x256xf32> -> vector<16x256xf32>
    %15 = arith.addf %11, %14 : vector<16x256xf32>
    %c0_12 = arith.constant 0 : index
    %c0_13 = arith.constant 0 : index
    %16 = vector.load %arg12[%c0_12, %c0_13] : memref<16x256xf32, #tpu.memory_space<vmem>>, vector<16x256xf32>
    tpu.vector_store %arg12[%c0_12, %c0_13], %15 {strides = array<i32>} : memref<16x256xf32, #tpu.memory_space<vmem>>, vector<16x256xf32>,
    %c1_i32 = arith.constant 1 : i32
    %17 = arith.cmpi eq, %arg1, %c1_i32 : i32
    %18 = arith.extui %17 : i1 to i32
    %c0_i32_14 = arith.constant 0 : i32
    %19 = arith.cmpi ne, %18, %c0_i32_14 : i32
    scf.if %19 {
      %c0_15 = arith.constant 0 : index
      %c0_16 = arith.constant 0 : index
      %20 = vector.load %arg12[%c0_15, %c0_16] : memref<16x256xf32, #tpu.memory_space<vmem>>, vector<16x256xf32>
      %c0_17 = arith.constant 0 : index
      %c0_18 = arith.constant 0 : index
      %21 = vector.load %arg8[%c0_17, %c0_18] : memref<1x256xf32, #tpu.memory_space<vmem>>, vector<1x256xf32>
      %22 = vector.broadcast %21 : vector<1x256xf32> to vector<16x256xf32>
      %23 = arith.addf %20, %22 : vector<16x256xf32>
      %c0_19 = arith.constant 0 : index
      %c0_20 = arith.constant 0 : index
      %24 = vector.load %arg9[%c0_19, %c0_20] : memref<1x256xf32, #tpu.memory_space<vmem>>, vector<1x256xf32>
      %c0_21 = arith.constant 0 : index
      %c0_22 = arith.constant 0 : index
      %25 = vector.load %arg10[%c0_21, %c0_22] : memref<1x256xf32, #tpu.memory_space<vmem>>, vector<1x256xf32>
      %cst_23 = arith.constant dense<0.000000e+00> : vector<16xf32>
      %26 = vector.multi_reduction <add>, %23, %cst_23 [1] : vector<16x256xf32> to vector<16xf32>
      %27 = vector.shape_cast %26 : vector<16xf32> to vector<16x1xf32>
      %cst_24 = arith.constant 2.560000e+02 : f32
      %28 = vector.broadcast %cst_24 : f32 to vector<16x1xf32>
      %29 = arith.divf %27, %28 : vector<16x1xf32>
      %30 = vector.broadcast %29 : vector<16x1xf32> to vector<16x256xf32>
      %31 = arith.subf %23, %30 : vector<16x256xf32>
      %32 = arith.mulf %31, %31 : vector<16x256xf32>
      %cst_25 = arith.constant dense<0.000000e+00> : vector<16xf32>
      %33 = vector.multi_reduction <add>, %32, %cst_25 [1] : vector<16x256xf32> to vector<16xf32>
      %34 = vector.shape_cast %33 : vector<16xf32> to vector<16x1xf32>
      %cst_26 = arith.constant 2.560000e+02 : f32
      %35 = vector.broadcast %cst_26 : f32 to vector<16x1xf32>
      %36 = arith.divf %34, %35 : vector<16x1xf32>
      %cst_27 = arith.constant 9.99999974E-6 : f32
      %37 = vector.broadcast %cst_27 : f32 to vector<16x1xf32>
      %38 = arith.addf %36, %37 : vector<16x1xf32>
      %39 = math.rsqrt %38 : vector<16x1xf32>
      %40 = vector.broadcast %39 : vector<16x1xf32> to vector<16x256xf32>
      %41 = arith.mulf %31, %40 : vector<16x256xf32>
      %42 = vector.broadcast %24 : vector<1x256xf32> to vector<16x256xf32>
      %43 = arith.mulf %41, %42 : vector<16x256xf32>
      %44 = vector.broadcast %25 : vector<1x256xf32> to vector<16x256xf32>
      %45 = arith.addf %43, %44 : vector<16x256xf32>
      %c0_28 = arith.constant 0 : index
      %c0_29 = arith.constant 0 : index
      %46 = vector.load %arg11[%c0_28, %c0_29] : memref<16x256xf32, #tpu.memory_space<vmem>>, vector<16x256xf32>
      tpu.vector_store %arg11[%c0_28, %c0_29], %45 {strides = array<i32>} : memref<16x256xf32, #tpu.memory_space<vmem>>, vector<16x256xf32>,
    } else {
    }
    return
  }
  func.func @transform_0(%arg0: i32, %arg1: i32) -> (i32, i32) {
    %c0_i32 = arith.constant 0 : i32
    %c0_i32_0 = arith.constant 0 : i32
    return %arg0, %c0_i32 : i32, i32
  }
  func.func @transform_1(%arg0: i32, %arg1: i32) -> (i32, i32) {
    %c0_i32 = arith.constant 0 : i32
    %c0_i32_0 = arith.constant 0 : i32
    %c0_i32_1 = arith.constant 0 : i32
    return %c0_i32, %c0_i32_0 : i32, i32
  }
  func.func @transform_2(%arg0: i32, %arg1: i32) -> (i32, i32) {
    %c0_i32 = arith.constant 0 : i32
    %c0_i32_0 = arith.constant 0 : i32
    %c0_i32_1 = arith.constant 0 : i32
    return %c0_i32, %c0_i32_0 : i32, i32
  }
  func.func @transform_3(%arg0: i32, %arg1: i32) -> (i32, i32) {
    %c0_i32 = arith.constant 0 : i32
    %c0_i32_0 = arith.constant 0 : i32
    return %c0_i32, %arg1 : i32, i32
  }
  func.func @transform_4(%arg0: i32, %arg1: i32) -> (i32, i32) {
    %c0_i32 = arith.constant 0 : i32
    %c0_i32_0 = arith.constant 0 : i32
    return %c0_i32, %arg1 : i32, i32
  }
  func.func @transform_5(%arg0: i32, %arg1: i32) -> (i32, i32) {
    %c0_i32 = arith.constant 0 : i32
    %c0_i32_0 = arith.constant 0 : i32
    return %arg1, %c0_i32 : i32, i32
  }
  func.func @transform_6(%arg0: i32, %arg1: i32) -> (i32, i32) {
    %c0_i32 = arith.constant 0 : i32
    %c0_i32_0 = arith.constant 0 : i32
    %c0_i32_1 = arith.constant 0 : i32
    return %c0_i32, %c0_i32_0 : i32, i32
  }
  func.func @transform_7(%arg0: i32, %arg1: i32) -> (i32, i32) {
    %c0_i32 = arith.constant 0 : i32
    %c0_i32_0 = arith.constant 0 : i32
    %c0_i32_1 = arith.constant 0 : i32
    return %c0_i32, %c0_i32_0 : i32, i32
  }
  func.func @transform_8(%arg0: i32, %arg1: i32) -> (i32, i32) {
    %c0_i32 = arith.constant 0 : i32
    %c0_i32_0 = arith.constant 0 : i32
    %c0_i32_1 = arith.constant 0 : i32
    return %c0_i32, %c0_i32_0 : i32, i32
  }
  func.func @transform_9(%arg0: i32, %arg1: i32) -> (i32, i32) {
    %c0_i32 = arith.constant 0 : i32
    %c0_i32_0 = arith.constant 0 : i32
    return %arg0, %c0_i32 : i32, i32
  }
}

module attributes {stable_mosaic.version = 11 : i64} {
  func.func @_attn_kernel(%arg0: i32, %arg1: memref<1x8x256xf32, #tpu.memory_space<vmem>>, %arg2: memref<1x256xf32, #tpu.memory_space<vmem>>, %arg3: memref<1x256xf32, #tpu.memory_space<vmem>>, %arg4: memref<256x768xbf16, #tpu.memory_space<vmem>>, %arg5: memref<256x256xbf16, #tpu.memory_space<vmem>>, %arg6: memref<1x8x256xf32, #tpu.memory_space<vmem>>) attributes {dimension_semantics = [#tpu.dimension_semantics<parallel>], iteration_bounds = array<i64: 2>, scalar_prefetch = 0 : i64, scratch_operands = 0 : i64, tpu.core_type = #tpu.core_type<tc>, window_params = [{transform_indices = @transform_0, window_bounds = array<i64: 1, 8, 256>}, {pipeline_mode = #tpu.pipeline_mode<synchronous>, transform_indices = @transform_1, window_bounds = array<i64: 1, 256>}, {pipeline_mode = #tpu.pipeline_mode<synchronous>, transform_indices = @transform_2, window_bounds = array<i64: 1, 256>}, {pipeline_mode = #tpu.pipeline_mode<synchronous>, transform_indices = @transform_3, window_bounds = array<i64: 256, 768>}, {pipeline_mode = #tpu.pipeline_mode<synchronous>, transform_indices = @transform_4, window_bounds = array<i64: 256, 256>}, {transform_indices = @transform_5, window_bounds = array<i64: 1, 8, 256>}]} {
    %c0 = arith.constant 0 : index
    %c0_0 = arith.constant 0 : index
    %c0_1 = arith.constant 0 : index
    %0 = vector.load %arg1[%c0, %c0_0, %c0_1] : memref<1x8x256xf32, #tpu.memory_space<vmem>>, vector<1x8x256xf32>
    %1 = vector.shape_cast %0 : vector<1x8x256xf32> to vector<8x256xf32>
    %c0_2 = arith.constant 0 : index
    %c0_3 = arith.constant 0 : index
    %2 = vector.load %arg2[%c0_2, %c0_3] : memref<1x256xf32, #tpu.memory_space<vmem>>, vector<1x256xf32>
    %c0_4 = arith.constant 0 : index
    %c0_5 = arith.constant 0 : index
    %3 = vector.load %arg3[%c0_4, %c0_5] : memref<1x256xf32, #tpu.memory_space<vmem>>, vector<1x256xf32>
    %cst = arith.constant dense<0.000000e+00> : vector<8xf32>
    %4 = vector.multi_reduction <add>, %1, %cst [1] : vector<8x256xf32> to vector<8xf32>
    %5 = vector.shape_cast %4 : vector<8xf32> to vector<8x1xf32>
    %cst_6 = arith.constant 2.560000e+02 : f32
    %6 = vector.broadcast %cst_6 : f32 to vector<8x1xf32>
    %7 = arith.divf %5, %6 : vector<8x1xf32>
    %8 = vector.broadcast %7 : vector<8x1xf32> to vector<8x256xf32>
    %9 = arith.subf %1, %8 : vector<8x256xf32>
    %10 = arith.mulf %9, %9 : vector<8x256xf32>
    %cst_7 = arith.constant dense<0.000000e+00> : vector<8xf32>
    %11 = vector.multi_reduction <add>, %10, %cst_7 [1] : vector<8x256xf32> to vector<8xf32>
    %12 = vector.shape_cast %11 : vector<8xf32> to vector<8x1xf32>
    %cst_8 = arith.constant 2.560000e+02 : f32
    %13 = vector.broadcast %cst_8 : f32 to vector<8x1xf32>
    %14 = arith.divf %12, %13 : vector<8x1xf32>
    %cst_9 = arith.constant 9.99999974E-6 : f32
    %15 = vector.broadcast %cst_9 : f32 to vector<8x1xf32>
    %16 = arith.addf %14, %15 : vector<8x1xf32>
    %17 = math.rsqrt %16 : vector<8x1xf32>
    %18 = vector.broadcast %17 : vector<8x1xf32> to vector<8x256xf32>
    %19 = arith.mulf %9, %18 : vector<8x256xf32>
    %20 = vector.broadcast %2 : vector<1x256xf32> to vector<8x256xf32>
    %21 = arith.mulf %19, %20 : vector<8x256xf32>
    %22 = vector.broadcast %3 : vector<1x256xf32> to vector<8x256xf32>
    %23 = arith.addf %21, %22 : vector<8x256xf32>
    %24 = arith.truncf %23 : vector<8x256xf32> to vector<8x256xbf16>
    %c0_10 = arith.constant 0 : index
    %c0_11 = arith.constant 0 : index
    %25 = vector.load %arg4[%c0_10, %c0_11] : memref<256x768xbf16, #tpu.memory_space<vmem>>, vector<256x768xbf16>
    %cst_12 = arith.constant dense<0.000000e+00> : vector<8x768xf32>
    %26 = tpu.matmul %24, %25, %cst_12 {dimension_numbers = #tpu.dot_dimension_numbers<[1], [0], [0], [1], [0, 0, 1, 1], [], []>} : vector<8x256xbf16>, vector<256x768xbf16>, vector<8x768xf32> -> vector<8x768xf32>
    %27 = vector.extract_strided_slice %26 {offsets = [0, 0], sizes = [8, 256], strides = [1, 1]} : vector<8x768xf32> to vector<8x256xf32>
    %cst_13 = arith.constant 0.0883883461 : f32
    %28 = vector.broadcast %cst_13 : f32 to vector<8x256xf32>
    %29 = arith.mulf %27, %28 : vector<8x256xf32>
    %30 = vector.extract_strided_slice %26 {offsets = [0, 256], sizes = [8, 256], strides = [1, 1]} : vector<8x768xf32> to vector<8x256xf32>
    %31 = vector.extract_strided_slice %26 {offsets = [0, 512], sizes = [8, 256], strides = [1, 1]} : vector<8x768xf32> to vector<8x256xf32>
    %32 = vector.shape_cast %29 : vector<8x256xf32> to vector<2x8x128xf32>
    %33 = arith.truncf %32 : vector<2x8x128xf32> to vector<2x8x128xbf16>
    %34 = vector.shape_cast %30 : vector<8x256xf32> to vector<2x8x128xf32>
    %35 = arith.truncf %34 : vector<2x8x128xf32> to vector<2x8x128xbf16>
    %36 = vector.shape_cast %31 : vector<8x256xf32> to vector<2x8x128xf32>
    %37 = arith.truncf %36 : vector<2x8x128xf32> to vector<2x8x128xbf16>
    %cst_14 = arith.constant dense<0.000000e+00> : vector<2x8x8xf32>
    %38 = tpu.matmul %33, %35, %cst_14 {dimension_numbers = #tpu.dot_dimension_numbers<[2], [2], [1], [1], [0, 0, 0, 1, 1, 1], [0], [0]>} : vector<2x8x128xbf16>, vector<2x8x128xbf16>, vector<2x8x8xf32> -> vector<2x8x8xf32>
    %cst_15 = arith.constant dense<0xFF800000> : vector<2x8xf32>
    %39 = vector.multi_reduction <maximumf>, %38, %cst_15 [2] : vector<2x8x8xf32> to vector<2x8xf32>
    %40 = vector.shape_cast %39 : vector<2x8xf32> to vector<2x8x1xf32>
    %41 = vector.broadcast %40 : vector<2x8x1xf32> to vector<2x8x8xf32>
    %42 = arith.subf %38, %41 : vector<2x8x8xf32>
    %43 = math.exp %42 : vector<2x8x8xf32>
    %cst_16 = arith.constant dense<0.000000e+00> : vector<2x8xf32>
    %44 = vector.multi_reduction <add>, %43, %cst_16 [2] : vector<2x8x8xf32> to vector<2x8xf32>
    %45 = vector.shape_cast %44 : vector<2x8xf32> to vector<2x8x1xf32>
    %46 = tpu.reciprocal %45 {approx = true} : vector<2x8x1xf32> -> vector<2x8x1xf32>
    %47 = vector.broadcast %46 : vector<2x8x1xf32> to vector<2x8x8xf32>
    %48 = arith.mulf %43, %47 : vector<2x8x8xf32>
    %49 = arith.truncf %48 : vector<2x8x8xf32> to vector<2x8x8xbf16>
    %cst_17 = arith.constant dense<0.000000e+00> : vector<2x8x128xf32>
    %50 = tpu.matmul %49, %37, %cst_17 {dimension_numbers = #tpu.dot_dimension_numbers<[2], [1], [1], [2], [0, 0, 0, 1, 1, 2], [0], [0]>} : vector<2x8x8xbf16>, vector<2x8x128xbf16>, vector<2x8x128xf32> -> vector<2x8x128xf32>
    %51 = vector.extract_strided_slice %50 {offsets = [0, 0, 0], sizes = [1, 8, 128], strides = [1, 1, 1]} : vector<2x8x128xf32> to vector<1x8x128xf32>
    %52 = vector.shape_cast %51 : vector<1x8x128xf32> to vector<8x128xf32>
    %53 = vector.extract_strided_slice %50 {offsets = [1, 0, 0], sizes = [1, 8, 128], strides = [1, 1, 1]} : vector<2x8x128xf32> to vector<1x8x128xf32>
    %54 = vector.shape_cast %53 : vector<1x8x128xf32> to vector<8x128xf32>
    %55 = tpu.concatenate %52, %54 in 1 : vector<8x128xf32>, vector<8x128xf32> -> vector<8x256xf32>
    %56 = arith.truncf %55 : vector<8x256xf32> to vector<8x256xbf16>
    %c0_18 = arith.constant 0 : index
    %c0_19 = arith.constant 0 : index
    %57 = vector.load %arg5[%c0_18, %c0_19] : memref<256x256xbf16, #tpu.memory_space<vmem>>, vector<256x256xbf16>
    %cst_20 = arith.constant dense<0.000000e+00> : vector<8x256xf32>
    %58 = tpu.matmul %56, %57, %cst_20 {dimension_numbers = #tpu.dot_dimension_numbers<[1], [0], [0], [1], [0, 0, 1, 1], [], []>} : vector<8x256xbf16>, vector<256x256xbf16>, vector<8x256xf32> -> vector<8x256xf32>
    %59 = arith.addf %1, %58 : vector<8x256xf32>
    %c0_21 = arith.constant 0 : index
    %c0_22 = arith.constant 0 : index
    %c0_23 = arith.constant 0 : index
    %60 = vector.load %arg6[%c0_21, %c0_22, %c0_23] : memref<1x8x256xf32, #tpu.memory_space<vmem>>, vector<1x8x256xf32>
    %61 = vector.shape_cast %60 : vector<1x8x256xf32> to vector<8x256xf32>
    %62 = vector.shape_cast %59 : vector<8x256xf32> to vector<1x8x256xf32>
    tpu.vector_store %arg6[%c0_21, %c0_22, %c0_23], %62 {strides = array<i32>} : memref<1x8x256xf32, #tpu.memory_space<vmem>>, vector<1x8x256xf32>,
    return
  }
  func.func @transform_0(%arg0: i32) -> (i32, i32, i32) {
    %c0_i32 = arith.constant 0 : i32
    %c0_i32_0 = arith.constant 0 : i32
    %c0_i32_1 = arith.constant 0 : i32
    return %arg0, %c0_i32, %c0_i32_0 : i32, i32, i32
  }
  func.func @transform_1(%arg0: i32) -> (i32, i32) {
    %c0_i32 = arith.constant 0 : i32
    %c0_i32_0 = arith.constant 0 : i32
    %c0_i32_1 = arith.constant 0 : i32
    return %c0_i32, %c0_i32_0 : i32, i32
  }
  func.func @transform_2(%arg0: i32) -> (i32, i32) {
    %c0_i32 = arith.constant 0 : i32
    %c0_i32_0 = arith.constant 0 : i32
    %c0_i32_1 = arith.constant 0 : i32
    return %c0_i32, %c0_i32_0 : i32, i32
  }
  func.func @transform_3(%arg0: i32) -> (i32, i32) {
    %c0_i32 = arith.constant 0 : i32
    %c0_i32_0 = arith.constant 0 : i32
    %c0_i32_1 = arith.constant 0 : i32
    return %c0_i32, %c0_i32_0 : i32, i32
  }
  func.func @transform_4(%arg0: i32) -> (i32, i32) {
    %c0_i32 = arith.constant 0 : i32
    %c0_i32_0 = arith.constant 0 : i32
    %c0_i32_1 = arith.constant 0 : i32
    return %c0_i32, %c0_i32_0 : i32, i32
  }
  func.func @transform_5(%arg0: i32) -> (i32, i32, i32) {
    %c0_i32 = arith.constant 0 : i32
    %c0_i32_0 = arith.constant 0 : i32
    %c0_i32_1 = arith.constant 0 : i32
    return %arg0, %c0_i32, %c0_i32_0 : i32, i32, i32
  }
}

module attributes {stable_mosaic.version = 11 : i64} {
  func.func @_ffn_kernel(%arg0: i32, %arg1: i32, %arg2: memref<16x256xf32, #tpu.memory_space<vmem>>, %arg3: memref<1x256xf32, #tpu.memory_space<vmem>>, %arg4: memref<1x256xf32, #tpu.memory_space<vmem>>, %arg5: memref<256x512xbf16, #tpu.memory_space<vmem>>, %arg6: memref<1x512xf32, #tpu.memory_space<vmem>>, %arg7: memref<512x256xbf16, #tpu.memory_space<vmem>>, %arg8: memref<1x256xf32, #tpu.memory_space<vmem>>, %arg9: memref<16x256xf32, #tpu.memory_space<vmem>>, %arg10: memref<16x256xf32, #tpu.memory_space<vmem>>, %arg11: memref<16x256xbf16, #tpu.memory_space<vmem>>) attributes {dimension_semantics = [#tpu.dimension_semantics<parallel>, #tpu.dimension_semantics<arbitrary>], iteration_bounds = array<i64: 1, 2>, scalar_prefetch = 0 : i64, scratch_operands = 2 : i64, tpu.core_type = #tpu.core_type<tc>, window_params = [{transform_indices = @transform_0, window_bounds = array<i64: 16, 256>}, {pipeline_mode = #tpu.pipeline_mode<synchronous>, transform_indices = @transform_1, window_bounds = array<i64: 1, 256>}, {pipeline_mode = #tpu.pipeline_mode<synchronous>, transform_indices = @transform_2, window_bounds = array<i64: 1, 256>}, {transform_indices = @transform_3, window_bounds = array<i64: 256, 512>}, {transform_indices = @transform_4, window_bounds = array<i64: 1, 512>}, {transform_indices = @transform_5, window_bounds = array<i64: 512, 256>}, {pipeline_mode = #tpu.pipeline_mode<synchronous>, transform_indices = @transform_6, window_bounds = array<i64: 1, 256>}, {transform_indices = @transform_7, window_bounds = array<i64: 16, 256>}]} {
    %c0_i32 = arith.constant 0 : i32
    %0 = arith.cmpi eq, %arg1, %c0_i32 : i32
    %1 = arith.extui %0 : i1 to i32
    %c0_i32_0 = arith.constant 0 : i32
    %2 = arith.cmpi ne, %1, %c0_i32_0 : i32
    scf.if %2 {
      %c0_15 = arith.constant 0 : index
      %c0_16 = arith.constant 0 : index
      %20 = vector.load %arg2[%c0_15, %c0_16] : memref<16x256xf32, #tpu.memory_space<vmem>>, vector<16x256xf32>
      %c0_17 = arith.constant 0 : index
      %c0_18 = arith.constant 0 : index
      %21 = vector.load %arg3[%c0_17, %c0_18] : memref<1x256xf32, #tpu.memory_space<vmem>>, vector<1x256xf32>
      %c0_19 = arith.constant 0 : index
      %c0_20 = arith.constant 0 : index
      %22 = vector.load %arg4[%c0_19, %c0_20] : memref<1x256xf32, #tpu.memory_space<vmem>>, vector<1x256xf32>
      %cst_21 = arith.constant dense<0.000000e+00> : vector<16xf32>
      %23 = vector.multi_reduction <add>, %20, %cst_21 [1] : vector<16x256xf32> to vector<16xf32>
      %24 = vector.shape_cast %23 : vector<16xf32> to vector<16x1xf32>
      %cst_22 = arith.constant 2.560000e+02 : f32
      %25 = vector.broadcast %cst_22 : f32 to vector<16x1xf32>
      %26 = arith.divf %24, %25 : vector<16x1xf32>
      %27 = vector.broadcast %26 : vector<16x1xf32> to vector<16x256xf32>
      %28 = arith.subf %20, %27 : vector<16x256xf32>
      %29 = arith.mulf %28, %28 : vector<16x256xf32>
      %cst_23 = arith.constant dense<0.000000e+00> : vector<16xf32>
      %30 = vector.multi_reduction <add>, %29, %cst_23 [1] : vector<16x256xf32> to vector<16xf32>
      %31 = vector.shape_cast %30 : vector<16xf32> to vector<16x1xf32>
      %cst_24 = arith.constant 2.560000e+02 : f32
      %32 = vector.broadcast %cst_24 : f32 to vector<16x1xf32>
      %33 = arith.divf %31, %32 : vector<16x1xf32>
      %cst_25 = arith.constant 9.99999974E-6 : f32
      %34 = vector.broadcast %cst_25 : f32 to vector<16x1xf32>
      %35 = arith.addf %33, %34 : vector<16x1xf32>
      %36 = math.rsqrt %35 : vector<16x1xf32>
      %37 = vector.broadcast %36 : vector<16x1xf32> to vector<16x256xf32>
      %38 = arith.mulf %28, %37 : vector<16x256xf32>
      %39 = vector.broadcast %21 : vector<1x256xf32> to vector<16x256xf32>
      %40 = arith.mulf %38, %39 : vector<16x256xf32>
      %41 = vector.broadcast %22 : vector<1x256xf32> to vector<16x256xf32>
      %42 = arith.addf %40, %41 : vector<16x256xf32>
      %43 = arith.truncf %42 : vector<16x256xf32> to vector<16x256xbf16>
      %c0_26 = arith.constant 0 : index
      %c0_27 = arith.constant 0 : index
      %44 = vector.load %arg11[%c0_26, %c0_27] : memref<16x256xbf16, #tpu.memory_space<vmem>>, vector<16x256xbf16>
      tpu.vector_store %arg11[%c0_26, %c0_27], %43 {strides = array<i32>} : memref<16x256xbf16, #tpu.memory_space<vmem>>, vector<16x256xbf16>,
      %c0_28 = arith.constant 0 : index
      %c0_29 = arith.constant 0 : index
      %45 = vector.load %arg10[%c0_28, %c0_29] : memref<16x256xf32, #tpu.memory_space<vmem>>, vector<16x256xf32>
      tpu.vector_store %arg10[%c0_28, %c0_29], %20 {strides = array<i32>} : memref<16x256xf32, #tpu.memory_space<vmem>>, vector<16x256xf32>,
    } else {
    }
    %c0 = arith.constant 0 : index
    %c0_1 = arith.constant 0 : index
    %3 = vector.load %arg11[%c0, %c0_1] : memref<16x256xbf16, #tpu.memory_space<vmem>>, vector<16x256xbf16>
    %c0_2 = arith.constant 0 : index
    %c0_3 = arith.constant 0 : index
    %4 = vector.load %arg5[%c0_2, %c0_3] : memref<256x512xbf16, #tpu.memory_space<vmem>>, vector<256x512xbf16>
    %cst = arith.constant dense<0.000000e+00> : vector<16x512xf32>
    %5 = tpu.matmul %3, %4, %cst {dimension_numbers = #tpu.dot_dimension_numbers<[1], [0], [0], [1], [0, 0, 1, 1], [], []>} : vector<16x256xbf16>, vector<256x512xbf16>, vector<16x512xf32> -> vector<16x512xf32>
    %c0_4 = arith.constant 0 : index
    %c0_5 = arith.constant 0 : index
    %6 = vector.load %arg6[%c0_4, %c0_5] : memref<1x512xf32, #tpu.memory_space<vmem>>, vector<1x512xf32>
    %7 = vector.broadcast %6 : vector<1x512xf32> to vector<16x512xf32>
    %8 = arith.addf %5, %7 : vector<16x512xf32>
    %cst_6 = arith.constant 0.000000e+00 : f32
    %9 = vector.broadcast %cst_6 : f32 to vector<16x512xf32>
    %10 = arith.maximumf %8, %9 : vector<16x512xf32>
    %c0_7 = arith.constant 0 : index
    %c0_8 = arith.constant 0 : index
    %11 = vector.load %arg10[%c0_7, %c0_8] : memref<16x256xf32, #tpu.memory_space<vmem>>, vector<16x256xf32>
    %12 = arith.truncf %10 : vector<16x512xf32> to vector<16x512xbf16>
    %c0_9 = arith.constant 0 : index
    %c0_10 = arith.constant 0 : index
    %13 = vector.load %arg7[%c0_9, %c0_10] : memref<512x256xbf16, #tpu.memory_space<vmem>>, vector<512x256xbf16>
    %cst_11 = arith.constant dense<0.000000e+00> : vector<16x256xf32>
    %14 = tpu.matmul %12, %13, %cst_11 {dimension_numbers = #tpu.dot_dimension_numbers<[1], [0], [0], [1], [0, 0, 1, 1], [], []>} : vector<16x512xbf16>, vector<512x256xbf16>, vector<16x256xf32> -> vector<16x256xf32>
    %15 = arith.addf %11, %14 : vector<16x256xf32>
    %c0_12 = arith.constant 0 : index
    %c0_13 = arith.constant 0 : index
    %16 = vector.load %arg10[%c0_12, %c0_13] : memref<16x256xf32, #tpu.memory_space<vmem>>, vector<16x256xf32>
    tpu.vector_store %arg10[%c0_12, %c0_13], %15 {strides = array<i32>} : memref<16x256xf32, #tpu.memory_space<vmem>>, vector<16x256xf32>,
    %c1_i32 = arith.constant 1 : i32
    %17 = arith.cmpi eq, %arg1, %c1_i32 : i32
    %18 = arith.extui %17 : i1 to i32
    %c0_i32_14 = arith.constant 0 : i32
    %19 = arith.cmpi ne, %18, %c0_i32_14 : i32
    scf.if %19 {
      %c0_15 = arith.constant 0 : index
      %c0_16 = arith.constant 0 : index
      %20 = vector.load %arg10[%c0_15, %c0_16] : memref<16x256xf32, #tpu.memory_space<vmem>>, vector<16x256xf32>
      %c0_17 = arith.constant 0 : index
      %c0_18 = arith.constant 0 : index
      %21 = vector.load %arg8[%c0_17, %c0_18] : memref<1x256xf32, #tpu.memory_space<vmem>>, vector<1x256xf32>
      %22 = vector.broadcast %21 : vector<1x256xf32> to vector<16x256xf32>
      %23 = arith.addf %20, %22 : vector<16x256xf32>
      %c0_19 = arith.constant 0 : index
      %c0_20 = arith.constant 0 : index
      %24 = vector.load %arg9[%c0_19, %c0_20] : memref<16x256xf32, #tpu.memory_space<vmem>>, vector<16x256xf32>
      tpu.vector_store %arg9[%c0_19, %c0_20], %23 {strides = array<i32>} : memref<16x256xf32, #tpu.memory_space<vmem>>, vector<16x256xf32>,
    } else {
    }
    return
  }
  func.func @transform_0(%arg0: i32, %arg1: i32) -> (i32, i32) {
    %c0_i32 = arith.constant 0 : i32
    %c0_i32_0 = arith.constant 0 : i32
    return %arg0, %c0_i32 : i32, i32
  }
  func.func @transform_1(%arg0: i32, %arg1: i32) -> (i32, i32) {
    %c0_i32 = arith.constant 0 : i32
    %c0_i32_0 = arith.constant 0 : i32
    %c0_i32_1 = arith.constant 0 : i32
    return %c0_i32, %c0_i32_0 : i32, i32
  }
  func.func @transform_2(%arg0: i32, %arg1: i32) -> (i32, i32) {
    %c0_i32 = arith.constant 0 : i32
    %c0_i32_0 = arith.constant 0 : i32
    %c0_i32_1 = arith.constant 0 : i32
    return %c0_i32, %c0_i32_0 : i32, i32
  }
  func.func @transform_3(%arg0: i32, %arg1: i32) -> (i32, i32) {
    %c0_i32 = arith.constant 0 : i32
    %c0_i32_0 = arith.constant 0 : i32
    return %c0_i32, %arg1 : i32, i32
  }
  func.func @transform_4(%arg0: i32, %arg1: i32) -> (i32, i32) {
    %c0_i32 = arith.constant 0 : i32
    %c0_i32_0 = arith.constant 0 : i32
    return %c0_i32, %arg1 : i32, i32
  }
  func.func @transform_5(%arg0: i32, %arg1: i32) -> (i32, i32) {
    %c0_i32 = arith.constant 0 : i32
    %c0_i32_0 = arith.constant 0 : i32
    return %arg1, %c0_i32 : i32, i32
  }
  func.func @transform_6(%arg0: i32, %arg1: i32) -> (i32, i32) {
    %c0_i32 = arith.constant 0 : i32
    %c0_i32_0 = arith.constant 0 : i32
    %c0_i32_1 = arith.constant 0 : i32
    return %c0_i32, %c0_i32_0 : i32, i32
  }
  func.func @transform_7(%arg0: i32, %arg1: i32) -> (i32, i32) {
    %c0_i32 = arith.constant 0 : i32
    %c0_i32_0 = arith.constant 0 : i32
    return %arg0, %c0_i32 : i32, i32
  }
}

module attributes {stable_mosaic.version = 11 : i64} {
  func.func @_attn_kernel(%arg0: i32, %arg1: memref<1x8x256xf32, #tpu.memory_space<vmem>>, %arg2: memref<1x256xf32, #tpu.memory_space<vmem>>, %arg3: memref<1x256xf32, #tpu.memory_space<vmem>>, %arg4: memref<256x768xbf16, #tpu.memory_space<vmem>>, %arg5: memref<256x256xbf16, #tpu.memory_space<vmem>>, %arg6: memref<1x8x256xf32, #tpu.memory_space<vmem>>) attributes {dimension_semantics = [#tpu.dimension_semantics<parallel>], iteration_bounds = array<i64: 2>, scalar_prefetch = 0 : i64, scratch_operands = 0 : i64, tpu.core_type = #tpu.core_type<tc>, window_params = [{transform_indices = @transform_0, window_bounds = array<i64: 1, 8, 256>}, {pipeline_mode = #tpu.pipeline_mode<synchronous>, transform_indices = @transform_1, window_bounds = array<i64: 1, 256>}, {pipeline_mode = #tpu.pipeline_mode<synchronous>, transform_indices = @transform_2, window_bounds = array<i64: 1, 256>}, {pipeline_mode = #tpu.pipeline_mode<synchronous>, transform_indices = @transform_3, window_bounds = array<i64: 256, 768>}, {pipeline_mode = #tpu.pipeline_mode<synchronous>, transform_indices = @transform_4, window_bounds = array<i64: 256, 256>}, {transform_indices = @transform_5, window_bounds = array<i64: 1, 8, 256>}]} {
    %c0 = arith.constant 0 : index
    %c0_0 = arith.constant 0 : index
    %c0_1 = arith.constant 0 : index
    %0 = vector.load %arg1[%c0, %c0_0, %c0_1] : memref<1x8x256xf32, #tpu.memory_space<vmem>>, vector<1x8x256xf32>
    %1 = vector.shape_cast %0 : vector<1x8x256xf32> to vector<8x256xf32>
    %c0_2 = arith.constant 0 : index
    %c0_3 = arith.constant 0 : index
    %2 = vector.load %arg2[%c0_2, %c0_3] : memref<1x256xf32, #tpu.memory_space<vmem>>, vector<1x256xf32>
    %c0_4 = arith.constant 0 : index
    %c0_5 = arith.constant 0 : index
    %3 = vector.load %arg3[%c0_4, %c0_5] : memref<1x256xf32, #tpu.memory_space<vmem>>, vector<1x256xf32>
    %cst = arith.constant dense<0.000000e+00> : vector<8xf32>
    %4 = vector.multi_reduction <add>, %1, %cst [1] : vector<8x256xf32> to vector<8xf32>
    %5 = vector.shape_cast %4 : vector<8xf32> to vector<8x1xf32>
    %cst_6 = arith.constant 2.560000e+02 : f32
    %6 = vector.broadcast %cst_6 : f32 to vector<8x1xf32>
    %7 = arith.divf %5, %6 : vector<8x1xf32>
    %8 = vector.broadcast %7 : vector<8x1xf32> to vector<8x256xf32>
    %9 = arith.subf %1, %8 : vector<8x256xf32>
    %10 = arith.mulf %9, %9 : vector<8x256xf32>
    %cst_7 = arith.constant dense<0.000000e+00> : vector<8xf32>
    %11 = vector.multi_reduction <add>, %10, %cst_7 [1] : vector<8x256xf32> to vector<8xf32>
    %12 = vector.shape_cast %11 : vector<8xf32> to vector<8x1xf32>
    %cst_8 = arith.constant 2.560000e+02 : f32
    %13 = vector.broadcast %cst_8 : f32 to vector<8x1xf32>
    %14 = arith.divf %12, %13 : vector<8x1xf32>
    %cst_9 = arith.constant 9.99999974E-6 : f32
    %15 = vector.broadcast %cst_9 : f32 to vector<8x1xf32>
    %16 = arith.addf %14, %15 : vector<8x1xf32>
    %17 = math.rsqrt %16 : vector<8x1xf32>
    %18 = vector.broadcast %17 : vector<8x1xf32> to vector<8x256xf32>
    %19 = arith.mulf %9, %18 : vector<8x256xf32>
    %20 = vector.broadcast %2 : vector<1x256xf32> to vector<8x256xf32>
    %21 = arith.mulf %19, %20 : vector<8x256xf32>
    %22 = vector.broadcast %3 : vector<1x256xf32> to vector<8x256xf32>
    %23 = arith.addf %21, %22 : vector<8x256xf32>
    %24 = arith.truncf %23 : vector<8x256xf32> to vector<8x256xbf16>
    %c0_10 = arith.constant 0 : index
    %c0_11 = arith.constant 0 : index
    %25 = vector.load %arg4[%c0_10, %c0_11] : memref<256x768xbf16, #tpu.memory_space<vmem>>, vector<256x768xbf16>
    %cst_12 = arith.constant dense<0.000000e+00> : vector<8x768xf32>
    %26 = tpu.matmul %24, %25, %cst_12 {dimension_numbers = #tpu.dot_dimension_numbers<[1], [0], [0], [1], [0, 0, 1, 1], [], []>} : vector<8x256xbf16>, vector<256x768xbf16>, vector<8x768xf32> -> vector<8x768xf32>
    %27 = vector.extract_strided_slice %26 {offsets = [0, 0], sizes = [8, 256], strides = [1, 1]} : vector<8x768xf32> to vector<8x256xf32>
    %cst_13 = arith.constant 0.0883883461 : f32
    %28 = vector.broadcast %cst_13 : f32 to vector<8x256xf32>
    %29 = arith.mulf %27, %28 : vector<8x256xf32>
    %30 = vector.extract_strided_slice %26 {offsets = [0, 256], sizes = [8, 256], strides = [1, 1]} : vector<8x768xf32> to vector<8x256xf32>
    %31 = vector.extract_strided_slice %26 {offsets = [0, 512], sizes = [8, 256], strides = [1, 1]} : vector<8x768xf32> to vector<8x256xf32>
    %32 = vector.shape_cast %29 : vector<8x256xf32> to vector<2x8x128xf32>
    %33 = arith.truncf %32 : vector<2x8x128xf32> to vector<2x8x128xbf16>
    %34 = vector.shape_cast %30 : vector<8x256xf32> to vector<2x8x128xf32>
    %35 = arith.truncf %34 : vector<2x8x128xf32> to vector<2x8x128xbf16>
    %36 = vector.shape_cast %31 : vector<8x256xf32> to vector<2x8x128xf32>
    %37 = arith.truncf %36 : vector<2x8x128xf32> to vector<2x8x128xbf16>
    %cst_14 = arith.constant dense<0.000000e+00> : vector<2x8x8xf32>
    %38 = tpu.matmul %33, %35, %cst_14 {dimension_numbers = #tpu.dot_dimension_numbers<[2], [2], [1], [1], [0, 0, 0, 1, 1, 1], [0], [0]>} : vector<2x8x128xbf16>, vector<2x8x128xbf16>, vector<2x8x8xf32> -> vector<2x8x8xf32>
    %cst_15 = arith.constant dense<0xFF800000> : vector<2x8xf32>
    %39 = vector.multi_reduction <maximumf>, %38, %cst_15 [2] : vector<2x8x8xf32> to vector<2x8xf32>
    %40 = vector.shape_cast %39 : vector<2x8xf32> to vector<2x8x1xf32>
    %41 = vector.broadcast %40 : vector<2x8x1xf32> to vector<2x8x8xf32>
    %42 = arith.subf %38, %41 : vector<2x8x8xf32>
    %43 = math.exp %42 : vector<2x8x8xf32>
    %cst_16 = arith.constant dense<0.000000e+00> : vector<2x8xf32>
    %44 = vector.multi_reduction <add>, %43, %cst_16 [2] : vector<2x8x8xf32> to vector<2x8xf32>
    %45 = vector.shape_cast %44 : vector<2x8xf32> to vector<2x8x1xf32>
    %46 = tpu.reciprocal %45 {approx = true} : vector<2x8x1xf32> -> vector<2x8x1xf32>
    %47 = vector.broadcast %46 : vector<2x8x1xf32> to vector<2x8x8xf32>
    %48 = arith.mulf %43, %47 : vector<2x8x8xf32>
    %49 = arith.truncf %48 : vector<2x8x8xf32> to vector<2x8x8xbf16>
    %cst_17 = arith.constant dense<0.000000e+00> : vector<2x8x128xf32>
    %50 = tpu.matmul %49, %37, %cst_17 {dimension_numbers = #tpu.dot_dimension_numbers<[2], [1], [1], [2], [0, 0, 0, 1, 1, 2], [0], [0]>} : vector<2x8x8xbf16>, vector<2x8x128xbf16>, vector<2x8x128xf32> -> vector<2x8x128xf32>
    %51 = vector.extract_strided_slice %50 {offsets = [0, 0, 0], sizes = [1, 8, 128], strides = [1, 1, 1]} : vector<2x8x128xf32> to vector<1x8x128xf32>
    %52 = vector.shape_cast %51 : vector<1x8x128xf32> to vector<8x128xf32>
    %53 = vector.extract_strided_slice %50 {offsets = [1, 0, 0], sizes = [1, 8, 128], strides = [1, 1, 1]} : vector<2x8x128xf32> to vector<1x8x128xf32>
    %54 = vector.shape_cast %53 : vector<1x8x128xf32> to vector<8x128xf32>
    %55 = tpu.concatenate %52, %54 in 1 : vector<8x128xf32>, vector<8x128xf32> -> vector<8x256xf32>
    %56 = arith.truncf %55 : vector<8x256xf32> to vector<8x256xbf16>
    %c0_18 = arith.constant 0 : index
    %c0_19 = arith.constant 0 : index
    %57 = vector.load %arg5[%c0_18, %c0_19] : memref<256x256xbf16, #tpu.memory_space<vmem>>, vector<256x256xbf16>
    %cst_20 = arith.constant dense<0.000000e+00> : vector<8x256xf32>
    %58 = tpu.matmul %56, %57, %cst_20 {dimension_numbers = #tpu.dot_dimension_numbers<[1], [0], [0], [1], [0, 0, 1, 1], [], []>} : vector<8x256xbf16>, vector<256x256xbf16>, vector<8x256xf32> -> vector<8x256xf32>
    %59 = arith.addf %1, %58 : vector<8x256xf32>
    %c0_21 = arith.constant 0 : index
    %c0_22 = arith.constant 0 : index
    %c0_23 = arith.constant 0 : index
    %60 = vector.load %arg6[%c0_21, %c0_22, %c0_23] : memref<1x8x256xf32, #tpu.memory_space<vmem>>, vector<1x8x256xf32>
    %61 = vector.shape_cast %60 : vector<1x8x256xf32> to vector<8x256xf32>
    %62 = vector.shape_cast %59 : vector<8x256xf32> to vector<1x8x256xf32>
    tpu.vector_store %arg6[%c0_21, %c0_22, %c0_23], %62 {strides = array<i32>} : memref<1x8x256xf32, #tpu.memory_space<vmem>>, vector<1x8x256xf32>,
    return
  }
  func.func @transform_0(%arg0: i32) -> (i32, i32, i32) {
    %c0_i32 = arith.constant 0 : i32
    %c0_i32_0 = arith.constant 0 : i32
    %c0_i32_1 = arith.constant 0 : i32
    return %arg0, %c0_i32, %c0_i32_0 : i32, i32, i32
  }
  func.func @transform_1(%arg0: i32) -> (i32, i32) {
    %c0_i32 = arith.constant 0 : i32
    %c0_i32_0 = arith.constant 0 : i32
    %c0_i32_1 = arith.constant 0 : i32
    return %c0_i32, %c0_i32_0 : i32, i32
  }
  func.func @transform_2(%arg0: i32) -> (i32, i32) {
    %c0_i32 = arith.constant 0 : i32
    %c0_i32_0 = arith.constant 0 : i32
    %c0_i32_1 = arith.constant 0 : i32
    return %c0_i32, %c0_i32_0 : i32, i32
  }
  func.func @transform_3(%arg0: i32) -> (i32, i32) {
    %c0_i32 = arith.constant 0 : i32
    %c0_i32_0 = arith.constant 0 : i32
    %c0_i32_1 = arith.constant 0 : i32
    return %c0_i32, %c0_i32_0 : i32, i32
  }
  func.func @transform_4(%arg0: i32) -> (i32, i32) {
    %c0_i32 = arith.constant 0 : i32
    %c0_i32_0 = arith.constant 0 : i32
    %c0_i32_1 = arith.constant 0 : i32
    return %c0_i32, %c0_i32_0 : i32, i32
  }
  func.func @transform_5(%arg0: i32) -> (i32, i32, i32) {
    %c0_i32 = arith.constant 0 : i32
    %c0_i32_0 = arith.constant 0 : i32
    %c0_i32_1 = arith.constant 0 : i32
    return %arg0, %c0_i32, %c0_i32_0 : i32, i32, i32
  }
}

</mosaic_0001>

<bundles_post_ra>
// kernel: gpt2_forward.4
= control target key start
LH: loop header
LB: loop body
LE: loop exit
PB: predicated region body
PF: predicated region fallthrough
CT: control target
= control target key end

     0   :  { %10 = vsyncpa [#allocation3], 0  ;;  %s2445_s0 = inlined_call_operand.vmem [shape: f32[2,8,256], index: 0, kind: input, shape index: {}]   ;;  %s2446_s1 = inlined_call_operand.hbm [shape: f32[1,256], index: 1, kind: input, shape index: {}]   ;;  %s2447_s2 = inlined_call_operand.hbm [shape: f32[1,256], index: 2, kind: input, shape index: {}]   ;;  %s2448_s3 = inlined_call_operand.hbm [shape: bf16[256,768], index: 3, kind: input, shape index: {}]   ;;  %s2449_s4 = inlined_call_operand.vmem [shape: bf16[256,256], index: 4, kind: input, shape index: {}]   ;;  %s2450_s5 = inlined_call_operand.vmem [shape: f32[2,8,256], index: 5, kind: output, shape index: {}]  }
   0x1   :  { %11 = vsyncpa [#allocation5], 0  ;;  %s2172_s18 = smov 0  }
   0x2 LB: > { %s2178_s19 = sadd.s32 4294967295, %s2132_s18   ;;  %p1607_p0 = scmp.ge.s32.totalorder %s2132_s18, 1  ;;  %s2132_s18 = sphi %s2172_s18, %s17_s18  }
   0x3   : > { %p158_p1 = scmp.lt.s32.totalorder %s2132_s18, 3  ;;  %p2451_p2 = scmp.eq.s32.totalorder %s2178_s19, 0 }
   0x4   : > { %s2134_s20 = smov [#allocation4]   ;;  %s2135_s23 = smov [#allocation2]  }
   0x5   : > { %s182_s21 = sshll.u32 %s2134_s20, 4  ;;  %p2183_p3 = pnand %p1607_p0, %p158_p1  ;;  %s183_s21 = int_to_ptr.vmem [resolvable:$true] %s182_s21 }
   0x6   : > { %s171_s24 = sshll.u32 %s2135_s23, 4  ;;  %s2136_s25 = smov [#allocation6]   ;;  %s2195_s24 = int_to_ptr.vmem [resolvable:$true] %s171_s24 }
   0x7   : > { %s2453_s22 = scalar_select %p2183_p3, 1, 0 }
   0x8   : > { %p1798_p4 = pneg %p2183_p3  ;;  %s192_s26 = sshll.u32 %s2136_s25, 4  ;;  %s2197_s26 = int_to_ptr.vmem [resolvable:$true] %s192_s26 }
   0x9   : > { %s2034_s30 = scalar_lea.hbm %s2447_s2, 32 }
   0xa   : > { %p2191_p5 = pnand %p2451_p2, %p1798_p4  ;;  %p2035_p6 = scmp.ne.s32.totalorder %s2447_s2, %s2034_s30 }
   0xb   : > { %p2041_p10 = scmp.lt.u32.totalorder %s2034_s30, %s2447_s2 }
   0xc   : > { %p2207_p7 = pneg %p2191_p5 }
   0xe   : > { %p2037_p8 = pnand %p2207_p7, %p2035_p6 }
  0x10   : > { %p2038_p9 = pneg %p2037_p8 }
  0x12   : > { %p2043_p11 = pnand %p2041_p10, %p2038_p9 }
  0x14   : > { %2046 = shalt.err (!%p2043_p11)
}
  0x15   : > { %s2047_s11 = scalar_lea.vmem %s183_s21, 32  ;;  %p2055_p1 = scmp.lt.s32.totalorder %s183_s21, %s183_s21 }
  0x16   : > { %p2048_p12 = scmp.ne.s32.totalorder %s183_s21, %s2047_s11  ;;  %p2056_p4 = scmp.lt.s32.totalorder %s2047_s11, %s2047_s11 }
  0x18   : > { %p2050_p13 = pnand %p2048_p12, %p2207_p7  ;;  %p2057_p2 = por %p2056_p4, %p2055_p1 }
  0x1a   : > { %p2051_p0 = pneg %p2050_p13 }
  0x1c   : > { %p2058_p3 = pnand %p2057_p2, %p2051_p0 }
  0x1e   : > { %2061 = shalt.err (!%p2058_p3)
}
  0x1f   : > { %1804 = dma.hbm_to_vmem [thread:$0]  (!%p2191_p5), %s2447_s2, 32, %s183_s21, [#allocation5]  }
  0x20   : > { %s2062_s16 = scalar_lea.hbm %s2446_s1, 32 }
  0x21   : > { %p2063_p6 = scmp.ne.s32.totalorder %s2446_s1, %s2062_s16  ;;  %p2069_p2 = scmp.lt.u32.totalorder %s2062_s16, %s2446_s1 }
  0x23   : > { %p2065_p8 = pnand %p2063_p6, %p2207_p7 }
  0x25   : > { %p2066_p9 = pneg %p2065_p8 }
  0x27   : > { %p2071_p3 = pnand %p2069_p2, %p2066_p9 }
  0x29   : > { %2074 = shalt.err (!%p2071_p3)
}
  0x2a   : > { %s2075_s21 = scalar_lea.vmem %s2195_s24, 32  ;;  %p2083_p13 = scmp.lt.s32.totalorder %s2195_s24, %s2195_s24 }
  0x2b   : > { %p2076_p10 = scmp.ne.s32.totalorder %s2195_s24, %s2075_s21  ;;  %p2084_p0 = scmp.lt.s32.totalorder %s2075_s21, %s2075_s21 }
  0x2d   : > { %p2078_p11 = pnand %p2076_p10, %p2207_p7  ;;  %p2085_p1 = por %p2084_p0, %p2083_p13 }
  0x2f   : > { %p2079_p12 = pneg %p2078_p11 }
  0x31   : > { %p2086_p4 = pnand %p2085_p1, %p2079_p12 }
  0x33   : > { %2089 = shalt.err (!%p2086_p4)
}
  0x34   : > { %1801 = dma.hbm_to_vmem [thread:$0]  (!%p2191_p5), %s2446_s1, 32, %s2195_s24, [#allocation3]  }
  0x35   : > { %s2090_s7 = scalar_lea.hbm %s2448_s3, 12288 }
  0x36   : > { %p2091_p6 = scmp.ne.s32.totalorder %s2448_s3, %s2090_s7  ;;  %p2097_p2 = scmp.lt.u32.totalorder %s2090_s7, %s2448_s3 }
  0x38   : > { %p2093_p8 = pnand %p2091_p6, %p2207_p7 }
  0x3a   : > { %p2094_p9 = pneg %p2093_p8 }
  0x3c   : > { %p2099_p3 = pnand %p2097_p2, %p2094_p9 }
  0x3e   : > { %2102 = shalt.err (!%p2099_p3)
}
  0x3f   : > { %s2103_s24 = scalar_lea.vmem %s2197_s26, 12288  ;;  %p2111_p13 = scmp.lt.s32.totalorder %s2197_s26, %s2197_s26 }
  0x40   : > { %p2104_p10 = scmp.ne.s32.totalorder %s2197_s26, %s2103_s24  ;;  %p2112_p0 = scmp.lt.s32.totalorder %s2103_s24, %s2103_s24 }
  0x42   : > { %p2106_p11 = pnand %p2104_p10, %p2207_p7  ;;  %p2113_p1 = por %p2112_p0, %p2111_p13 }
  0x44   : > { %p2107_p12 = pneg %p2106_p11 }
  0x46   : > { %p2114_p4 = pnand %p2113_p1, %p2107_p12 }
  0x48   : > { %2117 = shalt.err (!%p2114_p4)
}
  0x49   : > { %s2137_s13 = smov 384   ;;  %s2138_s14 = smov 24  }
  0x4a   : > { %1807 = dma.hbm_to_vmem [thread:$0]  (!%p2191_p5), %s2448_s3, 12288, %s2197_s26, [#allocation5], %s2137_s13, %s2137_s13, %s2138_s14  }
  0x4b   : > { %p2456_p6 = scmp.ne.s32.totalorder %s2453_s22, 0 }
  0x4c   : > { %p2457_p7 = scmp.eq.s32.totalorder (!%p2456_p6), %s2178_s19, 0 }
  0x4d   : > { %219 = sbr.rel (%p2456_p6) target bundleno = 1605 (0x645), region = 40 }
  0x54   : > { %2123 = dma.done.wait (%p2457_p7), [#allocation3], 32   ;;  %p2458_p8 = pmov %p2457_p7 }
  0x55   : > { %p2459_p9 = pmov %p2457_p7 }
  0x56   : > { %2125 = vsyncadd (%p2458_p8), [#allocation3], 4294967264 }
  0x57   : > { %2127 = dma.done.wait (%p2459_p9), [#allocation5], 12320   ;;  %p2460_p2 = pmov %p2457_p7 }
  0x58   : > { %p255_p3 = scmp.lt.s32.totalorder %s2178_s19, 1  ;;  %v1830_v3 = vld [vmem:[#allocation6 + $0x4] ss:$24 sps:$4 sm:$0xff]   ;;  %v1832_v4 = vld [vmem:[#allocation6] ss:$24 sps:$4 sm:$0xff]   ;;  %vm2140_vm0 = vmmov 0  }
  0x59   : > { %2129 = vsyncadd (%p2460_p2), [#allocation5], 4294954976  ;;  %v1833_v5 = vld [vmem:[#allocation6 + $0xc] ss:$24 sps:$4 sm:$0xff]   ;;  %v1835_v6 = vld [vmem:[#allocation6 + $0x8] ss:$24 sps:$4 sm:$0xff]   ;;  %891 = vmatprep.subr.bf16.mxu0 %v1830_v3 }
  0x5a   : > { %s2462_s19 = smov (!%p255_p3, %s2178_s19), 1  ;;  %v1836_v7 = vld [vmem:[#allocation6 + $0x34] ss:$24 sps:$4 sm:$0xff]   ;;  %932 = vmatprep.subr.bf16.mxu1 %v1833_v5  ;;  %892 = vmatpush1.bf16.msra.mxu0 %v1832_v4  ;;  %v1838_v9 = vld [vmem:[#allocation6 + $0x30] ss:$24 sps:$4 sm:$0xff]   ;;  %vm1190_vm1 = vcmask 1043456  }
  0x5b   : > { %s1752_s22 = sshll.u32 %s2462_s19, 4  ;;  %v1839_v8 = vld [vmem:[#allocation6 + $0x3c] ss:$24 sps:$4 sm:$0xff]   ;;  %933 = vmatpush1.bf16.msra.mxu1 %v1835_v6  ;;  %v1841_v10 = vld [vmem:[#allocation6 + $0x38] ss:$24 sps:$4 sm:$0xff]   ;;  %893 = vmatprep.subr.bf16.mxu0 %v1836_v7  ;;  %vm1162_vm2 = vcmask 64512  }
  0x5c   : > { %s2289_s8 = scalar_lea.vmem %s2445_s0, %s1752_s22  ;;  %934 = vmatprep.subr.bf16.mxu1 %v1839_v8  ;;  %v1842_v11 = vld [vmem:[#allocation6 + $0x64] ss:$24 sps:$4 sm:$0xff]   ;;  %v1844_v13 = vld [vmem:[#allocation6 + $0x60] ss:$24 sps:$4 sm:$0xff]   ;;  %v1848_v15 = vld [vmem:[#allocation6 + $0x94] ss:$24 sps:$4 sm:$0xff]   ;;  %s264_s25 = scalar_lea.vmem %s2450_s5, %s1752_s22 }
  0x5d   : > { %v2292_v0 = vld [vmem:[%s2289_s8] sm:$0xff]  ;;  %v2295_v1 = vld [vmem:[%s2289_s8 + $0x8] sm:$0xff]  ;;  %v1853_v18 = vld [vmem:[#allocation6 + $0x98] ss:$24 sps:$4 sm:$0xff]  }
  0x5e   : > { %v270_v2 = vadd.f32 %v2295_v1, %v2292_v0  ;;  %v1845_v12 = vld [vmem:[#allocation6 + $0x6c] ss:$24 sps:$4 sm:$0xff]   ;;  %894 = vmatpush1.bf16.msra.mxu0 %v1838_v9  ;;  %v1847_v14 = vld [vmem:[#allocation6 + $0x68] ss:$24 sps:$4 sm:$0xff]   ;;  %v1851_v16 = vld [vmem:[#allocation6 + $0x9c] ss:$24 sps:$4 sm:$0xff]  }
  0x5f   : > { %935 = vmatpush1.bf16.msra.mxu1 %v1841_v10  ;;  %895 = vmatprep.subr.bf16.mxu0 %v1842_v11  ;;  %v1850_v17 = vld [vmem:[#allocation6 + $0x90] ss:$24 sps:$4 sm:$0xff]   ;;  %v1854_v19 = vld [vmem:[#allocation6 + $0xc4] ss:$24 sps:$4 sm:$0xff]   ;;  %v1856_v21 = vld [vmem:[#allocation6 + $0xc0] ss:$24 sps:$4 sm:$0xff]  }
  0x60   : > { %271 = vadd.xlane.f32.xlu0 %v270_v2  ;;  %936 = vmatprep.subr.bf16.mxu1 %v1845_v12  ;;  %v1857_v20 = vld [vmem:[#allocation6 + $0xcc] ss:$24 sps:$4 sm:$0xff]   ;;  %v1859_v22 = vld [vmem:[#allocation6 + $0xc8] ss:$24 sps:$4 sm:$0xff]   ;;  %v1863_v24 = vld [vmem:[#allocation6 + $0xfc] ss:$24 sps:$4 sm:$0xff]  }
  0x61   : > { %v1860_v23 = vld [vmem:[#allocation6 + $0xf4] ss:$24 sps:$4 sm:$0xff]   ;;  %v1862_v25 = vld [vmem:[#allocation6 + $0xf0] ss:$24 sps:$4 sm:$0xff]   ;;  %v1866_v27 = vld [vmem:[#allocation6 + $0x124] ss:$24 sps:$4 sm:$0xff]  }
  0x62   : > { %896 = vmatpush1.bf16.msra.mxu0 %v1844_v13  ;;  %v1865_v26 = vld [vmem:[#allocation6 + $0xf8] ss:$24 sps:$4 sm:$0xff]   ;;  %v1869_v28 = vld [vmem:[#allocation6 + $0x12c] ss:$24 sps:$4 sm:$0xff]   ;;  %v1871_v30 = vld [vmem:[#allocation6 + $0x128] ss:$24 sps:$4 sm:$0xff]   ;;  %v288_v13 = vlaneseq }
  0x63   : > { %937 = vmatpush1.bf16.msra.mxu1 %v1847_v14  ;;  %897 = vmatprep.subr.bf16.mxu0 %v1848_v15  ;;  %v1868_v29 = vld [vmem:[#allocation6 + $0x120] ss:$24 sps:$4 sm:$0xff]   ;;  %v1872_v31 = vld [vmem:[#allocation6 + $0x154] ss:$24 sps:$4 sm:$0xff]   ;;  %v1874_v33 = vld [vmem:[#allocation6 + $0x150] ss:$24 sps:$4 sm:$0xff]  }
  0x64   : > { %938 = vmatprep.subr.bf16.mxu1 %v1851_v16  ;;  %v1875_v32 = vld [vmem:[#allocation6 + $0x15c] ss:$24 sps:$4 sm:$0xff]   ;;  %v1877_v34 = vld [vmem:[#allocation6 + $0x158] ss:$24 sps:$4 sm:$0xff]   ;;  %v1881_v36 = vld [vmem:[#allocation6 + $0x18c] ss:$24 sps:$4 sm:$0xff]  }
  0x65   : > { %v1878_v35 = vld [vmem:[#allocation6 + $0x184] ss:$24 sps:$4 sm:$0xff]   ;;  %v1880_v37 = vld [vmem:[#allocation6 + $0x180] ss:$24 sps:$4 sm:$0xff]   ;;  %v1884_v39 = vld [vmem:[#allocation6 + $0x1b4] ss:$24 sps:$4 sm:$0xff]  }
  0x66   : > { %898 = vmatpush1.bf16.msra.mxu0 %v1850_v17  ;;  %v1883_v38 = vld [vmem:[#allocation6 + $0x188] ss:$24 sps:$4 sm:$0xff]   ;;  %v1887_v40 = vld [vmem:[#allocation6 + $0x1bc] ss:$24 sps:$4 sm:$0xff]   ;;  %v1889_v42 = vld [vmem:[#allocation6 + $0x1b8] ss:$24 sps:$4 sm:$0xff]  }
  0x67   : > { %939 = vmatpush1.bf16.msra.mxu1 %v1853_v18  ;;  %899 = vmatprep.subr.bf16.mxu0 %v1854_v19  ;;  %v1886_v41 = vld [vmem:[#allocation6 + $0x1b0] ss:$24 sps:$4 sm:$0xff]   ;;  %v1890_v43 = vld [vmem:[#allocation6 + $0x1e4] ss:$24 sps:$4 sm:$0xff]   ;;  %v1892_v51 = vld [vmem:[#allocation6 + $0x1e0] ss:$24 sps:$4 sm:$0xff]  }
  0x68   : > { %940 = vmatprep.subr.bf16.mxu1 %v1857_v20  ;;  %v1893_v52 = vld [vmem:[#allocation6 + $0x1ec] ss:$24 sps:$4 sm:$0xff]   ;;  %v1895_v53 = vld [vmem:[#allocation6 + $0x1e8] ss:$24 sps:$4 sm:$0xff]   ;;  %v1899_v56 = vld [vmem:[#allocation6 + $0x21c] ss:$24 sps:$4 sm:$0xff]  }
  0x69   : > { %v1896_v54 = vld [vmem:[#allocation6 + $0x214] ss:$24 sps:$4 sm:$0xff]   ;;  %v1898_v55 = vld [vmem:[#allocation6 + $0x210] ss:$24 sps:$4 sm:$0xff]   ;;  %v1902_v58 = vld [vmem:[#allocation6 + $0x244] ss:$24 sps:$4 sm:$0xff]  }
  0x6a   : > { %900 = vmatpush1.bf16.msra.mxu0 %v1856_v21  ;;  %v1901_v57 = vld [vmem:[#allocation6 + $0x218] ss:$24 sps:$4 sm:$0xff]   ;;  %v1905_v60 = vld [vmem:[#allocation6 + $0x24c] ss:$24 sps:$4 sm:$0xff]   ;;  %v1907_v61 = vld [vmem:[#allocation6 + $0x248] ss:$24 sps:$4 sm:$0xff]  }
  0x6b   : > { %941 = vmatpush1.bf16.msra.mxu1 %v1859_v22  ;;  %901 = vmatprep.subr.bf16.mxu0 %v1860_v23  ;;  %v1904_v59 = vld [vmem:[#allocation6 + $0x240] ss:$24 sps:$4 sm:$0xff]   ;;  %v1908_v62 = vld [vmem:[#allocation6 + $0x274] ss:$24 sps:$4 sm:$0xff]   ;;  %v1914_v2 = vld [vmem:[#allocation6 + $0x2a4] ss:$24 sps:$4 sm:$0xff]  }
  0x6c   : > { %942 = vmatprep.subr.bf16.mxu1 %v1863_v24  ;;  %v1911_v63 = vld [vmem:[#allocation6 + $0x27c] ss:$24 sps:$4 sm:$0xff]   ;;  %v1917_v3 = vld [vmem:[#allocation6 + $0x2ac] ss:$24 sps:$4 sm:$0xff]   ;;  %v1916_v4 = vld [vmem:[#allocation6 + $0x2a0] ss:$24 sps:$4 sm:$0xff]  }
  0x6d   : > { %v1919_v5 = vld [vmem:[#allocation6 + $0x2a8] ss:$24 sps:$4 sm:$0xff]   ;;  %v1920_v6 = vld [vmem:[#allocation6 + $0x2d4] ss:$24 sps:$4 sm:$0xff]   ;;  %v1925_v9 = vld [vmem:[#allocation6 + $0x2d8] ss:$24 sps:$4 sm:$0xff]  }
  0x6e   : > { %902 = vmatpush1.bf16.msra.mxu0 %v1862_v25  ;;  %v1923_v7 = vld [vmem:[#allocation6 + $0x2dc] ss:$24 sps:$4 sm:$0xff]   ;;  %v1922_v8 = vld [vmem:[#allocation6 + $0x2d0] ss:$24 sps:$4 sm:$0xff]   ;;  %v2309_v15 = vshrl.u32 %v288_v13, 7 }
  0x6f   : > { %943 = vmatpush1.bf16.msra.mxu1 %v1865_v26  ;;  %903 = vmatprep.subr.bf16.mxu0 %v1866_v27  ;;  %v1928_v10 = vld [vmem:[#allocation6 + $0x14] ss:$24 sps:$4 sm:$0xff]   ;;  %v268_v18 = vld [vmem:[#allocation2] sm:$0x3]  ;;  %v269_v19 = vld [vmem:[#allocation4] sm:$0x3] }
  0x70   : > { %944 = vmatprep.subr.bf16.mxu1 %v1869_v28  ;;  %v294_v16 = vsub.s32 1, %v2309_v15  ;;  %v290_v17 = vsub.s32 0, %v2309_v15 }
  0x72   : > { %904 = vmatpush1.bf16.msra.mxu0 %v1868_v29  ;;  %v295_v20 = vrot.slane %v268_v18, %v294_v16  ;;  %v291_v21 = vrot.slane %v268_v18, %v290_v17  ;;  %v308_v24 = vrot.slane %v269_v19, %v294_v16  ;;  %v304_v26 = vrot.slane %v269_v19, %v290_v17 }
  0x73   : > { %945 = vmatpush1.bf16.msra.mxu1 %v1871_v30  ;;  %905 = vmatprep.subr.bf16.mxu0 %v1872_v31 }
  0x74   : > { %946 = vmatprep.subr.bf16.mxu1 %v1875_v32  ;;  %v1926_v32 = vld [vmem:[#allocation6 + $0x10] ss:$24 sps:$4 sm:$0xff]  }
  0x76   : > { %906 = vmatpush1.bf16.msra.mxu0 %v1874_v33 }
  0x77   : > { %947 = vmatpush1.bf16.msra.mxu1 %v1877_v34  ;;  %907 = vmatprep.subr.bf16.mxu0 %v1878_v35  ;;  %v1931_v34 = vld [vmem:[#allocation6 + $0x44] ss:$24 sps:$4 sm:$0xff]   ;;  %v1929_v35 = vld [vmem:[#allocation6 + $0x40] ss:$24 sps:$4 sm:$0xff]  }
  0x78   : > { %948 = vmatprep.subr.bf16.mxu1 %v1881_v36  ;;  %v1934_v36 = vld [vmem:[#allocation6 + $0x74] ss:$24 sps:$4 sm:$0xff]  }
  0x7a   : > { %908 = vmatpush1.bf16.msra.mxu0 %v1880_v37  ;;  %v1932_v37 = vld [vmem:[#allocation6 + $0x70] ss:$24 sps:$4 sm:$0xff]  }
  0x7b   : > { %949 = vmatpush1.bf16.msra.mxu1 %v1883_v38  ;;  %909 = vmatprep.subr.bf16.mxu0 %v1884_v39  ;;  %v1937_v38 = vld [vmem:[#allocation6 + $0xa4] ss:$24 sps:$4 sm:$0xff]   ;;  %v1935_v39 = vld [vmem:[#allocation6 + $0xa0] ss:$24 sps:$4 sm:$0xff]  }
  0x7c   : > { %950 = vmatprep.subr.bf16.mxu1 %v1887_v40  ;;  %v1940_v40 = vld [vmem:[#allocation6 + $0xd4] ss:$24 sps:$4 sm:$0xff]  }
  0x7e   : > { %910 = vmatpush1.bf16.msra.mxu0 %v1886_v41  ;;  %v1938_v41 = vld [vmem:[#allocation6 + $0xd0] ss:$24 sps:$4 sm:$0xff]  }
  0x7f   : > { %951 = vmatpush1.bf16.msra.mxu1 %v1889_v42  ;;  %911 = vmatprep.subr.bf16.mxu0 %v1890_v43  ;;  %v1943_v42 = vld [vmem:[#allocation6 + $0x104] ss:$24 sps:$4 sm:$0xff]   ;;  %v1941_v43 = vld [vmem:[#allocation6 + $0x100] ss:$24 sps:$4 sm:$0xff]  }
  0x80   : > { %952 = vmatprep.subr.bf16.mxu1 %v1893_v52  ;;  %v1958_v52 = vld [vmem:[#allocation6 + $0x1f4] ss:$24 sps:$4 sm:$0xff]  }
  0x82   : > { %912 = vmatpush1.bf16.msra.mxu0 %v1892_v51  ;;  %v1953_v51 = vld [vmem:[#allocation6 + $0x1c0] ss:$24 sps:$4 sm:$0xff]  }
  0x83   : > { %953 = vmatpush1.bf16.msra.mxu1 %v1895_v53  ;;  %913 = vmatprep.subr.bf16.mxu0 %v1896_v54  ;;  %v1956_v53 = vld [vmem:[#allocation6 + $0x1f0] ss:$24 sps:$4 sm:$0xff]   ;;  %v1961_v54 = vld [vmem:[#allocation6 + $0x224] ss:$24 sps:$4 sm:$0xff]  }
  0x84   : > { %954 = vmatprep.subr.bf16.mxu1 %v1899_v56  ;;  %v1964_v56 = vld [vmem:[#allocation6 + $0x254] ss:$24 sps:$4 sm:$0xff]  }
  0x86   : > { %914 = vmatpush1.bf16.msra.mxu0 %v1898_v55  ;;  %v1959_v55 = vld [vmem:[#allocation6 + $0x220] ss:$24 sps:$4 sm:$0xff]  }
  0x87   : > { %955 = vmatpush1.bf16.msra.mxu1 %v1901_v57  ;;  %915 = vmatprep.subr.bf16.mxu0 %v1902_v58  ;;  %v1962_v57 = vld [vmem:[#allocation6 + $0x250] ss:$24 sps:$4 sm:$0xff]   ;;  %v1967_v58 = vld [vmem:[#allocation6 + $0x284] ss:$24 sps:$4 sm:$0xff]  }
  0x88   : > { %956 = vmatprep.subr.bf16.mxu1 %v1905_v60  ;;  %v1970_v60 = vld [vmem:[#allocation6 + $0x2b4] ss:$24 sps:$4 sm:$0xff]  }
  0x8a   : > { %916 = vmatpush1.bf16.msra.mxu0 %v1904_v59  ;;  %v1965_v59 = vld [vmem:[#allocation6 + $0x280] ss:$24 sps:$4 sm:$0xff]  }
  0x8b   : > { %957 = vmatpush1.bf16.msra.mxu1 %v1907_v61  ;;  %917 = vmatprep.subr.bf16.mxu0 %v1908_v62  ;;  %v1968_v61 = vld [vmem:[#allocation6 + $0x2b0] ss:$24 sps:$4 sm:$0xff]   ;;  %v1973_v62 = vld [vmem:[#allocation6 + $0x2e4] ss:$24 sps:$4 sm:$0xff]  }
  0x8c   : > { %958 = vmatprep.subr.bf16.mxu1 %v1911_v63  ;;  %v1971_v63 = vld [vmem:[#allocation6 + $0x2e0] ss:$24 sps:$4 sm:$0xff]  }
  0xed   : > { %v272_v44 = vpop.xlane.xlu0 %271 }
  0xee   : > { %v274_v45 = vmul.f32 0.00390625, %v272_v44  ;;  %v1946_v44 = vld [vmem:[#allocation6 + $0x134] ss:$24 sps:$4 sm:$0xff]  }
  0xf0   : > { %v2300_v46 = vsub.f32 %v2292_v0, %v274_v45  ;;  %v2303_v47 = vsub.f32 %v2295_v1, %v274_v45  ;;  %v1910_v0 = vld [vmem:[#allocation6 + $0x270] ss:$24 sps:$4 sm:$0xff]  }
  0xf1   : > { %v1913_v1 = vld [vmem:[#allocation6 + $0x278] ss:$24 sps:$4 sm:$0xff]   ;;  %918 = vmatpush1.bf16.msra.mxu0 %v1910_v0  ;;  %v2139_v0 = vmov 0.0  }
  0xf2   : > { %v277_v48 = vmul.f32 %v2300_v46, %v2300_v46  ;;  %v278_v49 = vmul.f32 %v2303_v47, %v2303_v47  ;;  %959 = vmatpush1.bf16.msra.mxu1 %v1913_v1  ;;  %919 = vmatprep.subr.bf16.mxu0 %v1914_v2  ;;  %v1944_v45 = vld [vmem:[#allocation6 + $0x130] ss:$24 sps:$4 sm:$0xff]   ;;  %v2141_v1 = vmov 1935823168  }
  0xf3   : > { %960 = vmatprep.subr.bf16.mxu1 %v1917_v3  ;;  %v1023_v2 = vunpack.c.l.s4 %v2141_v1  ;;  %v1976_v1 = vld [vmem:[%s2449_s4 + $0x4] ss:$8 sps:$4 sm:$0xff]  }
  0xf4   : > { %v279_v50 = vadd.f32 %v278_v49, %v277_v48  ;;  %v1952_v48 = vld [vmem:[#allocation6 + $0x194] ss:$24 sps:$4 sm:$0xff]   ;;  %v1950_v49 = vld [vmem:[#allocation6 + $0x190] ss:$24 sps:$4 sm:$0xff]  }
  0xf5   : > { %920 = vmatpush1.bf16.msra.mxu0 %v1916_v4  ;;  %v1024_v3 = vunpack.c.0.s8 %v1023_v2 }
  0xf6   : > { %280 = vadd.xlane.f32.xlu0 %v279_v50  ;;  %961 = vmatpush1.bf16.msra.mxu1 %v1919_v5  ;;  %v1955_v50 = vld [vmem:[#allocation6 + $0x1c4] ss:$24 sps:$4 sm:$0xff]  }
  0xf7   : > { %921 = vmatprep.subr.bf16.mxu0 %v1920_v6  ;;  %962 = vmatprep.subr.bf16.mxu1 %v1923_v7  ;;  %v1027_v4 = vsub.s32 %v1024_v3, %v2309_v15 }
  0xf9   : > { %922 = vmatpush1.bf16.msra.mxu0 %v1922_v8 }
  0xfa   : > { %963 = vmatpush1.bf16.msra.mxu1 %v1925_v9  ;;  %973 = vmatprep.subr.bf16.mxu0 %v1928_v10 }
  0xfb   : > { %1774 = vmatprep.subr.bf16.mxu1 %v2139_v0 }
 0x183   : > { %v281_v11 = vpop.xlane.xlu0 %280 }
 0x184   : > { %v282_v12 = vmul.f32 0.00390625, %v281_v11 }
 0x186   : > { %v283_v14 = vadd.f32 1e-05, %v282_v12 }
 0x188   : > { %2022 = vrsqrt.f32 %v283_v14 }
 0x192   : > { %v2023_v22 = vpop.eup %2022 }
 0x193   : > { %v286_v23 = vmul.f32 %v2023_v22, %v2303_v47  ;;  %v285_v25 = vmul.f32 %v2023_v22, %v2300_v46  ;;  %v1949_v46 = vld [vmem:[#allocation6 + $0x164] ss:$24 sps:$4 sm:$0xff]   ;;  %v1947_v47 = vld [vmem:[#allocation6 + $0x160] ss:$24 sps:$4 sm:$0xff]  }
 0x195   : > { %v299_v27 = vmul.f32 %v295_v20, %v286_v23  ;;  %v298_v28 = vmul.f32 %v291_v21, %v285_v25 }
 0x197   : > { %v312_v29 = vadd.f32 %v308_v24, %v299_v27  ;;  %v311_v30 = vadd.f32 %v304_v26, %v298_v28 }
 0x199   : > { %v314_v31 = vpack.c.bf16 %v312_v29, %v312_v29  ;;  %v2315_v33 = vpack.c.bf16 %v311_v30, %v311_v30 }
 0x19b   : > { %923 = vmatprep.mubr.bf16.mxu0 %v314_v31  ;;  %964 = vmatprep.mubr.bf16.mxu1 %v314_v31 }
 0x19c   : > { %924 = vmatmul.mubr.bf16.vlgmr.msra.gmra.mrb[0].mxu0 %v2315_v33  ;;  %965 = vmatmul.mubr.bf16.vlgmr.msra.gmra.mrb[0].mxu1 %v2315_v33 }
 0x19d   : > { %974 = vmatpush1.bf16.msra.mxu0 %v1926_v32  ;;  %1005 = vmatprep.mubr.bf16.mxu0 %v314_v31 }
 0x19e   : > { %975 = vmatprep.subr.bf16.mxu0 %v1931_v34  ;;  %1776 = vmatprep.mubr.msk.bf16.mxu1 %vm2140_vm0, %v2139_v0 }
 0x1a1   : > { %976 = vmatpush1.bf16.msra.mxu0 %v1929_v35 }
 0x1a2   : > { %977 = vmatprep.subr.bf16.mxu0 %v1934_v36 }
 0x1a5   : > { %978 = vmatpush1.bf16.msra.mxu0 %v1932_v37 }
 0x1a6   : > { %979 = vmatprep.subr.bf16.mxu0 %v1937_v38 }
 0x1a9   : > { %980 = vmatpush1.bf16.msra.mxu0 %v1935_v39 }
 0x1aa   : > { %981 = vmatprep.subr.bf16.mxu0 %v1940_v40 }
 0x1ad   : > { %982 = vmatpush1.bf16.msra.mxu0 %v1938_v41 }
 0x1ae   : > { %983 = vmatprep.subr.bf16.mxu0 %v1943_v42 }
 0x1b1   : > { %984 = vmatpush1.bf16.msra.mxu0 %v1941_v43 }
 0x1b2   : > { %985 = vmatprep.subr.bf16.mxu0 %v1946_v44 }
 0x1b5   : > { %986 = vmatpush1.bf16.msra.mxu0 %v1944_v45 }
 0x1b6   : > { %987 = vmatprep.subr.bf16.mxu0 %v1949_v46 }
 0x1b9   : > { %988 = vmatpush1.bf16.msra.mxu0 %v1947_v47 }
 0x1ba   : > { %989 = vmatprep.subr.bf16.mxu0 %v1952_v48 }
 0x1bd   : > { %990 = vmatpush1.bf16.msra.mxu0 %v1950_v49 }
 0x1be   : > { %991 = vmatprep.subr.bf16.mxu0 %v1955_v50 }
 0x1c1   : > { %992 = vmatpush1.bf16.msra.mxu0 %v1953_v51 }
 0x1c2   : > { %993 = vmatprep.subr.bf16.mxu0 %v1958_v52 }
 0x1c5   : > { %994 = vmatpush1.bf16.msra.mxu0 %v1956_v53 }
 0x1c6   : > { %995 = vmatprep.subr.bf16.mxu0 %v1961_v54 }
 0x1c9   : > { %996 = vmatpush1.bf16.msra.mxu0 %v1959_v55 }
 0x1ca   : > { %997 = vmatprep.subr.bf16.mxu0 %v1964_v56 }
 0x1cd   : > { %998 = vmatpush1.bf16.msra.mxu0 %v1962_v57 }
 0x1ce   : > { %999 = vmatprep.subr.bf16.mxu0 %v1967_v58 }
 0x1d1   : > { %1000 = vmatpush1.bf16.msra.mxu0 %v1965_v59 }
 0x1d2   : > { %1001 = vmatprep.subr.bf16.mxu0 %v1970_v60 }
 0x1d5   : > { %1002 = vmatpush1.bf16.msra.mxu0 %v1968_v61 }
 0x1d6   : > { %1003 = vmatprep.subr.bf16.mxu0 %v1973_v62 }
 0x1d9   : > { %1004 = vmatpush1.bf16.msra.mxu0 %v1971_v63 }
 0x1da   : > { %1762 = vmatprep.subr.bf16.mxu0 %v2139_v0 }
 0x1dc   : > { %1006 = vmatmul.mubr.bf16.vlgmr.msra.gmra.mrb[4].mxu0 %v2315_v33 }
 0x1dd   : > { %1764 = vmatprep.mubr.msk.bf16.mxu0 %vm2140_vm0, %v2139_v0 }
 0x26f   : > { %v925_v5 = vpop.f32.mrb[0].mxu0  ;;  %v966_v6 = vpop.f32.mrb[0].mxu1 }
 0x270   : > { %v1014_v7 = vmul.f32 0.088388346, %v925_v5  ;;  %v927_v8 = vpop.f32.mrb[1].mxu0  ;;  %v968_v9 = vpop.f32.mrb[1].mxu1 }
 0x271   : > { %v1015_v10 = vmul.f32 0.088388346, %v927_v8  ;;  %v1040_v11 = vcombine.low %v966_v6, %v968_v9  ;;  %v1041_v12 = vcombine.high %v966_v6, %v968_v9  ;;  %v929_v13 = vpop.f32.mrb[2].mxu0  ;;  %v970_v14 = vpop.f32.mrb[2].mxu1  ;;  %v1979_v6 = vld [vmem:[%s2449_s4 + $0x14] ss:$8 sps:$4 sm:$0xff]  }
 0x272   : > { %v930_v16 = vpop.f32.mrb[3].mxu0  ;;  %v971_v17 = vpop.f32.mrb[3].mxu1  ;;  %v1980_v8 = vld [vmem:[%s2449_s4 + $0x20] ss:$8 sps:$4 sm:$0xff]   ;;  %v1985_v9 = vld [vmem:[%s2449_s4 + $0x34] ss:$8 sps:$4 sm:$0xff]  }
 0x273   : > { %v1018_v18 = vcombine.low %v1014_v7, %v1015_v10  ;;  %v1019_v19 = vcombine.high %v1014_v7, %v1015_v10  ;;  %v1050_v20 = vrot.slane %v1040_v11, %v1027_v4  ;;  %v1057_v21 = vrot.slane %v1041_v12, %v1027_v4  ;;  %v1977_v7 = vld [vmem:[%s2449_s4 + $0x10] ss:$8 sps:$4 sm:$0xff]   ;;  %v1988_v11 = vld [vmem:[%s2449_s4 + $0x44] ss:$8 sps:$4 sm:$0xff]   ;;  %v1986_v12 = vld [vmem:[%s2449_s4 + $0x40] ss:$8 sps:$4 sm:$0xff]  }
 0x274   : > { %v1983_v10 = vld [vmem:[%s2449_s4 + $0x30] ss:$8 sps:$4 sm:$0xff]   ;;  %v1991_v13 = vld [vmem:[%s2449_s4 + $0x54] ss:$8 sps:$4 sm:$0xff]   ;;  %v1994_v16 = vld [vmem:[%s2449_s4 + $0x64] ss:$8 sps:$4 sm:$0xff]  }
 0x275   : > { %v1028_v22 = vrot.slane %v1018_v18, %v1027_v4  ;;  %v1035_v23 = vrot.slane %v1019_v19, %v1027_v4  ;;  %v1058_v24 = vpack.c.bf16 %v1050_v20, %v1050_v20  ;;  %v1059_v25 = vpack.c.bf16 %v1057_v21, %v1057_v21  ;;  %v1989_v14 = vld [vmem:[%s2449_s4 + $0x50] ss:$8 sps:$4 sm:$0xff]   ;;  %v1992_v17 = vld [vmem:[%s2449_s4 + $0x60] ss:$8 sps:$4 sm:$0xff]   ;;  %v1997_v18 = vld [vmem:[%s2449_s4 + $0x74] ss:$8 sps:$4 sm:$0xff]  }
 0x276   : > { %v1995_v19 = vld [vmem:[%s2449_s4 + $0x70] ss:$8 sps:$4 sm:$0xff]   ;;  %v2000_v20 = vld [vmem:[%s2449_s4 + $0x84] ss:$8 sps:$4 sm:$0xff]   ;;  %v1998_v21 = vld [vmem:[%s2449_s4 + $0x80] ss:$8 sps:$4 sm:$0xff]  }
 0x277   : > { %1763 = vmatpush3.bf16.xpose.msra.mxu0 %v1058_v24  ;;  %v1036_v15 = vpack.c.bf16 %v1028_v22, %v1028_v22  ;;  %v1037_v26 = vpack.c.bf16 %v1035_v23, %v1035_v23  ;;  %v2003_v22 = vld [vmem:[%s2449_s4 + $0x94] ss:$8 sps:$4 sm:$0xff]   ;;  %v2001_v23 = vld [vmem:[%s2449_s4 + $0x90] ss:$8 sps:$4 sm:$0xff]   ;;  %v2006_v24 = vld [vmem:[%s2449_s4 + $0xa4] ss:$8 sps:$4 sm:$0xff]  }
 0x278   : > { %1768 = vmatprep.subr.bf16.mxu0 %v2139_v0 }
 0x27e   : > { %1765 = vmatmul.mubr.bf16.vlgmr.msra.gmra.mrb[8].mxu0 %v1036_v15  ;;  %v2004_v15 = vld [vmem:[%s2449_s4 + $0xa0] ss:$8 sps:$4 sm:$0xff]  }
 0x27f   : > { %1769 = vmatpush3.bf16.xpose.msra.mxu0 %v1059_v25  ;;  %1770 = vmatprep.mubr.msk.bf16.mxu0 %vm2140_vm0, %v2139_v0  ;;  %v2009_v25 = vld [vmem:[%s2449_s4 + $0xb4] ss:$8 sps:$4 sm:$0xff]  }
 0x286   : > { %1771 = vmatmul.mubr.bf16.vlgmr.msra.gmra.mrb[12].mxu0 %v1037_v26  ;;  %v2007_v26 = vld [vmem:[%s2449_s4 + $0xb0] ss:$8 sps:$4 sm:$0xff]  }
 0x2af   : > { %v1007_v27 = vpop.f32.mrb[4].mxu0 }
 0x2b0   : > { %v1009_v28 = vpop.f32.mrb[5].mxu0 }
 0x2b1   : > { %v1062_v29 = vcombine.low %v1007_v27, %v1009_v28  ;;  %v1063_v30 = vcombine.high %v1007_v27, %v1009_v28  ;;  %v1011_v31 = vpop.f32.mrb[6].mxu0  ;;  %v2012_v27 = vld [vmem:[%s2449_s4 + $0xc4] ss:$8 sps:$4 sm:$0xff]   ;;  %v2010_v28 = vld [vmem:[%s2449_s4 + $0xc0] ss:$8 sps:$4 sm:$0xff]  }
 0x2b2   : > { %v1012_v32 = vpop.f32.mrb[7].mxu0  ;;  %v2016_v31 = vld [vmem:[%s2449_s4 + $0xe0] ss:$8 sps:$4 sm:$0xff]  }
 0x2b3   : > { %v1072_v33 = vrot.slane %v1062_v29, %v1027_v4  ;;  %v1079_v34 = vrot.slane %v1063_v30, %v1027_v4  ;;  %v1974_v4 = vld [vmem:[%s2449_s4] ss:$8 sps:$4 sm:$0xff]   ;;  %v2015_v29 = vld [vmem:[%s2449_s4 + $0xd4] ss:$8 sps:$4 sm:$0xff]   ;;  %v2013_v30 = vld [vmem:[%s2449_s4 + $0xd0] ss:$8 sps:$4 sm:$0xff]  }
 0x2b4   : > { %v2018_v32 = vld [vmem:[%s2449_s4 + $0xe4] ss:$8 sps:$4 sm:$0xff]  }
 0x2b5   : > { %v1080_v35 = vpack.c.bf16 %v1072_v33, %v1072_v33  ;;  %v1081_v36 = vpack.c.bf16 %v1079_v34, %v1079_v34  ;;  %v2021_v33 = vld [vmem:[%s2449_s4 + $0xf4] ss:$8 sps:$4 sm:$0xff]   ;;  %v2019_v34 = vld [vmem:[%s2449_s4 + $0xf0] ss:$8 sps:$4 sm:$0xff]  }
 0x2b7   : > { %v1192_v37 = vsel %vm1190_vm1, %v1080_v35, 0  ;;  %v1238_v38 = vsel %vm1190_vm1, %v1081_v36, 0 }
 0x2b8   : > { %1775 = vmatpush3.bf16.msra.mxu1 %v1192_v37 }
 0x2b9   : > { %1780 = vmatprep.subr.bf16.mxu1 %v2139_v0 }
 0x351   : > { %v1116_v39 = vpop.f32.mrb[8].mxu0 }
 0x352   : > { %v1766_v40 = vpop.f32.mrb[9].mxu0  ;;  %v1163_v41 = vsel %vm1162_vm2, %v1116_v39, -inf }
 0x353   : > { %1164 = vmax.xlane.f32.xlu1 %v1163_v41  ;;  %v1119_v42 = vpop.f32.mrb[10].mxu0 }
 0x354   : > { %v1767_v43 = vpop.f32.mrb[11].mxu0 }
 0x359   : > { %v1156_v44 = vpop.f32.mrb[12].mxu0 }
 0x35a   : > { %v1772_v45 = vpop.f32.mrb[13].mxu0  ;;  %v1166_v46 = vsel %vm1162_vm2, %v1156_v44, -inf }
 0x35b   : > { %1167 = vmax.xlane.f32.xlu1 %v1166_v46  ;;  %v1159_v47 = vpop.f32.mrb[14].mxu0  ;;  %v2032_v46 = vld [vmem:[%s2289_s8] sm:$0xff] }
 0x35c   : > { %v1773_v48 = vpop.f32.mrb[15].mxu0 }
 0x3e0   : > { %v1165_v49 = vpop.xlane.xlu1 %1164 }
 0x3e1   : > { %v1169_v50 = vsub.f32 %v1116_v39, %v1165_v49  ;;  %v2033_v49 = vld [vmem:[%s2289_s8 + $0x8] sm:$0xff] }
 0x3e3   : > { %v1171_v51 = vmul.f32 1.442695, %v1169_v50 }
 0x3e5   : > { %2024 = vpow2.f32 %v1171_v51 }
 0x3e8   : > { %v1168_v52 = vpop.xlane.xlu1 %1167 }
 0x3e9   : > { %v1170_v53 = vsub.f32 %v1156_v44, %v1168_v52 }
 0x3eb   : > { %v1173_v54 = vmul.f32 1.442695, %v1170_v53 }
 0x3ed   : > { %2026 = vpow2.f32 %v1173_v54 }
 0x3ef   : > { %v2025_v55 = vpop.eup %2024 }
 0x3f0   : > { %v1175_v56 = vsel %vm1162_vm2, %v2025_v55, 0.0 }
 0x3f1   : > { %1176 = vadd.xlane.f32.xlu0 %v1175_v56 }
 0x3f7   : > { %v2027_v57 = vpop.eup %2026 }
 0x3f8   : > { %v1178_v58 = vsel %vm1162_vm2, %v2027_v57, 0.0 }
 0x3f9   : > { %1179 = vadd.xlane.f32.xlu1 %v1178_v58 }
 0x47e   : > { %v1177_v59 = vpop.xlane.xlu0 %1176 }
 0x47f   : > { %2028 = vrcp.f32 %v1177_v59 }
 0x486   : > { %v1180_v60 = vpop.xlane.xlu1 %1179 }
 0x487   : > { %2030 = vrcp.f32 %v1180_v60 }
 0x489   : > { %v2029_v61 = vpop.eup %2028 }
 0x48a   : > { %v1183_v62 = vmul.f32 %v2029_v61, %v2025_v55 }
 0x48c   : > { %v1185_v63 = vpack.c.bf16 %v1183_v62, %v1183_v62 }
 0x48e   : > { %1777 = vmatmul.mubr.msk.bf16.vlgmr.msra.gmra.mrb[4].mxu1 %vm1162_vm2, %v1185_v63 }
 0x48f   : > { %1781 = vmatpush3.bf16.msra.mxu1 %v1238_v38  ;;  %1782 = vmatprep.mubr.msk.bf16.mxu1 %vm2140_vm0, %v2139_v0  ;;  %v1982_v0 = vld [vmem:[%s2449_s4 + $0x24] ss:$8 sps:$4 sm:$0xff]  }
 0x490   : > { %1474 = vmatprep.subr.bf16.mxu1 %v1976_v1 }
 0x491   : > { %v2031_v2 = vpop.eup %2030 }
 0x492   : > { %v1184_v3 = vmul.f32 %v2031_v2, %v2027_v57 }
 0x494   : > { %v1186_v5 = vpack.c.bf16 %v1184_v3, %v1184_v3 }
 0x496   : > { %1783 = vmatmul.mubr.msk.bf16.vlgmr.msra.gmra.mrb[8].mxu1 %vm1162_vm2, %v1186_v5 }
 0x497   : > { %1475 = vmatpush1.bf16.msra.mxu1 %v1974_v4 }
 0x498   : > { %1476 = vmatprep.subr.bf16.mxu1 %v1979_v6 }
 0x49b   : > { %1477 = vmatpush1.bf16.msra.mxu1 %v1977_v7 }
 0x49c   : > { %1478 = vmatprep.subr.bf16.mxu1 %v1982_v0 }
 0x49f   : > { %1479 = vmatpush1.bf16.msra.mxu1 %v1980_v8 }
 0x4a0   : > { %1480 = vmatprep.subr.bf16.mxu1 %v1985_v9 }
 0x4a3   : > { %1481 = vmatpush1.bf16.msra.mxu1 %v1983_v10 }
 0x4a4   : > { %1482 = vmatprep.subr.bf16.mxu1 %v1988_v11 }
 0x4a7   : > { %1483 = vmatpush1.bf16.msra.mxu1 %v1986_v12 }
 0x4a8   : > { %1484 = vmatprep.subr.bf16.mxu1 %v1991_v13 }
 0x4ab   : > { %1485 = vmatpush1.bf16.msra.mxu1 %v1989_v14 }
 0x4ac   : > { %1486 = vmatprep.subr.bf16.mxu1 %v1994_v16 }
 0x4af   : > { %1487 = vmatpush1.bf16.msra.mxu1 %v1992_v17 }
 0x4b0   : > { %1488 = vmatprep.subr.bf16.mxu1 %v1997_v18 }
 0x4b3   : > { %1489 = vmatpush1.bf16.msra.mxu1 %v1995_v19 }
 0x4b4   : > { %1490 = vmatprep.subr.bf16.mxu1 %v2000_v20 }
 0x4b7   : > { %1491 = vmatpush1.bf16.msra.mxu1 %v1998_v21 }
 0x4b8   : > { %1492 = vmatprep.subr.bf16.mxu1 %v2003_v22 }
 0x4bb   : > { %1493 = vmatpush1.bf16.msra.mxu1 %v2001_v23 }
 0x4bc   : > { %1494 = vmatprep.subr.bf16.mxu1 %v2006_v24 }
 0x4bf   : > { %1495 = vmatpush1.bf16.msra.mxu1 %v2004_v15 }
 0x4c0   : > { %1496 = vmatprep.subr.bf16.mxu1 %v2009_v25 }
 0x4c3   : > { %1497 = vmatpush1.bf16.msra.mxu1 %v2007_v26 }
 0x4c4   : > { %1498 = vmatprep.subr.bf16.mxu1 %v2012_v27 }
 0x4c7   : > { %1499 = vmatpush1.bf16.msra.mxu1 %v2010_v28 }
 0x4c8   : > { %1500 = vmatprep.subr.bf16.mxu1 %v2015_v29 }
 0x4cb   : > { %1501 = vmatpush1.bf16.msra.mxu1 %v2013_v30 }
 0x4cc   : > { %1502 = vmatprep.subr.bf16.mxu1 %v2018_v32 }
 0x4cf   : > { %1503 = vmatpush1.bf16.msra.mxu1 %v2016_v31 }
 0x4d0   : > { %1504 = vmatprep.subr.bf16.mxu1 %v2021_v33 }
 0x4d3   : > { %1505 = vmatpush1.bf16.msra.mxu1 %v2019_v34 }
 0x561   : > { %v1228_v35 = vpop.f32.mrb[4].mxu1 }
 0x562   : > { %v1778_v36 = vpop.f32.mrb[5].mxu1  ;;  %v1280_v42 = vpack.c.bf16 %v1228_v35, %v1228_v35 }
 0x563   : > { %v1231_v37 = vpop.f32.mrb[6].mxu1 }
 0x564   : > { %v1779_v38 = vpop.f32.mrb[7].mxu1 }
 0x569   : > { %v1274_v39 = vpop.f32.mrb[8].mxu1 }
 0x56a   : > { %v1281_v40 = vpack.c.bf16 %v1274_v39, %v1274_v39  ;;  %v1784_v41 = vpop.f32.mrb[9].mxu1 }
 0x56b   : > { %v1277_v43 = vpop.f32.mrb[10].mxu1 }
 0x56c   : > { %v1785_v44 = vpop.f32.mrb[11].mxu1  ;;  %1506 = vmatprep.mubr.bf16.mxu1 %v1281_v40 }
 0x56d   : > { %1507 = vmatmul.mubr.bf16.vlgmr.msra.gmra.mrb[12].mxu1 %v1280_v42 }
 0x640   : > { %v1508_v45 = vpop.f32.mrb[12].mxu1 }
 0x641   : > { %v1515_v47 = vadd.f32 %v2032_v46, %v1508_v45  ;;  %v1510_v48 = vpop.f32.mrb[13].mxu1 }
 0x642   : > { %v1516_v50 = vadd.f32 %v2033_v49, %v1510_v48  ;;  %v1512_v51 = vpop.f32.mrb[14].mxu1 }
 0x643   : > { %1517 = vst [vmem:[%s264_s25] sm:$0xff] %v1515_v47  ;;  %v1513_v52 = vpop.f32.mrb[15].mxu1 }
 0x644   : > { %1518 = vst [vmem:[%s264_s25 + $0x8] sm:$0xff] %v1516_v50 }
 0x645 PF: > { %s17_s18 = sadd.s32 1, %s2132_s18  }
 0x646   : > { %p14_p5 = scmp.ge.s32.totalorder %s17_s18, 4  }
 0x648   :  { %16 = sbr.rel (!%p14_p5) target bundleno = 2 (0x2), region = 83 }
 0x64f   :  { %1540 = vsyncpa [#allocation3], 1 }
 0x650   :  { %1542 = vsyncpa [#allocation3 + $0x1], 1 }
 0x651   :  { %1543 = vsyncpa [#allocation5], 1 }

// kernel: gpt2_forward.5
= control target key start
LH: loop header
LB: loop body
LE: loop exit
PB: predicated region body
PF: predicated region fallthrough
CT: control target
= control target key end

     0   :  { %12 = vsyncpa [#allocation6], 0  ;;  %s2723_s0 = inlined_call_operand.vmem [shape: f32[16,256], index: 0, kind: input, shape index: {}]   ;;  %s2724_s1 = inlined_call_operand.vmem [shape: f32[1,256], index: 1, kind: input, shape index: {}]   ;;  %s2725_s2 = inlined_call_operand.vmem [shape: f32[1,256], index: 2, kind: input, shape index: {}]   ;;  %s2726_s3 = inlined_call_operand.vmem [shape: bf16[256,1024], index: 3, kind: input, shape index: {}]   ;;  %s2727_s4 = inlined_call_operand.vmem [shape: f32[1,1024], index: 4, kind: input, shape index: {}]   ;;  %s2728_s5 = inlined_call_operand.hbm [shape: bf16[1024,256], index: 5, kind: input, shape index: {}]   ;;  %s2729_s6 = inlined_call_operand.vmem [shape: f32[1,256], index: 6, kind: input, shape index: {}]   ;;  %s2730_s7 = inlined_call_operand.vmem [shape: f32[16,256], index: 7, kind: output, shape index: {}]  }
   0x1   :  { %14 = vsyncpa [#allocation6 + $0x1], 0  ;;  %s2268_s24 = smov 0   ;;  %s2270_s25 = smov 0  }
   0x2   :  { %s2272_s26 = smov 0   ;;  %s2274_s27 = smov 0  }
   0x3   :  { %s2276_s28 = smov 0   ;;  %s2278_s29 = smov 0  }
   0x4 LB: > { %s1741_s30 = sadd.s32 4294967295, %s2223_s29   ;;  %s29_s8 = sadd.s32 1, %s2219_s28  ;;  %s2223_s29 = sphi %s2278_s29, %s20_s29   ;;  %s2219_s28 = sphi %s2276_s28, %s2737_s28   ;;  %s2215_s27 = sphi %s2274_s27, %s2736_s27   ;;  %s2211_s26 = sphi %s2272_s26, %s2735_s26   ;;  %s2207_s25 = sphi %s2270_s25, %s2734_s25   ;;  %s2203_s24 = sphi %s2268_s24, %s2733_s24  }
   0x5   : > { %p30_p0 = scmp.ge.s32.totalorder %s29_s8, 2  ;;  %s107_s9 = sadd.s32 1, %s2211_s26 }
   0x6   : > { %p114_p1 = scmp.ne.s32.totalorder %s2211_s26, %s2207_s25  ;;  %p115_p2 = scmp.eq.s32.totalorder %s2223_s29, 0 }
   0x7   : > { %s2739_s8 = smov (%p30_p0, %s29_s8), 0  ;;  %p172_p4 = scmp.ne.s32.totalorder %s2207_s25, %s2203_s24 }
   0x8   : > { %p2304_p3 = por %p115_p2, %p114_p1  ;;  %s104_s11 = ssub.s32 %s2219_s28, %s2739_s8 }
   0x9   : > { %p173_p5 = scmp.eq.s32.totalorder %s1741_s30, 0  ;;  %p105_p6 = scmp.eq.s32.totalorder %s104_s11, 0 }
   0xa   : > { %p1744_p8 = scmp.ge.s32.totalorder %s2223_s29, 2 }
   0xb   : > { %p2311_p7 = por %p173_p5, %p172_p4 }
   0xc   : > { %s2316_s13 = scalar_select %p105_p6, %s2211_s26, %s107_s9  }
   0xd   : > { %258 = sbr.rel (%p1744_p8) target bundleno = 82 (0x52), region = 32 }
  0x14   : > { %261 = sbr.rel (!%p2304_p3) target bundleno = 56 (0x38), region = 36  ;;  %s263_s14 = sand.u32 (%p2304_p3), 1, %s2211_s26  }
  0x15   : > { %s1890_s15 = sshll.u32 (%p2304_p3), %s2219_s28, 4  ;;  %s1745_s16 = sshll.u32 (%p2304_p3), %s263_s14, 9 }
  0x16   : > { %s2326_s19 = scalar_lea.vmem (%p2304_p3), %s2726_s3, %s1890_s15  ;;  %s2331_s20 = scalar_lea.vmem (%p2304_p3), [#allocation4], %s1745_s16 }
  0x17   : > { %v281_v0 = vld [vmem:[%s2326_s19] sm:$0xff] (%p2304_p3)  ;;  %v283_v1 = vld [vmem:[%s2326_s19 + $0x8] sm:$0xff] (%p2304_p3) }
  0x18   : > { %v285_v2 = vld [vmem:[%s2326_s19 + $0x20] sm:$0xff] (%p2304_p3)  ;;  %282 = vst [vmem:[%s2331_s20] sm:$0xff] (%p2304_p3), %v281_v0  ;;  %284 = vst [vmem:[%s2331_s20 + $0x8] sm:$0xff] (%p2304_p3), %v283_v1  ;;  %v287_v3 = vld [vmem:[%s2326_s19 + $0x28] sm:$0xff] (%p2304_p3) }
  0x19   : > { %286 = vst [vmem:[%s2331_s20 + $0x10] sm:$0xff] (%p2304_p3), %v285_v2  ;;  %v289_v4 = vld [vmem:[%s2326_s19 + $0x40] sm:$0xff] (%p2304_p3)  ;;  %v291_v5 = vld [vmem:[%s2326_s19 + $0x48] sm:$0xff] (%p2304_p3)  ;;  %288 = vst [vmem:[%s2331_s20 + $0x18] sm:$0xff] (%p2304_p3), %v287_v3 }
  0x1a   : > { %290 = vst [vmem:[%s2331_s20 + $0x20] sm:$0xff] (%p2304_p3), %v289_v4  ;;  %292 = vst [vmem:[%s2331_s20 + $0x28] sm:$0xff] (%p2304_p3), %v291_v5  ;;  %v293_v6 = vld [vmem:[%s2326_s19 + $0x60] sm:$0xff] (%p2304_p3)  ;;  %v295_v7 = vld [vmem:[%s2326_s19 + $0x68] sm:$0xff] (%p2304_p3) }
  0x1b   : > { %v297_v8 = vld [vmem:[%s2326_s19 + $0x80] sm:$0xff]  ;;  %294 = vst [vmem:[%s2331_s20 + $0x30] sm:$0xff] %v293_v6  ;;  %296 = vst [vmem:[%s2331_s20 + $0x38] sm:$0xff] %v295_v7  ;;  %v299_v9 = vld [vmem:[%s2326_s19 + $0x88] sm:$0xff] }
  0x1c   : > { %298 = vst [vmem:[%s2331_s20 + $0x40] sm:$0xff] %v297_v8  ;;  %v301_v10 = vld [vmem:[%s2326_s19 + $0xa0] sm:$0xff]  ;;  %v303_v11 = vld [vmem:[%s2326_s19 + $0xa8] sm:$0xff]  ;;  %300 = vst [vmem:[%s2331_s20 + $0x48] sm:$0xff] %v299_v9 }
  0x1d   : > { %302 = vst [vmem:[%s2331_s20 + $0x50] sm:$0xff] %v301_v10  ;;  %304 = vst [vmem:[%s2331_s20 + $0x58] sm:$0xff] %v303_v11  ;;  %v305_v12 = vld [vmem:[%s2326_s19 + $0xc0] sm:$0xff]  ;;  %v307_v13 = vld [vmem:[%s2326_s19 + $0xc8] sm:$0xff] }
  0x1e   : > { %v309_v14 = vld [vmem:[%s2326_s19 + $0xe0] sm:$0xff]  ;;  %306 = vst [vmem:[%s2331_s20 + $0x60] sm:$0xff] %v305_v12  ;;  %308 = vst [vmem:[%s2331_s20 + $0x68] sm:$0xff] %v307_v13  ;;  %v311_v15 = vld [vmem:[%s2326_s19 + $0xe8] sm:$0xff] }
  0x1f   : > { %310 = vst [vmem:[%s2331_s20 + $0x70] sm:$0xff] %v309_v14  ;;  %v313_v16 = vld [vmem:[%s2326_s19 + $0x100] sm:$0xff]  ;;  %v315_v17 = vld [vmem:[%s2326_s19 + $0x108] sm:$0xff]  ;;  %312 = vst [vmem:[%s2331_s20 + $0x78] sm:$0xff] %v311_v15 }
  0x20   : > { %314 = vst [vmem:[%s2331_s20 + $0x80] sm:$0xff] %v313_v16  ;;  %316 = vst [vmem:[%s2331_s20 + $0x88] sm:$0xff] %v315_v17  ;;  %v317_v18 = vld [vmem:[%s2326_s19 + $0x120] sm:$0xff]  ;;  %v319_v19 = vld [vmem:[%s2326_s19 + $0x128] sm:$0xff] }
  0x21   : > { %v321_v20 = vld [vmem:[%s2326_s19 + $0x140] sm:$0xff]  ;;  %318 = vst [vmem:[%s2331_s20 + $0x90] sm:$0xff] %v317_v18  ;;  %320 = vst [vmem:[%s2331_s20 + $0x98] sm:$0xff] %v319_v19  ;;  %v323_v21 = vld [vmem:[%s2326_s19 + $0x148] sm:$0xff] }
  0x22   : > { %322 = vst [vmem:[%s2331_s20 + $0xa0] sm:$0xff] %v321_v20  ;;  %v325_v22 = vld [vmem:[%s2326_s19 + $0x160] sm:$0xff]  ;;  %v327_v23 = vld [vmem:[%s2326_s19 + $0x168] sm:$0xff]  ;;  %324 = vst [vmem:[%s2331_s20 + $0xa8] sm:$0xff] %v323_v21 }
  0x23   : > { %326 = vst [vmem:[%s2331_s20 + $0xb0] sm:$0xff] %v325_v22  ;;  %328 = vst [vmem:[%s2331_s20 + $0xb8] sm:$0xff] %v327_v23  ;;  %v329_v24 = vld [vmem:[%s2326_s19 + $0x180] sm:$0xff]  ;;  %v331_v25 = vld [vmem:[%s2326_s19 + $0x188] sm:$0xff] }
  0x24   : > { %v333_v26 = vld [vmem:[%s2326_s19 + $0x1a0] sm:$0xff]  ;;  %330 = vst [vmem:[%s2331_s20 + $0xc0] sm:$0xff] %v329_v24  ;;  %332 = vst [vmem:[%s2331_s20 + $0xc8] sm:$0xff] %v331_v25  ;;  %v335_v27 = vld [vmem:[%s2326_s19 + $0x1a8] sm:$0xff] }
  0x25   : > { %334 = vst [vmem:[%s2331_s20 + $0xd0] sm:$0xff] %v333_v26  ;;  %v337_v28 = vld [vmem:[%s2326_s19 + $0x1c0] sm:$0xff]  ;;  %v339_v29 = vld [vmem:[%s2326_s19 + $0x1c8] sm:$0xff]  ;;  %336 = vst [vmem:[%s2331_s20 + $0xd8] sm:$0xff] %v335_v27 }
  0x26   : > { %338 = vst [vmem:[%s2331_s20 + $0xe0] sm:$0xff] %v337_v28  ;;  %340 = vst [vmem:[%s2331_s20 + $0xe8] sm:$0xff] %v339_v29  ;;  %v341_v30 = vld [vmem:[%s2326_s19 + $0x1e0] sm:$0xff]  ;;  %v343_v31 = vld [vmem:[%s2326_s19 + $0x1e8] sm:$0xff] }
  0x27   : > { %v345_v32 = vld [vmem:[%s2326_s19 + $0x200] sm:$0xff]  ;;  %342 = vst [vmem:[%s2331_s20 + $0xf0] sm:$0xff] %v341_v30  ;;  %344 = vst [vmem:[%s2331_s20 + $0xf8] sm:$0xff] %v343_v31  ;;  %v347_v33 = vld [vmem:[%s2326_s19 + $0x208] sm:$0xff] }
  0x28   : > { %346 = vst [vmem:[%s2331_s20 + $0x100] sm:$0xff] %v345_v32  ;;  %v349_v34 = vld [vmem:[%s2326_s19 + $0x220] sm:$0xff]  ;;  %v351_v35 = vld [vmem:[%s2326_s19 + $0x228] sm:$0xff]  ;;  %348 = vst [vmem:[%s2331_s20 + $0x108] sm:$0xff] %v347_v33 }
  0x29   : > { %350 = vst [vmem:[%s2331_s20 + $0x110] sm:$0xff] %v349_v34  ;;  %352 = vst [vmem:[%s2331_s20 + $0x118] sm:$0xff] %v351_v35  ;;  %v353_v36 = vld [vmem:[%s2326_s19 + $0x240] sm:$0xff]  ;;  %v355_v37 = vld [vmem:[%s2326_s19 + $0x248] sm:$0xff] }
  0x2a   : > { %v357_v38 = vld [vmem:[%s2326_s19 + $0x260] sm:$0xff]  ;;  %354 = vst [vmem:[%s2331_s20 + $0x120] sm:$0xff] %v353_v36  ;;  %356 = vst [vmem:[%s2331_s20 + $0x128] sm:$0xff] %v355_v37  ;;  %v359_v39 = vld [vmem:[%s2326_s19 + $0x268] sm:$0xff] }
  0x2b   : > { %358 = vst [vmem:[%s2331_s20 + $0x130] sm:$0xff] %v357_v38  ;;  %v361_v40 = vld [vmem:[%s2326_s19 + $0x280] sm:$0xff]  ;;  %v363_v41 = vld [vmem:[%s2326_s19 + $0x288] sm:$0xff]  ;;  %360 = vst [vmem:[%s2331_s20 + $0x138] sm:$0xff] %v359_v39 }
  0x2c   : > { %362 = vst [vmem:[%s2331_s20 + $0x140] sm:$0xff] %v361_v40  ;;  %364 = vst [vmem:[%s2331_s20 + $0x148] sm:$0xff] %v363_v41  ;;  %v365_v42 = vld [vmem:[%s2326_s19 + $0x2a0] sm:$0xff]  ;;  %v367_v43 = vld [vmem:[%s2326_s19 + $0x2a8] sm:$0xff] }
  0x2d   : > { %v369_v44 = vld [vmem:[%s2326_s19 + $0x2c0] sm:$0xff]  ;;  %366 = vst [vmem:[%s2331_s20 + $0x150] sm:$0xff] %v365_v42  ;;  %368 = vst [vmem:[%s2331_s20 + $0x158] sm:$0xff] %v367_v43  ;;  %v371_v45 = vld [vmem:[%s2326_s19 + $0x2c8] sm:$0xff] }
  0x2e   : > { %370 = vst [vmem:[%s2331_s20 + $0x160] sm:$0xff] %v369_v44  ;;  %v373_v46 = vld [vmem:[%s2326_s19 + $0x2e0] sm:$0xff]  ;;  %v375_v47 = vld [vmem:[%s2326_s19 + $0x2e8] sm:$0xff]  ;;  %372 = vst [vmem:[%s2331_s20 + $0x168] sm:$0xff] %v371_v45 }
  0x2f   : > { %374 = vst [vmem:[%s2331_s20 + $0x170] sm:$0xff] %v373_v46  ;;  %376 = vst [vmem:[%s2331_s20 + $0x178] sm:$0xff] %v375_v47  ;;  %v377_v48 = vld [vmem:[%s2326_s19 + $0x300] sm:$0xff]  ;;  %v379_v49 = vld [vmem:[%s2326_s19 + $0x308] sm:$0xff] }
  0x30   : > { %v381_v50 = vld [vmem:[%s2326_s19 + $0x320] sm:$0xff]  ;;  %378 = vst [vmem:[%s2331_s20 + $0x180] sm:$0xff] %v377_v48  ;;  %380 = vst [vmem:[%s2331_s20 + $0x188] sm:$0xff] %v379_v49  ;;  %v383_v51 = vld [vmem:[%s2326_s19 + $0x328] sm:$0xff] }
  0x31   : > { %382 = vst [vmem:[%s2331_s20 + $0x190] sm:$0xff] %v381_v50  ;;  %v385_v52 = vld [vmem:[%s2326_s19 + $0x340] sm:$0xff]  ;;  %v387_v53 = vld [vmem:[%s2326_s19 + $0x348] sm:$0xff]  ;;  %384 = vst [vmem:[%s2331_s20 + $0x198] sm:$0xff] %v383_v51 }
  0x32   : > { %386 = vst [vmem:[%s2331_s20 + $0x1a0] sm:$0xff] %v385_v52  ;;  %388 = vst [vmem:[%s2331_s20 + $0x1a8] sm:$0xff] %v387_v53  ;;  %v389_v54 = vld [vmem:[%s2326_s19 + $0x360] sm:$0xff]  ;;  %v391_v55 = vld [vmem:[%s2326_s19 + $0x368] sm:$0xff] }
  0x33   : > { %v393_v56 = vld [vmem:[%s2326_s19 + $0x380] sm:$0xff]  ;;  %390 = vst [vmem:[%s2331_s20 + $0x1b0] sm:$0xff] %v389_v54  ;;  %392 = vst [vmem:[%s2331_s20 + $0x1b8] sm:$0xff] %v391_v55  ;;  %v395_v57 = vld [vmem:[%s2326_s19 + $0x388] sm:$0xff] }
  0x34   : > { %394 = vst [vmem:[%s2331_s20 + $0x1c0] sm:$0xff] %v393_v56  ;;  %v397_v58 = vld [vmem:[%s2326_s19 + $0x3a0] sm:$0xff]  ;;  %v399_v59 = vld [vmem:[%s2326_s19 + $0x3a8] sm:$0xff]  ;;  %396 = vst [vmem:[%s2331_s20 + $0x1c8] sm:$0xff] %v395_v57 }
  0x35   : > { %398 = vst [vmem:[%s2331_s20 + $0x1d0] sm:$0xff] %v397_v58  ;;  %400 = vst [vmem:[%s2331_s20 + $0x1d8] sm:$0xff] %v399_v59  ;;  %v401_v60 = vld [vmem:[%s2326_s19 + $0x3c0] sm:$0xff]  ;;  %v403_v61 = vld [vmem:[%s2326_s19 + $0x3c8] sm:$0xff] }
  0x36   : > { %v405_v62 = vld [vmem:[%s2326_s19 + $0x3e0] sm:$0xff]  ;;  %402 = vst [vmem:[%s2331_s20 + $0x1e0] sm:$0xff] %v401_v60  ;;  %404 = vst [vmem:[%s2331_s20 + $0x1e8] sm:$0xff] %v403_v61  ;;  %v407_v63 = vld [vmem:[%s2326_s19 + $0x3e8] sm:$0xff] }
  0x37   : > { %406 = vst [vmem:[%s2331_s20 + $0x1f0] sm:$0xff] %v405_v62  ;;  %408 = vst [vmem:[%s2331_s20 + $0x1f8] sm:$0xff] %v407_v63 }
  0x38 PF: > { %s423_s21 = sand.u32 1, %s2211_s26   ;;  %s1892_s22 = sshll.u32 %s2219_s28, 13 }
  0x39   : > { %s1748_s23 = sshll.u32 %s423_s21, 9  ;;  %s2463_s9 = scalar_lea.hbm %s2728_s5, %s1892_s22 }
  0x3a   : > { %s427_s11 = scalar_lea.vmem [#allocation5], %s1748_s23  ;;  %s2467_s15 = scalar_lea.sflag [#allocation6], %s423_s21 }
  0x3b   : > { %s435_s14 = sshll.u32 %s427_s11, 4  ;;  %s2145_s16 = scalar_lea.hbm %s2463_s9, 8192  ;;  %s2465_s14 = int_to_ptr.vmem [resolvable:$true] %s435_s14 }
  0x3c   : > { %p2146_p9 = scmp.ne.s32.totalorder %s2463_s9, %s2145_s16  ;;  %s2149_s19 = scalar_lea.hbm %s2728_s5, 16384 }
  0x3d   : > { %p2150_p12 = scmp.lt.u32.totalorder %s2463_s9, %s2728_s5  ;;  %p2151_p13 = scmp.lt.u32.totalorder %s2149_s19, %s2145_s16 }
  0x3e   : > { %p2147_p10 = pnand %p2146_p9, %p2304_p3  ;;  %p2153_p1 = scmp.lt.u32.totalorder %s2145_s16, %s2463_s9 }
  0x3f   : > { %p2152_p0 = por %p2151_p13, %p2150_p12 }
  0x40   : > { %p2148_p11 = pneg %p2147_p10 }
  0x41   : > { %p2154_p2 = por %p2153_p1, %p2152_p0 }
  0x43   : > { %p2155_p4 = pnand %p2154_p2, %p2148_p11 }
  0x45   : > { %2158 = shalt.err (!%p2155_p4)
}
  0x46   : > { %s2159_s21 = scalar_lea.vmem %s2465_s14, 8192  ;;  %s2225_s23 = smov [#allocation5]  }
  0x47   : > { %p2160_p5 = scmp.ne.s32.totalorder %s2465_s14, %s2159_s21  ;;  %s2163_s24 = sshll.u32 %s2225_s23, 4  ;;  %s2164_s24 = int_to_ptr.vmem [resolvable:$false] %s2163_s24 }
  0x48   : > { %s2165_s30 = scalar_lea.vmem %s2164_s24, 16384  ;;  %p2166_p9 = scmp.lt.s32.totalorder %s2465_s14, %s2164_s24 }
  0x49   : > { %p2161_p6 = pnand %p2160_p5, %p2304_p3  ;;  %p2167_p10 = scmp.lt.s32.totalorder %s2165_s30, %s2159_s21 }
  0x4b   : > { %p2162_p8 = pneg %p2161_p6  ;;  %p2168_p12 = por %p2167_p10, %p2166_p9 }
  0x4d   : > { %p2169_p13 = pnand %p2168_p12, %p2162_p8 }
  0x4f   : > { %2172 = shalt.err (!%p2169_p13)
}
  0x50   : > { %s2226_s11 = smov 128   ;;  %s2227_s16 = smov 8  }
  0x51   : > { %1897 = dma.hbm_to_vmem [thread:$0]  (%p2304_p3), %s2463_s9, 8192, %s2465_s14, %s2467_s15, %s2226_s11, %s2226_s11, %s2227_s16  }
  0x52 PF: > { %p1752_p11 = scmp.ge.s32.totalorder %s2223_s29, 1  ;;  %p443_p0 = scmp.lt.s32.totalorder %s2223_s29, 3 }
  0x54   : > { %p444_p1 = pnand %p1752_p11, %p443_p0 }
  0x55   : > { %s450_s17 = sand.u32 (!%p444_p1), 1, %s2207_s25  }
  0x56   : > { %447 = sbr.rel (%p444_p1) target bundleno = 997 (0x3e5), region = 67  ;;  %s1753_s18 = sshll.u32 (!%p444_p1), %s450_s17, 9 }
  0x57   : > { %s2494_s19 = scalar_lea.vmem (!%p444_p1), [#allocation4], %s1753_s18  ;;  %s457_s20 = scalar_lea.sflag (!%p444_p1), [#allocation6], %s450_s17 }
  0x58   : > { %s2496_s22 = scalar_lea.vmem (!%p444_p1), [#allocation5], %s1753_s18 }
  0x5d   : > { %2198 = dma.done.wait (%p2311_p7), %s457_s20, 8192  }
  0x5e   : > { %2200 = vsyncadd (%p2311_p7), %s457_s20, 4294959104  ;;  %s1755_s10 = sshll.u32 %s2215_s27, 2  ;;  %p1756_p2 = scmp.ne.s32.totalorder %s2215_s27, 0 }
  0x5f   : > { %p515_p3 = scmp.lt.s32.totalorder %s1755_s10, 7  ;;  %v531_v0 = vld [vmem:[%s2723_s0] sm:$0xff] (!%p1756_p2)  ;;  %v532_v1 = vld [vmem:[%s2723_s0 + $0x8] sm:$0xff] (!%p1756_p2)  ;;  %v533_v2 = vld [vmem:[%s2723_s0 + $0x10] sm:$0xff] (!%p1756_p2)  ;;  %v571_v23 = vlaneseq (!%p1756_p2) }
  0x60   : > { %530 = sbr.rel (%p1756_p2) target bundleno = 418 (0x1a2), region = 79  ;;  %v537_v3 = vadd.f32 (!%p1756_p2), %v532_v1, %v531_v0  ;;  %604 = vst [vmem:[#allocation2] sm:$0xff] (!%p1756_p2), %v531_v0  ;;  %605 = vst [vmem:[#allocation2 + $0x8] sm:$0xff] (!%p1756_p2), %v532_v1  ;;  %v534_v4 = vld [vmem:[%s2723_s0 + $0x18] sm:$0xff] (!%p1756_p2)  ;;  %v535_v30 = vld [vmem:[%s2724_s1] sm:$0x3] (!%p1756_p2) }
  0x61   : > { %s2741_s10 = smov (!%p515_p3, %s1755_s10), 7  ;;  %606 = vst [vmem:[#allocation2 + $0x10] sm:$0xff] (!%p1756_p2), %v533_v2  ;;  %607 = vst [vmem:[#allocation2 + $0x18] sm:$0xff] (!%p1756_p2), %v534_v4  ;;  %v540_v5 = vadd.f32 (!%p1756_p2), %v534_v4, %v533_v2  ;;  %v572_v27 = vshrl.u32 (!%p1756_p2), %v571_v23, 7  ;;  %v536_v32 = vld [vmem:[%s2725_s2] sm:$0x3] (!%p1756_p2) }
  0x62   : > { %s517_s15 = scalar_lea.vmem %s2727_s4, %s2741_s10  ;;  %538 = vadd.xlane.f32.xlu0 (!%p1756_p2), %v537_v3 }
  0x63   : > { %v573_v28 = vsub.s32 (!%p1756_p2), 0, %v572_v27  ;;  %v577_v29 = vsub.s32 (!%p1756_p2), 1, %v572_v27 }
  0x65   : > { %v574_v33 = vrot.slane (!%p1756_p2), %v535_v30, %v573_v28  ;;  %v578_v34 = vrot.slane (!%p1756_p2), %v535_v30, %v577_v29  ;;  %v589_v38 = vrot.slane (!%p1756_p2), %v536_v32, %v573_v28  ;;  %v593_v39 = vrot.slane (!%p1756_p2), %v536_v32, %v577_v29 }
  0x66   : > { %541 = vadd.xlane.f32.xlu0 (!%p1756_p2), %v540_v5 }
  0xef   : > { %v539_v6 = vpop.xlane.xlu0 %538 }
  0xf0   : > { %v544_v7 = vmul.f32 0.00390625, %v539_v6 }
  0xf2   : > { %v546_v8 = vsub.f32 %v531_v0, %v544_v7  ;;  %v547_v9 = vsub.f32 %v532_v1, %v544_v7 }
  0xf3   : > { %v542_v10 = vpop.xlane.xlu0 %541 }
  0xf4   : > { %v545_v11 = vmul.f32 0.00390625, %v542_v10  ;;  %v550_v12 = vmul.f32 %v546_v8, %v546_v8  ;;  %v551_v13 = vmul.f32 %v547_v9, %v547_v9 }
  0xf6   : > { %v548_v14 = vsub.f32 %v533_v2, %v545_v11  ;;  %v549_v15 = vsub.f32 %v534_v4, %v545_v11  ;;  %v554_v16 = vadd.f32 %v551_v13, %v550_v12 }
  0xf8   : > { %555 = vadd.xlane.f32.xlu1 %v554_v16  ;;  %v552_v17 = vmul.f32 %v548_v14, %v548_v14  ;;  %v553_v18 = vmul.f32 %v549_v15, %v549_v15 }
  0xfa   : > { %v557_v19 = vadd.f32 %v553_v18, %v552_v17 }
  0xfc   : > { %558 = vadd.xlane.f32.xlu1 %v557_v19 }
 0x185   : > { %v556_v20 = vpop.xlane.xlu1 %555 }
 0x186   : > { %v560_v21 = vmul.f32 0.00390625, %v556_v20 }
 0x188   : > { %v562_v22 = vadd.f32 1e-05, %v560_v21 }
 0x189   : > { %v559_v24 = vpop.xlane.xlu1 %558 }
 0x18a   : > { %1949 = vrsqrt.f32 %v562_v22  ;;  %v561_v25 = vmul.f32 0.00390625, %v559_v24 }
 0x18c   : > { %v563_v26 = vadd.f32 1e-05, %v561_v25 }
 0x18e   : > { %1951 = vrsqrt.f32 %v563_v26 }
 0x194   : > { %v1950_v31 = vpop.eup %1949 }
 0x195   : > { %v566_v35 = vmul.f32 %v1950_v31, %v546_v8  ;;  %v567_v36 = vmul.f32 %v1950_v31, %v547_v9 }
 0x197   : > { %v581_v40 = vmul.f32 %v574_v33, %v566_v35  ;;  %v582_v41 = vmul.f32 %v578_v34, %v567_v36 }
 0x198   : > { %v1952_v37 = vpop.eup %1951 }
 0x199   : > { %v568_v42 = vmul.f32 %v1952_v37, %v548_v14  ;;  %v569_v43 = vmul.f32 %v1952_v37, %v549_v15  ;;  %v596_v46 = vadd.f32 %v589_v38, %v581_v40  ;;  %v597_v47 = vadd.f32 %v593_v39, %v582_v41 }
 0x19b   : > { %v583_v44 = vmul.f32 %v574_v33, %v568_v42  ;;  %v584_v45 = vmul.f32 %v578_v34, %v569_v43 }
 0x19d   : > { %v598_v48 = vadd.f32 %v589_v38, %v583_v44  ;;  %v599_v49 = vadd.f32 %v593_v39, %v584_v45 }
 0x19f   : > { %v600_v50 = vpack.c.bf16 %v598_v48, %v596_v46  ;;  %v601_v51 = vpack.c.bf16 %v599_v49, %v597_v47 }
 0x1a1   : > { %602 = vst [vmem:[#allocation3] sm:$0xff] %v600_v50  ;;  %603 = vst [vmem:[#allocation3 + $0x8] sm:$0xff] %v601_v51 }
 0x1a2 PF: > { %v1953_v52 = vld [vmem:[%s2494_s19 + $0x4] ss:$16 sps:$4 sm:$0xff]   ;;  %v1955_v53 = vld [vmem:[%s2494_s19] ss:$16 sps:$4 sm:$0xff]   ;;  %v2003_v31 = vld [vmem:[%s2494_s19 + $0xc] ss:$16 sps:$4 sm:$0xff]  }
 0x1a3   : > { %1016 = vmatprep.subr.bf16.mxu1 %v1953_v52  ;;  %v1956_v54 = vld [vmem:[%s2494_s19 + $0x24] ss:$16 sps:$4 sm:$0xff]   ;;  %v1958_v55 = vld [vmem:[%s2494_s19 + $0x20] ss:$16 sps:$4 sm:$0xff]   ;;  %v2001_v34 = vld [vmem:[%s2494_s19 + $0x8] ss:$16 sps:$4 sm:$0xff]  }
 0x1a4   : > { %1017 = vmatpush1.bf16.msra.mxu1 %v1955_v53  ;;  %v1959_v56 = vld [vmem:[%s2494_s19 + $0x44] ss:$16 sps:$4 sm:$0xff]   ;;  %v1961_v57 = vld [vmem:[%s2494_s19 + $0x40] ss:$16 sps:$4 sm:$0xff]   ;;  %v2006_v35 = vld [vmem:[%s2494_s19 + $0x2c] ss:$16 sps:$4 sm:$0xff]  }
 0x1a5   : > { %1018 = vmatprep.subr.bf16.mxu1 %v1956_v54  ;;  %v1962_v58 = vld [vmem:[%s2494_s19 + $0x64] ss:$16 sps:$4 sm:$0xff]   ;;  %v1964_v59 = vld [vmem:[%s2494_s19 + $0x60] ss:$16 sps:$4 sm:$0xff]   ;;  %v2004_v38 = vld [vmem:[%s2494_s19 + $0x28] ss:$16 sps:$4 sm:$0xff]  }
 0x1a6   : > { %v1965_v60 = vld [vmem:[%s2494_s19 + $0x84] ss:$16 sps:$4 sm:$0xff]   ;;  %v1967_v61 = vld [vmem:[%s2494_s19 + $0x80] ss:$16 sps:$4 sm:$0xff]   ;;  %v2009_v39 = vld [vmem:[%s2494_s19 + $0x4c] ss:$16 sps:$4 sm:$0xff]  }
 0x1a7   : > { %v1968_v62 = vld [vmem:[%s2494_s19 + $0xa4] ss:$16 sps:$4 sm:$0xff]   ;;  %v1970_v63 = vld [vmem:[%s2494_s19 + $0xa0] ss:$16 sps:$4 sm:$0xff]   ;;  %v2007_v42 = vld [vmem:[%s2494_s19 + $0x48] ss:$16 sps:$4 sm:$0xff]  }
 0x1a8   : > { %1019 = vmatpush1.bf16.msra.mxu1 %v1958_v55  ;;  %v1971_v0 = vld [vmem:[%s2494_s19 + $0xc4] ss:$16 sps:$4 sm:$0xff]   ;;  %v2541_v1 = vld [vmem:[#allocation3 + $0x8] sm:$0xff]  ;;  %v1973_v2 = vld [vmem:[%s2494_s19 + $0xc0] ss:$16 sps:$4 sm:$0xff]   ;;  %p1885_p7 = scmp.ne.s32.totalorder %s2215_s27, 1 }
 0x1a9   : > { %1020 = vmatprep.subr.bf16.mxu1 %v1959_v56  ;;  %1048 = vmatprep.mubr.bf16.mxu1 %v2541_v1  ;;  %v1974_v3 = vld [vmem:[%s2494_s19 + $0xe4] ss:$16 sps:$4 sm:$0xff]   ;;  %v1976_v4 = vld [vmem:[%s2494_s19 + $0xe0] ss:$16 sps:$4 sm:$0xff]   ;;  %v2012_v43 = vld [vmem:[%s2494_s19 + $0x6c] ss:$16 sps:$4 sm:$0xff]  }
 0x1aa   : > { %v1977_v5 = vld [vmem:[%s2494_s19 + $0x104] ss:$16 sps:$4 sm:$0xff]   ;;  %v1979_v6 = vld [vmem:[%s2494_s19 + $0x100] ss:$16 sps:$4 sm:$0xff]   ;;  %v2010_v46 = vld [vmem:[%s2494_s19 + $0x68] ss:$16 sps:$4 sm:$0xff]  }
 0x1ab   : > { %v1980_v7 = vld [vmem:[%s2494_s19 + $0x124] ss:$16 sps:$4 sm:$0xff]   ;;  %v1982_v8 = vld [vmem:[%s2494_s19 + $0x120] ss:$16 sps:$4 sm:$0xff]   ;;  %v2015_v47 = vld [vmem:[%s2494_s19 + $0x8c] ss:$16 sps:$4 sm:$0xff]  }
 0x1ac   : > { %1021 = vmatpush1.bf16.msra.mxu1 %v1961_v57  ;;  %v1983_v9 = vld [vmem:[%s2494_s19 + $0x144] ss:$16 sps:$4 sm:$0xff]   ;;  %v1985_v10 = vld [vmem:[%s2494_s19 + $0x140] ss:$16 sps:$4 sm:$0xff]   ;;  %v2013_v50 = vld [vmem:[%s2494_s19 + $0x88] ss:$16 sps:$4 sm:$0xff]  }
 0x1ad   : > { %1022 = vmatprep.subr.bf16.mxu1 %v1962_v58  ;;  %v1986_v11 = vld [vmem:[%s2494_s19 + $0x164] ss:$16 sps:$4 sm:$0xff]   ;;  %v1988_v12 = vld [vmem:[%s2494_s19 + $0x160] ss:$16 sps:$4 sm:$0xff]   ;;  %v2018_v51 = vld [vmem:[%s2494_s19 + $0xac] ss:$16 sps:$4 sm:$0xff]  }
 0x1ae   : > { %v1989_v13 = vld [vmem:[%s2494_s19 + $0x184] ss:$16 sps:$4 sm:$0xff]   ;;  %v2051_v15 = vld [vmem:[%s2496_s22] ss:$8 sps:$4 sm:$0xff]   ;;  %v2054_v18 = vld [vmem:[%s2496_s22 + $0x10] ss:$8 sps:$4 sm:$0xff]  }
 0x1af   : > { %v2049_v14 = vld [vmem:[%s2496_s22 + $0x4] ss:$8 sps:$4 sm:$0xff]   ;;  %v2052_v16 = vld [vmem:[%s2496_s22 + $0x14] ss:$8 sps:$4 sm:$0xff]   ;;  %v1991_v17 = vld [vmem:[%s2494_s19 + $0x180] ss:$16 sps:$4 sm:$0xff]  }
 0x1b0   : > { %1023 = vmatpush1.bf16.msra.mxu1 %v1964_v59  ;;  %1502 = vmatprep.subr.bf16.mxu0 %v2049_v14  ;;  %v1992_v19 = vld [vmem:[%s2494_s19 + $0x1a4] ss:$16 sps:$4 sm:$0xff]   ;;  %v1994_v21 = vld [vmem:[%s2494_s19 + $0x1a0] ss:$16 sps:$4 sm:$0xff]   ;;  %v2016_v54 = vld [vmem:[%s2494_s19 + $0xa8] ss:$16 sps:$4 sm:$0xff]  }
 0x1b1   : > { %1024 = vmatprep.subr.bf16.mxu1 %v1965_v60  ;;  %1503 = vmatpush1.bf16.msra.mxu0 %v2051_v15  ;;  %v2055_v20 = vld [vmem:[%s2496_s22 + $0x24] ss:$8 sps:$4 sm:$0xff]   ;;  %v2057_v22 = vld [vmem:[%s2496_s22 + $0x20] ss:$8 sps:$4 sm:$0xff]   ;;  %v2058_v24 = vld [vmem:[%s2496_s22 + $0x34] ss:$8 sps:$4 sm:$0xff]  }
 0x1b2   : > { %1504 = vmatprep.subr.bf16.mxu0 %v2052_v16  ;;  %v1995_v23 = vld [vmem:[%s2494_s19 + $0x1c4] ss:$16 sps:$4 sm:$0xff]   ;;  %v1997_v25 = vld [vmem:[%s2494_s19 + $0x1c0] ss:$16 sps:$4 sm:$0xff]   ;;  %v2021_v55 = vld [vmem:[%s2494_s19 + $0xcc] ss:$16 sps:$4 sm:$0xff]  }
 0x1b3   : > { %v2060_v26 = vld [vmem:[%s2496_s22 + $0x30] ss:$8 sps:$4 sm:$0xff]   ;;  %v1998_v27 = vld [vmem:[%s2494_s19 + $0x1e4] ss:$16 sps:$4 sm:$0xff]   ;;  %v2063_v30 = vld [vmem:[%s2496_s22 + $0x40] ss:$8 sps:$4 sm:$0xff]  }
 0x1b4   : > { %1025 = vmatpush1.bf16.msra.mxu1 %v1967_v61  ;;  %v2061_v28 = vld [vmem:[%s2496_s22 + $0x44] ss:$8 sps:$4 sm:$0xff]   ;;  %v2000_v29 = vld [vmem:[%s2494_s19 + $0x1e0] ss:$16 sps:$4 sm:$0xff]   ;;  %v2064_v32 = vld [vmem:[%s2496_s22 + $0x54] ss:$8 sps:$4 sm:$0xff]  }
 0x1b5   : > { %1026 = vmatprep.subr.bf16.mxu1 %v1968_v62  ;;  %1505 = vmatpush1.bf16.msra.mxu0 %v2054_v18  ;;  %v2575_v33 = vld [vmem:[#allocation3] sm:$0xff]  ;;  %v2067_v37 = vld [vmem:[%s2496_s22 + $0x64] ss:$8 sps:$4 sm:$0xff]   ;;  %v2069_v40 = vld [vmem:[%s2496_s22 + $0x60] ss:$8 sps:$4 sm:$0xff]  }
 0x1b6   : > { %1506 = vmatprep.subr.bf16.mxu0 %v2055_v20  ;;  %v2066_v36 = vld [vmem:[%s2496_s22 + $0x50] ss:$8 sps:$4 sm:$0xff]   ;;  %v2070_v41 = vld [vmem:[%s2496_s22 + $0x74] ss:$8 sps:$4 sm:$0xff]   ;;  %v2073_v45 = vld [vmem:[%s2496_s22 + $0x84] ss:$8 sps:$4 sm:$0xff]  }
 0x1b7   : > { %v2072_v44 = vld [vmem:[%s2496_s22 + $0x70] ss:$8 sps:$4 sm:$0xff]   ;;  %v2075_v48 = vld [vmem:[%s2496_s22 + $0x80] ss:$8 sps:$4 sm:$0xff]   ;;  %v2076_v49 = vld [vmem:[%s2496_s22 + $0x94] ss:$8 sps:$4 sm:$0xff]  }
 0x1b8   : > { %1027 = vmatpush1.bf16.msra.mxu1 %v1970_v63  ;;  %v2078_v52 = vld [vmem:[%s2496_s22 + $0x90] ss:$8 sps:$4 sm:$0xff]   ;;  %v2079_v53 = vld [vmem:[%s2496_s22 + $0xa4] ss:$8 sps:$4 sm:$0xff]   ;;  %v2081_v56 = vld [vmem:[%s2496_s22 + $0xa0] ss:$8 sps:$4 sm:$0xff]  }
 0x1b9   : > { %1028 = vmatprep.subr.bf16.mxu1 %v1971_v0  ;;  %1507 = vmatpush1.bf16.msra.mxu0 %v2057_v22  ;;  %v2082_v57 = vld [vmem:[%s2496_s22 + $0xb4] ss:$8 sps:$4 sm:$0xff]   ;;  %v2019_v58 = vld [vmem:[%s2494_s19 + $0xc8] ss:$16 sps:$4 sm:$0xff]   ;;  %v2085_v61 = vld [vmem:[%s2496_s22 + $0xc4] ss:$8 sps:$4 sm:$0xff]  }
 0x1ba   : > { %1508 = vmatprep.subr.bf16.mxu0 %v2058_v24  ;;  %v2024_v59 = vld [vmem:[%s2494_s19 + $0xec] ss:$16 sps:$4 sm:$0xff]   ;;  %v2084_v60 = vld [vmem:[%s2496_s22 + $0xb0] ss:$8 sps:$4 sm:$0xff]   ;;  %v2087_v0 = vld [vmem:[%s2496_s22 + $0xc0] ss:$8 sps:$4 sm:$0xff]  }
 0x1bb   : > { %v2022_v62 = vld [vmem:[%s2494_s19 + $0xe8] ss:$16 sps:$4 sm:$0xff]   ;;  %v2027_v63 = vld [vmem:[%s2494_s19 + $0x10c] ss:$16 sps:$4 sm:$0xff]  }
 0x1bc   : > { %1029 = vmatpush1.bf16.msra.mxu1 %v1973_v2  ;;  %v2025_v2 = vld [vmem:[%s2494_s19 + $0x108] ss:$16 sps:$4 sm:$0xff]   ;;  %v2048_v15 = vld [vmem:[%s2494_s19 + $0x1ec] ss:$16 sps:$4 sm:$0xff]  }
 0x1bd   : > { %1030 = vmatprep.subr.bf16.mxu1 %v1974_v3  ;;  %1509 = vmatpush1.bf16.msra.mxu0 %v2060_v26  ;;  %v2030_v3 = vld [vmem:[%s2494_s19 + $0x12c] ss:$16 sps:$4 sm:$0xff]   ;;  %v2043_v14 = vld [vmem:[%s2494_s19 + $0x1c8] ss:$16 sps:$4 sm:$0xff]   ;;  %v2641_v26 = vld [vmem:[%s517_s15] sm:$0xf] }
 0x1be   : > { %1510 = vmatprep.subr.bf16.mxu0 %v2061_v28  ;;  %v2046_v16 = vld [vmem:[%s2494_s19 + $0x1e8] ss:$16 sps:$4 sm:$0xff]   ;;  %v2091_v18 = vld [vmem:[%s2496_s22 + $0xe4] ss:$8 sps:$4 sm:$0xff]   ;;  %v2094_v20 = vld [vmem:[%s2496_s22 + $0xf4] ss:$8 sps:$4 sm:$0xff]  }
 0x1bf   : > { %v2099_v22 = vld [vmem:[%s2496_s22 + $0x104] ss:$8 sps:$4 sm:$0xff]  }
 0x1c0   : > { %1031 = vmatpush1.bf16.msra.mxu1 %v1976_v4  ;;  %v2028_v4 = vld [vmem:[%s2494_s19 + $0x128] ss:$16 sps:$4 sm:$0xff]  }
 0x1c1   : > { %1032 = vmatprep.subr.bf16.mxu1 %v1977_v5  ;;  %1511 = vmatpush1.bf16.msra.mxu0 %v2063_v30  ;;  %v2033_v5 = vld [vmem:[%s2494_s19 + $0x14c] ss:$16 sps:$4 sm:$0xff]  }
 0x1c2   : > { %1512 = vmatprep.subr.bf16.mxu0 %v2064_v32 }
 0x1c4   : > { %1033 = vmatpush1.bf16.msra.mxu1 %v1979_v6  ;;  %v2031_v6 = vld [vmem:[%s2494_s19 + $0x148] ss:$16 sps:$4 sm:$0xff]  }
 0x1c5   : > { %1034 = vmatprep.subr.bf16.mxu1 %v1980_v7  ;;  %1513 = vmatpush1.bf16.msra.mxu0 %v2066_v36  ;;  %v2036_v7 = vld [vmem:[%s2494_s19 + $0x16c] ss:$16 sps:$4 sm:$0xff]  }
 0x1c6   : > { %1514 = vmatprep.subr.bf16.mxu0 %v2067_v37 }
 0x1c8   : > { %1035 = vmatpush1.bf16.msra.mxu1 %v1982_v8  ;;  %v2034_v8 = vld [vmem:[%s2494_s19 + $0x168] ss:$16 sps:$4 sm:$0xff]  }
 0x1c9   : > { %1036 = vmatprep.subr.bf16.mxu1 %v1983_v9  ;;  %1515 = vmatpush1.bf16.msra.mxu0 %v2069_v40  ;;  %v2039_v9 = vld [vmem:[%s2494_s19 + $0x18c] ss:$16 sps:$4 sm:$0xff]  }
 0x1ca   : > { %1516 = vmatprep.subr.bf16.mxu0 %v2070_v41 }
 0x1cc   : > { %1037 = vmatpush1.bf16.msra.mxu1 %v1985_v10  ;;  %v2037_v10 = vld [vmem:[%s2494_s19 + $0x188] ss:$16 sps:$4 sm:$0xff]  }
 0x1cd   : > { %1038 = vmatprep.subr.bf16.mxu1 %v1986_v11  ;;  %1517 = vmatpush1.bf16.msra.mxu0 %v2072_v44  ;;  %v2042_v11 = vld [vmem:[%s2494_s19 + $0x1ac] ss:$16 sps:$4 sm:$0xff]   ;;  %v2097_v44 = vld [vmem:[%s2496_s22 + $0x100] ss:$8 sps:$4 sm:$0xff]  }
 0x1ce   : > { %1518 = vmatprep.subr.bf16.mxu0 %v2073_v45  ;;  %v2102_v45 = vld [vmem:[%s2496_s22 + $0x114] ss:$8 sps:$4 sm:$0xff]  }
 0x1d0   : > { %1039 = vmatpush1.bf16.msra.mxu1 %v1988_v12  ;;  %v2040_v12 = vld [vmem:[%s2494_s19 + $0x1a8] ss:$16 sps:$4 sm:$0xff]  }
 0x1d1   : > { %1040 = vmatprep.subr.bf16.mxu1 %v1989_v13  ;;  %1519 = vmatpush1.bf16.msra.mxu0 %v2075_v48  ;;  %v2045_v13 = vld [vmem:[%s2494_s19 + $0x1cc] ss:$16 sps:$4 sm:$0xff]   ;;  %v2103_v48 = vld [vmem:[%s2496_s22 + $0x120] ss:$8 sps:$4 sm:$0xff]  }
 0x1d2   : > { %1520 = vmatprep.subr.bf16.mxu0 %v2076_v49  ;;  %v2108_v49 = vld [vmem:[%s2496_s22 + $0x134] ss:$8 sps:$4 sm:$0xff]  }
 0x1d4   : > { %1041 = vmatpush1.bf16.msra.mxu1 %v1991_v17  ;;  %v2090_v17 = vld [vmem:[%s2496_s22 + $0xd0] ss:$8 sps:$4 sm:$0xff]  }
 0x1d5   : > { %1042 = vmatprep.subr.bf16.mxu1 %v1992_v19  ;;  %1521 = vmatpush1.bf16.msra.mxu0 %v2078_v52  ;;  %v2093_v19 = vld [vmem:[%s2496_s22 + $0xe0] ss:$8 sps:$4 sm:$0xff]  }
 0x1d6   : > { %1522 = vmatprep.subr.bf16.mxu0 %v2079_v53  ;;  %v2109_v52 = vld [vmem:[%s2496_s22 + $0x140] ss:$8 sps:$4 sm:$0xff]   ;;  %v2114_v53 = vld [vmem:[%s2496_s22 + $0x154] ss:$8 sps:$4 sm:$0xff]  }
 0x1d8   : > { %1043 = vmatpush1.bf16.msra.mxu1 %v1994_v21  ;;  %v2096_v21 = vld [vmem:[%s2496_s22 + $0xf0] ss:$8 sps:$4 sm:$0xff]  }
 0x1d9   : > { %1044 = vmatprep.subr.bf16.mxu1 %v1995_v23  ;;  %1523 = vmatpush1.bf16.msra.mxu0 %v2081_v56  ;;  %v676_v23 = vlaneseq  ;;  %v2115_v56 = vld [vmem:[%s2496_s22 + $0x160] ss:$8 sps:$4 sm:$0xff]  }
 0x1da   : > { %1524 = vmatprep.subr.bf16.mxu0 %v2082_v57  ;;  %v2120_v57 = vld [vmem:[%s2496_s22 + $0x174] ss:$8 sps:$4 sm:$0xff]  }
 0x1db   : > { %v2633_v24 = vshrl.u32 %v676_v23, 7 }
 0x1dc   : > { %1045 = vmatpush1.bf16.msra.mxu1 %v1997_v25 }
 0x1dd   : > { %1046 = vmatprep.subr.bf16.mxu1 %v1998_v27  ;;  %1525 = vmatpush1.bf16.msra.mxu0 %v2084_v60  ;;  %v678_v25 = vsub.s32 0, %v2633_v24  ;;  %v682_v27 = vsub.s32 1, %v2633_v24  ;;  %v2121_v60 = vld [vmem:[%s2496_s22 + $0x180] ss:$8 sps:$4 sm:$0xff]  }
 0x1de   : > { %1526 = vmatprep.subr.bf16.mxu0 %v2085_v61  ;;  %v2126_v61 = vld [vmem:[%s2496_s22 + $0x194] ss:$8 sps:$4 sm:$0xff]  }
 0x1df   : > { %v679_v28 = vrot.slane %v2641_v26, %v678_v25 }
 0x1e0   : > { %1047 = vmatpush1.bf16.msra.mxu1 %v2000_v29  ;;  %v683_v29 = vrot.slane %v2641_v26, %v682_v27 }
 0x1e1   : > { %1059 = vmatprep.subr.bf16.mxu1 %v2003_v31  ;;  %1527 = vmatpush1.bf16.msra.mxu0 %v2087_v0  ;;  %v2127_v0 = vld [vmem:[%s2496_s22 + $0x1a0] ss:$8 sps:$4 sm:$0xff]  }
 0x1e3   : > { %1049 = vmatmul.mubr.bf16.vlgmr.msra.gmra.mrb[0].mxu1 %v2575_v33 }
 0x1e4   : > { %1060 = vmatpush1.bf16.msra.mxu1 %v2001_v34  ;;  %1091 = vmatprep.mubr.bf16.mxu1 %v2541_v1  ;;  %v2088_v1 = vld [vmem:[%s2496_s22 + $0xd4] ss:$8 sps:$4 sm:$0xff]  }
 0x1e5   : > { %1061 = vmatprep.subr.bf16.mxu1 %v2006_v35  ;;  %1528 = vmatprep.subr.bf16.mxu0 %v2088_v1  ;;  %v2132_v1 = vld [vmem:[%s2496_s22 + $0x1b4] ss:$8 sps:$4 sm:$0xff]  }
 0x1e6   : > { %1529 = vmatpush1.bf16.msra.mxu0 %v2090_v17 }
 0x1e7   : > { %1530 = vmatprep.subr.bf16.mxu0 %v2091_v18 }
 0x1e8   : > { %1062 = vmatpush1.bf16.msra.mxu1 %v2004_v38 }
 0x1e9   : > { %1063 = vmatprep.subr.bf16.mxu1 %v2009_v39 }
 0x1ea   : > { %1531 = vmatpush1.bf16.msra.mxu0 %v2093_v19 }
 0x1eb   : > { %1532 = vmatprep.subr.bf16.mxu0 %v2094_v20 }
 0x1ec   : > { %1064 = vmatpush1.bf16.msra.mxu1 %v2007_v42 }
 0x1ed   : > { %1065 = vmatprep.subr.bf16.mxu1 %v2012_v43 }
 0x1ee   : > { %1533 = vmatpush1.bf16.msra.mxu0 %v2096_v21 }
 0x1ef   : > { %1545 = vmatprep.subr.bf16.mxu0 %v2099_v22  ;;  %v2142_v22 = vld [vmem:[%s2496_s22 + $0x1f0] ss:$8 sps:$4 sm:$0xff]  }
 0x1f0   : > { %1066 = vmatpush1.bf16.msra.mxu1 %v2010_v46  ;;  %v2100_v46 = vld [vmem:[%s2496_s22 + $0x110] ss:$8 sps:$4 sm:$0xff]  }
 0x1f1   : > { %1067 = vmatprep.subr.bf16.mxu1 %v2015_v47  ;;  %v2105_v47 = vld [vmem:[%s2496_s22 + $0x124] ss:$8 sps:$4 sm:$0xff]  }
 0x1f4   : > { %1068 = vmatpush1.bf16.msra.mxu1 %v2013_v50  ;;  %v2106_v50 = vld [vmem:[%s2496_s22 + $0x130] ss:$8 sps:$4 sm:$0xff]  }
 0x1f5   : > { %1069 = vmatprep.subr.bf16.mxu1 %v2018_v51  ;;  %v2111_v51 = vld [vmem:[%s2496_s22 + $0x144] ss:$8 sps:$4 sm:$0xff]  }
 0x1f8   : > { %1070 = vmatpush1.bf16.msra.mxu1 %v2016_v54  ;;  %v2112_v54 = vld [vmem:[%s2496_s22 + $0x150] ss:$8 sps:$4 sm:$0xff]  }
 0x1f9   : > { %1071 = vmatprep.subr.bf16.mxu1 %v2021_v55  ;;  %v2117_v55 = vld [vmem:[%s2496_s22 + $0x164] ss:$8 sps:$4 sm:$0xff]  }
 0x1fc   : > { %1072 = vmatpush1.bf16.msra.mxu1 %v2019_v58  ;;  %v2118_v58 = vld [vmem:[%s2496_s22 + $0x170] ss:$8 sps:$4 sm:$0xff]  }
 0x1fd   : > { %1073 = vmatprep.subr.bf16.mxu1 %v2024_v59  ;;  %v2123_v59 = vld [vmem:[%s2496_s22 + $0x184] ss:$8 sps:$4 sm:$0xff]  }
 0x200   : > { %1074 = vmatpush1.bf16.msra.mxu1 %v2022_v62  ;;  %v2124_v62 = vld [vmem:[%s2496_s22 + $0x190] ss:$8 sps:$4 sm:$0xff]  }
 0x201   : > { %1075 = vmatprep.subr.bf16.mxu1 %v2027_v63  ;;  %v2129_v63 = vld [vmem:[%s2496_s22 + $0x1a4] ss:$8 sps:$4 sm:$0xff]  }
 0x204   : > { %1076 = vmatpush1.bf16.msra.mxu1 %v2025_v2  ;;  %v2130_v2 = vld [vmem:[%s2496_s22 + $0x1b0] ss:$8 sps:$4 sm:$0xff]  }
 0x205   : > { %1077 = vmatprep.subr.bf16.mxu1 %v2030_v3  ;;  %v2135_v3 = vld [vmem:[%s2496_s22 + $0x1c4] ss:$8 sps:$4 sm:$0xff]  }
 0x208   : > { %1078 = vmatpush1.bf16.msra.mxu1 %v2028_v4  ;;  %v2133_v4 = vld [vmem:[%s2496_s22 + $0x1c0] ss:$8 sps:$4 sm:$0xff]  }
 0x209   : > { %1079 = vmatprep.subr.bf16.mxu1 %v2033_v5  ;;  %v2138_v5 = vld [vmem:[%s2496_s22 + $0x1d4] ss:$8 sps:$4 sm:$0xff]  }
 0x20c   : > { %1080 = vmatpush1.bf16.msra.mxu1 %v2031_v6  ;;  %v686_v6 = vsub.s32 2, %v2633_v24 }
 0x20d   : > { %1081 = vmatprep.subr.bf16.mxu1 %v2036_v7  ;;  %v690_v7 = vsub.s32 3, %v2633_v24 }
 0x210   : > { %1082 = vmatpush1.bf16.msra.mxu1 %v2034_v8  ;;  %v2136_v8 = vld [vmem:[%s2496_s22 + $0x1d0] ss:$8 sps:$4 sm:$0xff]  }
 0x211   : > { %1083 = vmatprep.subr.bf16.mxu1 %v2039_v9  ;;  %v687_v9 = vrot.slane %v2641_v26, %v686_v6 }
 0x214   : > { %1084 = vmatpush1.bf16.msra.mxu1 %v2037_v10  ;;  %v2141_v10 = vld [vmem:[%s2496_s22 + $0x1e4] ss:$8 sps:$4 sm:$0xff]  }
 0x215   : > { %1085 = vmatprep.subr.bf16.mxu1 %v2042_v11  ;;  %v691_v11 = vrot.slane %v2641_v26, %v690_v7 }
 0x218   : > { %1086 = vmatpush1.bf16.msra.mxu1 %v2040_v12 }
 0x219   : > { %1087 = vmatprep.subr.bf16.mxu1 %v2045_v13  ;;  %v2139_v13 = vld [vmem:[%s2496_s22 + $0x1e0] ss:$8 sps:$4 sm:$0xff]  }
 0x21c   : > { %1088 = vmatpush1.bf16.msra.mxu1 %v2043_v14 }
 0x21d   : > { %1089 = vmatprep.subr.bf16.mxu1 %v2048_v15 }
 0x220   : > { %1090 = vmatpush1.bf16.msra.mxu1 %v2046_v16  ;;  %v2144_v16 = vld [vmem:[%s2496_s22 + $0x1f4] ss:$8 sps:$4 sm:$0xff]  }
 0x223   : > { %1092 = vmatmul.mubr.bf16.vlgmr.msra.gmra.mrb[4].mxu1 %v2575_v33 }
 0x2b6   : > { %v1050_v30 = vpop.f32.mrb[0].mxu1 }
 0x2b7   : > { %v1051_v31 = vadd.f32 %v1050_v30, %v679_v28  ;;  %v1052_v32 = vpop.f32.mrb[1].mxu1 }
 0x2b8   : > { %v1053_v33 = vadd.f32 %v1052_v32, %v683_v29  ;;  %v1054_v34 = vpop.f32.mrb[2].mxu1  ;;  %v1110_v32 = vld [vmem:[#allocation2] sm:$0xff] }
 0x2b9   : > { %v1102_v35 = vmax.f32 %v1051_v31, 0.0  ;;  %v1055_v36 = vadd.f32 %v1054_v34, %v679_v28  ;;  %v1056_v37 = vpop.f32.mrb[3].mxu1 }
 0x2ba   : > { %v1057_v38 = vadd.f32 %v1056_v37, %v683_v29  ;;  %v1103_v40 = vmax.f32 %v1053_v33, 0.0  ;;  %v1111_v33 = vld [vmem:[#allocation2 + $0x8] sm:$0xff] }
 0x2bb   : > { %v1106_v39 = vmax.f32 %v1055_v36, 0.0 }
 0x2bc   : > { %v1107_v41 = vmax.f32 %v1057_v38, 0.0  ;;  %v1113_v38 = vld [vmem:[#allocation2 + $0x18] sm:$0xff] }
 0x2bd   : > { %v1114_v42 = vpack.c.bf16 %v1106_v39, %v1102_v35  ;;  %v1112_v35 = vld [vmem:[#allocation2 + $0x10] sm:$0xff] }
 0x2be   : > { %v1115_v43 = vpack.c.bf16 %v1107_v41, %v1103_v40 }
 0x2c0   : > { %1534 = vmatprep.mubr.bf16.mxu0 %v1115_v43 }
 0x2c1   : > { %1535 = vmatmul.mubr.bf16.vlgmr.msra.gmra.mrb[0].mxu0 %v1114_v42 }
 0x2c2   : > { %1546 = vmatpush1.bf16.msra.mxu0 %v2097_v44 }
 0x2c3   : > { %1547 = vmatprep.subr.bf16.mxu0 %v2102_v45  ;;  %v1604_v45 = vld [vmem:[%s2729_s6] sm:$0x3] (!%p1885_p7) }
 0x2c6   : > { %1548 = vmatpush1.bf16.msra.mxu0 %v2100_v46 }
 0x2c7   : > { %1549 = vmatprep.subr.bf16.mxu0 %v2105_v47  ;;  %v1609_v47 = vrot.slane (!%p1885_p7), %v1604_v45, %v678_v25 }
 0x2ca   : > { %1550 = vmatpush1.bf16.msra.mxu0 %v2103_v48  ;;  %v1613_v48 = vrot.slane (!%p1885_p7), %v1604_v45, %v682_v27 }
 0x2cb   : > { %1551 = vmatprep.subr.bf16.mxu0 %v2108_v49 }
 0x2ce   : > { %1552 = vmatpush1.bf16.msra.mxu0 %v2106_v50 }
 0x2cf   : > { %1553 = vmatprep.subr.bf16.mxu0 %v2111_v51 }
 0x2d2   : > { %1554 = vmatpush1.bf16.msra.mxu0 %v2109_v52 }
 0x2d3   : > { %1555 = vmatprep.subr.bf16.mxu0 %v2114_v53 }
 0x2d6   : > { %1556 = vmatpush1.bf16.msra.mxu0 %v2112_v54 }
 0x2d7   : > { %1557 = vmatprep.subr.bf16.mxu0 %v2117_v55 }
 0x2da   : > { %1558 = vmatpush1.bf16.msra.mxu0 %v2115_v56 }
 0x2db   : > { %1559 = vmatprep.subr.bf16.mxu0 %v2120_v57 }
 0x2de   : > { %1560 = vmatpush1.bf16.msra.mxu0 %v2118_v58 }
 0x2df   : > { %1561 = vmatprep.subr.bf16.mxu0 %v2123_v59 }
 0x2e2   : > { %1562 = vmatpush1.bf16.msra.mxu0 %v2121_v60 }
 0x2e3   : > { %1563 = vmatprep.subr.bf16.mxu0 %v2126_v61 }
 0x2e6   : > { %1564 = vmatpush1.bf16.msra.mxu0 %v2124_v62 }
 0x2e7   : > { %1565 = vmatprep.subr.bf16.mxu0 %v2129_v63 }
 0x2ea   : > { %1566 = vmatpush1.bf16.msra.mxu0 %v2127_v0 }
 0x2eb   : > { %1567 = vmatprep.subr.bf16.mxu0 %v2132_v1 }
 0x2ee   : > { %1568 = vmatpush1.bf16.msra.mxu0 %v2130_v2 }
 0x2ef   : > { %1569 = vmatprep.subr.bf16.mxu0 %v2135_v3 }
 0x2f2   : > { %1570 = vmatpush1.bf16.msra.mxu0 %v2133_v4 }
 0x2f3   : > { %1571 = vmatprep.subr.bf16.mxu0 %v2138_v5 }
 0x2f6   : > { %v1093_v12 = vpop.f32.mrb[4].mxu1  ;;  %1572 = vmatpush1.bf16.msra.mxu0 %v2136_v8 }
 0x2f7   : > { %v1094_v14 = vadd.f32 %v1093_v12, %v687_v9  ;;  %v1095_v15 = vpop.f32.mrb[5].mxu1  ;;  %1573 = vmatprep.subr.bf16.mxu0 %v2141_v10 }
 0x2f8   : > { %v1096_v17 = vadd.f32 %v1095_v15, %v691_v11  ;;  %v1097_v18 = vpop.f32.mrb[6].mxu1 }
 0x2f9   : > { %v1098_v19 = vadd.f32 %v1097_v18, %v687_v9  ;;  %v1099_v20 = vpop.f32.mrb[7].mxu1  ;;  %v1104_v23 = vmax.f32 %v1094_v14, 0.0 }
 0x2fa   : > { %v1100_v21 = vadd.f32 %v1099_v20, %v691_v11  ;;  %1574 = vmatpush1.bf16.msra.mxu0 %v2139_v13  ;;  %v1105_v29 = vmax.f32 %v1096_v17, 0.0 }
 0x2fb   : > { %v1108_v28 = vmax.f32 %v1098_v19, 0.0  ;;  %1575 = vmatprep.subr.bf16.mxu0 %v2144_v16 }
 0x2fc   : > { %v1109_v30 = vmax.f32 %v1100_v21, 0.0 }
 0x2fd   : > { %v1116_v26 = vpack.c.bf16 %v1108_v28, %v1104_v23 }
 0x2fe   : > { %v1117_v31 = vpack.c.bf16 %v1109_v30, %v1105_v29  ;;  %1576 = vmatpush1.bf16.msra.mxu0 %v2142_v22 }
 0x300   : > { %1577 = vmatprep.mubr.bf16.mxu0 %v1117_v31 }
 0x301   : > { %1578 = vmatmul.mubr.bf16.vlgmr.msra.gmra.mrb[0].mxu0 %v1116_v26 }
 0x3d4   : > { %v1579_v34 = vpop.f32.mrb[0].mxu0  ;;  %1599 = sbr.rel (%p1885_p7) target bundleno = 997 (0x3e5), region = 83 }
 0x3d5   : > { %v1588_v36 = vadd.f32 %v1579_v34, %v1110_v32  ;;  %v1581_v37 = vpop.f32.mrb[1].mxu0 }
 0x3d6   : > { %v1589_v39 = vadd.f32 %v1581_v37, %v1111_v33  ;;  %v1583_v40 = vpop.f32.mrb[2].mxu0 }
 0x3d7   : > { %1592 = vst [vmem:[#allocation2] sm:$0xff] %v1588_v36  ;;  %v1590_v41 = vadd.f32 %v1583_v40, %v1112_v35  ;;  %v1585_v42 = vpop.f32.mrb[3].mxu0 }
 0x3d8   : > { %1593 = vst [vmem:[#allocation2 + $0x8] sm:$0xff] %v1589_v39  ;;  %v1591_v43 = vadd.f32 %v1585_v42, %v1113_v38 }
 0x3d9   : > { %1594 = vst [vmem:[#allocation2 + $0x10] sm:$0xff] %v1590_v41 }
 0x3da   : > { %1595 = vst [vmem:[#allocation2 + $0x18] sm:$0xff] %v1591_v43 }
 0x3de   : > { %v1600_v44 = vld [vmem:[#allocation2] sm:$0xff] }
 0x3df   : > { %v1601_v46 = vld [vmem:[#allocation2 + $0x8] sm:$0xff]  ;;  %v1616_v51 = vadd.f32 %v1609_v47, %v1600_v44 }
 0x3e0   : > { %v1602_v49 = vld [vmem:[#allocation2 + $0x10] sm:$0xff]  ;;  %v1617_v52 = vadd.f32 %v1613_v48, %v1601_v46 }
 0x3e1   : > { %v1603_v50 = vld [vmem:[#allocation2 + $0x18] sm:$0xff]  ;;  %v1618_v53 = vadd.f32 %v1609_v47, %v1602_v49  ;;  %1620 = vst [vmem:[%s2730_s7] sm:$0xff] %v1616_v51 }
 0x3e2   : > { %v1619_v54 = vadd.f32 %v1613_v48, %v1603_v50  ;;  %1621 = vst [vmem:[%s2730_s7 + $0x8] sm:$0xff] %v1617_v52 }
 0x3e3   : > { %1622 = vst [vmem:[%s2730_s7 + $0x10] sm:$0xff] %v1618_v53 }
 0x3e4   : > { %1623 = vst [vmem:[%s2730_s7 + $0x18] sm:$0xff] %v1619_v54 }
 0x3e5 PF: > { %s20_s29 = sadd.s32 1, %s2223_s29   ;;  %s2733_s24 = smov %s2207_s25 }
 0x3e6   : > { %p17_p4 = scmp.ge.s32.totalorder %s20_s29, 4   ;;  %s2734_s25 = smov %s2211_s26 }
 0x3e7   : > { %s2735_s26 = smov %s2316_s13  ;;  %s2736_s27 = smov %s2219_s28 }
 0x3e8   : > { %s2737_s28 = smov %s2739_s8  ;;  %19 = sbr.rel (!%p17_p4) target bundleno = 4 (0x4), region = 133 }
 0x3ef   :  { %1648 = vsyncpa [#allocation6], 1 }
 0x3f0   :  { %1650 = vsyncpa [#allocation6 + $0x1], 1 }

// kernel: gpt2_forward.6
= control target key start
LH: loop header
LB: loop body
LE: loop exit
PB: predicated region body
PF: predicated region fallthrough
CT: control target
= control target key end

     0   :  { %s1965_s18 = smov 0   ;;  %s2431_s0 = inlined_call_operand.vmem [shape: f32[2,8,256], index: 0, kind: input, shape index: {}]   ;;  %s2432_s1 = inlined_call_operand.vmem [shape: f32[1,256], index: 1, kind: input, shape index: {}]   ;;  %s2433_s2 = inlined_call_operand.vmem [shape: f32[1,256], index: 2, kind: input, shape index: {}]   ;;  %s2434_s3 = inlined_call_operand.vmem [shape: bf16[256,768], index: 3, kind: input, shape index: {}]   ;;  %s2435_s4 = inlined_call_operand.vmem [shape: bf16[256,256], index: 4, kind: input, shape index: {}]   ;;  %s2436_s5 = inlined_call_operand.vmem [shape: f32[2,8,256], index: 5, kind: output, shape index: {}]  }
   0x1 LB: > { %s1534_s19 = sadd.s32 4294967295, %s1930_s18   ;;  %p1538_p0 = scmp.ge.s32.totalorder %s1930_s18, 1  ;;  %s1930_s18 = sphi %s1965_s18, %s15_s18  }
   0x2   : > { %p187_p1 = scmp.lt.s32.totalorder %s1930_s18, 3 }
   0x4   : > { %p188_p2 = pnand %p1538_p0, %p187_p1 }
   0x5   : > { %p215_p3 = scmp.lt.s32.totalorder (!%p188_p2), %s1534_s19, 1  ;;  %v1720_v3 = vld [vmem:[%s2434_s3 + $0x4] ss:$24 sps:$4 sm:$0xff] (!%p188_p2)   ;;  %v1722_v4 = vld [vmem:[%s2434_s3] ss:$24 sps:$4 sm:$0xff] (!%p188_p2)   ;;  %vm1933_vm0 = vmmov (!%p188_p2), 0  }
   0x6   : > { %191 = sbr.rel (%p188_p2) target bundleno = 1528 (0x5f8), region = 40  ;;  %v1723_v5 = vld [vmem:[%s2434_s3 + $0xc] ss:$24 sps:$4 sm:$0xff] (!%p188_p2)   ;;  %v1725_v6 = vld [vmem:[%s2434_s3 + $0x8] ss:$24 sps:$4 sm:$0xff] (!%p188_p2)   ;;  %851 = vmatprep.subr.bf16.mxu0 (!%p188_p2), %v1720_v3  ;;  %vm1150_vm1 = vcmask (!%p188_p2), 1043456  }
   0x7   : > { %v1726_v7 = vld [vmem:[%s2434_s3 + $0x34] ss:$24 sps:$4 sm:$0xff] (!%p188_p2)   ;;  %892 = vmatprep.subr.bf16.mxu1 (!%p188_p2), %v1723_v5  ;;  %852 = vmatpush1.bf16.msra.mxu0 (!%p188_p2), %v1722_v4  ;;  %v1728_v9 = vld [vmem:[%s2434_s3 + $0x30] ss:$24 sps:$4 sm:$0xff] (!%p188_p2)   ;;  %v1732_v11 = vld [vmem:[%s2434_s3 + $0x64] ss:$24 sps:$4 sm:$0xff] (!%p188_p2)  }
   0x8   : > { %v1729_v8 = vld [vmem:[%s2434_s3 + $0x3c] ss:$24 sps:$4 sm:$0xff] (!%p188_p2)   ;;  %893 = vmatpush1.bf16.msra.mxu1 (!%p188_p2), %v1725_v6  ;;  %v1731_v10 = vld [vmem:[%s2434_s3 + $0x38] ss:$24 sps:$4 sm:$0xff] (!%p188_p2)   ;;  %853 = vmatprep.subr.bf16.mxu0 (!%p188_p2), %v1726_v7  ;;  %v1735_v12 = vld [vmem:[%s2434_s3 + $0x6c] ss:$24 sps:$4 sm:$0xff] (!%p188_p2)  }
   0x9   : > { %894 = vmatprep.subr.bf16.mxu1 (!%p188_p2), %v1729_v8  ;;  %v1734_v13 = vld [vmem:[%s2434_s3 + $0x60] ss:$24 sps:$4 sm:$0xff] (!%p188_p2)   ;;  %v1738_v15 = vld [vmem:[%s2434_s3 + $0x94] ss:$24 sps:$4 sm:$0xff] (!%p188_p2)   ;;  %v1740_v17 = vld [vmem:[%s2434_s3 + $0x90] ss:$24 sps:$4 sm:$0xff] (!%p188_p2)  }
   0xa   : > { %v1737_v14 = vld [vmem:[%s2434_s3 + $0x68] ss:$24 sps:$4 sm:$0xff] (!%p188_p2)   ;;  %v1741_v16 = vld [vmem:[%s2434_s3 + $0x9c] ss:$24 sps:$4 sm:$0xff] (!%p188_p2)   ;;  %v1743_v18 = vld [vmem:[%s2434_s3 + $0x98] ss:$24 sps:$4 sm:$0xff] (!%p188_p2)  }
   0xb   : > { %854 = vmatpush1.bf16.msra.mxu0 (!%p188_p2), %v1728_v9  ;;  %v1744_v19 = vld [vmem:[%s2434_s3 + $0xc4] ss:$24 sps:$4 sm:$0xff] (!%p188_p2)   ;;  %v1746_v21 = vld [vmem:[%s2434_s3 + $0xc0] ss:$24 sps:$4 sm:$0xff] (!%p188_p2)   ;;  %v1750_v23 = vld [vmem:[%s2434_s3 + $0xf4] ss:$24 sps:$4 sm:$0xff] (!%p188_p2)  }
   0xc   : > { %895 = vmatpush1.bf16.msra.mxu1 (!%p188_p2), %v1731_v10  ;;  %855 = vmatprep.subr.bf16.mxu0 (!%p188_p2), %v1732_v11  ;;  %v1747_v20 = vld [vmem:[%s2434_s3 + $0xcc] ss:$24 sps:$4 sm:$0xff] (!%p188_p2)   ;;  %v1749_v22 = vld [vmem:[%s2434_s3 + $0xc8] ss:$24 sps:$4 sm:$0xff] (!%p188_p2)   ;;  %v1753_v24 = vld [vmem:[%s2434_s3 + $0xfc] ss:$24 sps:$4 sm:$0xff] (!%p188_p2)  }
   0xd   : > { %s2438_s19 = smov (!%p215_p3, %s1534_s19), 1  ;;  %896 = vmatprep.subr.bf16.mxu1 %v1735_v12  ;;  %v1752_v25 = vld [vmem:[%s2434_s3 + $0xf0] ss:$24 sps:$4 sm:$0xff]   ;;  %v1756_v27 = vld [vmem:[%s2434_s3 + $0x124] ss:$24 sps:$4 sm:$0xff]   ;;  %vm1122_vm2 = vcmask 64512  }
   0xe   : > { %s1675_s20 = sshll.u32 %s2438_s19, 4  ;;  %v1755_v26 = vld [vmem:[%s2434_s3 + $0xf8] ss:$24 sps:$4 sm:$0xff]   ;;  %v1759_v28 = vld [vmem:[%s2434_s3 + $0x12c] ss:$24 sps:$4 sm:$0xff]  }
   0xf   : > { %s1981_s23 = scalar_lea.vmem %s2431_s0, %s1675_s20  ;;  %856 = vmatpush1.bf16.msra.mxu0 %v1734_v13  ;;  %v1758_v29 = vld [vmem:[%s2434_s3 + $0x120] ss:$24 sps:$4 sm:$0xff]   ;;  %v1762_v31 = vld [vmem:[%s2434_s3 + $0x154] ss:$24 sps:$4 sm:$0xff]   ;;  %v1764_v33 = vld [vmem:[%s2434_s3 + $0x150] ss:$24 sps:$4 sm:$0xff]   ;;  %v248_v13 = vlaneseq  ;;  %s224_s9 = scalar_lea.vmem %s2436_s5, %s1675_s20 }
  0x10   : > { %v1984_v0 = vld [vmem:[%s1981_s23] sm:$0xff]  ;;  %v1987_v1 = vld [vmem:[%s1981_s23 + $0x8] sm:$0xff]  ;;  %897 = vmatpush1.bf16.msra.mxu1 %v1737_v14  ;;  %857 = vmatprep.subr.bf16.mxu0 %v1738_v15  ;;  %v1765_v32 = vld [vmem:[%s2434_s3 + $0x15c] ss:$24 sps:$4 sm:$0xff]  }
  0x11   : > { %v230_v2 = vadd.f32 %v1987_v1, %v1984_v0  ;;  %898 = vmatprep.subr.bf16.mxu1 %v1741_v16  ;;  %v1761_v30 = vld [vmem:[%s2434_s3 + $0x128] ss:$24 sps:$4 sm:$0xff]   ;;  %v1767_v34 = vld [vmem:[%s2434_s3 + $0x158] ss:$24 sps:$4 sm:$0xff]   ;;  %v1768_v35 = vld [vmem:[%s2434_s3 + $0x184] ss:$24 sps:$4 sm:$0xff]  }
  0x12   : > { %v1771_v36 = vld [vmem:[%s2434_s3 + $0x18c] ss:$24 sps:$4 sm:$0xff]   ;;  %v1770_v37 = vld [vmem:[%s2434_s3 + $0x180] ss:$24 sps:$4 sm:$0xff]   ;;  %v1777_v40 = vld [vmem:[%s2434_s3 + $0x1bc] ss:$24 sps:$4 sm:$0xff]  }
  0x13   : > { %231 = vadd.xlane.f32.xlu0 %v230_v2  ;;  %858 = vmatpush1.bf16.msra.mxu0 %v1740_v17  ;;  %v1773_v38 = vld [vmem:[%s2434_s3 + $0x188] ss:$24 sps:$4 sm:$0xff]   ;;  %v1774_v39 = vld [vmem:[%s2434_s3 + $0x1b4] ss:$24 sps:$4 sm:$0xff]   ;;  %v1779_v42 = vld [vmem:[%s2434_s3 + $0x1b8] ss:$24 sps:$4 sm:$0xff]  }
  0x14   : > { %899 = vmatpush1.bf16.msra.mxu1 %v1743_v18  ;;  %859 = vmatprep.subr.bf16.mxu0 %v1744_v19  ;;  %v1776_v41 = vld [vmem:[%s2434_s3 + $0x1b0] ss:$24 sps:$4 sm:$0xff]   ;;  %v1780_v43 = vld [vmem:[%s2434_s3 + $0x1e4] ss:$24 sps:$4 sm:$0xff]   ;;  %v1782_v51 = vld [vmem:[%s2434_s3 + $0x1e0] ss:$24 sps:$4 sm:$0xff]  }
  0x15   : > { %900 = vmatprep.subr.bf16.mxu1 %v1747_v20  ;;  %v1783_v52 = vld [vmem:[%s2434_s3 + $0x1ec] ss:$24 sps:$4 sm:$0xff]   ;;  %v1785_v53 = vld [vmem:[%s2434_s3 + $0x1e8] ss:$24 sps:$4 sm:$0xff]   ;;  %v1789_v56 = vld [vmem:[%s2434_s3 + $0x21c] ss:$24 sps:$4 sm:$0xff]  }
  0x16   : > { %v1786_v54 = vld [vmem:[%s2434_s3 + $0x214] ss:$24 sps:$4 sm:$0xff]   ;;  %v1788_v55 = vld [vmem:[%s2434_s3 + $0x210] ss:$24 sps:$4 sm:$0xff]   ;;  %v1792_v58 = vld [vmem:[%s2434_s3 + $0x244] ss:$24 sps:$4 sm:$0xff]  }
  0x17   : > { %860 = vmatpush1.bf16.msra.mxu0 %v1746_v21  ;;  %v1791_v57 = vld [vmem:[%s2434_s3 + $0x218] ss:$24 sps:$4 sm:$0xff]   ;;  %v1795_v60 = vld [vmem:[%s2434_s3 + $0x24c] ss:$24 sps:$4 sm:$0xff]   ;;  %v1797_v61 = vld [vmem:[%s2434_s3 + $0x248] ss:$24 sps:$4 sm:$0xff]  }
  0x18   : > { %901 = vmatpush1.bf16.msra.mxu1 %v1749_v22  ;;  %861 = vmatprep.subr.bf16.mxu0 %v1750_v23  ;;  %v1794_v59 = vld [vmem:[%s2434_s3 + $0x240] ss:$24 sps:$4 sm:$0xff]   ;;  %v1798_v62 = vld [vmem:[%s2434_s3 + $0x274] ss:$24 sps:$4 sm:$0xff]   ;;  %v1804_v2 = vld [vmem:[%s2434_s3 + $0x2a4] ss:$24 sps:$4 sm:$0xff]  }
  0x19   : > { %902 = vmatprep.subr.bf16.mxu1 %v1753_v24  ;;  %v1801_v63 = vld [vmem:[%s2434_s3 + $0x27c] ss:$24 sps:$4 sm:$0xff]   ;;  %v1807_v3 = vld [vmem:[%s2434_s3 + $0x2ac] ss:$24 sps:$4 sm:$0xff]   ;;  %v1806_v4 = vld [vmem:[%s2434_s3 + $0x2a0] ss:$24 sps:$4 sm:$0xff]  }
  0x1a   : > { %v1809_v5 = vld [vmem:[%s2434_s3 + $0x2a8] ss:$24 sps:$4 sm:$0xff]   ;;  %v1810_v6 = vld [vmem:[%s2434_s3 + $0x2d4] ss:$24 sps:$4 sm:$0xff]   ;;  %v1815_v9 = vld [vmem:[%s2434_s3 + $0x2d8] ss:$24 sps:$4 sm:$0xff]  }
  0x1b   : > { %862 = vmatpush1.bf16.msra.mxu0 %v1752_v25  ;;  %v1813_v7 = vld [vmem:[%s2434_s3 + $0x2dc] ss:$24 sps:$4 sm:$0xff]   ;;  %v1812_v8 = vld [vmem:[%s2434_s3 + $0x2d0] ss:$24 sps:$4 sm:$0xff]   ;;  %v2196_v15 = vshrl.u32 %v248_v13, 7 }
  0x1c   : > { %903 = vmatpush1.bf16.msra.mxu1 %v1755_v26  ;;  %863 = vmatprep.subr.bf16.mxu0 %v1756_v27  ;;  %v1818_v10 = vld [vmem:[%s2434_s3 + $0x14] ss:$24 sps:$4 sm:$0xff]   ;;  %v228_v18 = vld [vmem:[%s2432_s1] sm:$0x3] }
  0x1d   : > { %904 = vmatprep.subr.bf16.mxu1 %v1759_v28  ;;  %v254_v16 = vsub.s32 1, %v2196_v15  ;;  %v250_v17 = vsub.s32 0, %v2196_v15  ;;  %v229_v19 = vld [vmem:[%s2433_s2] sm:$0x3] }
  0x1f   : > { %864 = vmatpush1.bf16.msra.mxu0 %v1758_v29  ;;  %v255_v20 = vrot.slane %v228_v18, %v254_v16  ;;  %v251_v21 = vrot.slane %v228_v18, %v250_v17  ;;  %v268_v24 = vrot.slane %v229_v19, %v254_v16  ;;  %v264_v26 = vrot.slane %v229_v19, %v250_v17 }
  0x20   : > { %905 = vmatpush1.bf16.msra.mxu1 %v1761_v30  ;;  %865 = vmatprep.subr.bf16.mxu0 %v1762_v31 }
  0x21   : > { %906 = vmatprep.subr.bf16.mxu1 %v1765_v32  ;;  %v1816_v32 = vld [vmem:[%s2434_s3 + $0x10] ss:$24 sps:$4 sm:$0xff]  }
  0x23   : > { %866 = vmatpush1.bf16.msra.mxu0 %v1764_v33 }
  0x24   : > { %907 = vmatpush1.bf16.msra.mxu1 %v1767_v34  ;;  %867 = vmatprep.subr.bf16.mxu0 %v1768_v35  ;;  %v1821_v34 = vld [vmem:[%s2434_s3 + $0x44] ss:$24 sps:$4 sm:$0xff]   ;;  %v1819_v35 = vld [vmem:[%s2434_s3 + $0x40] ss:$24 sps:$4 sm:$0xff]  }
  0x25   : > { %908 = vmatprep.subr.bf16.mxu1 %v1771_v36  ;;  %v1824_v36 = vld [vmem:[%s2434_s3 + $0x74] ss:$24 sps:$4 sm:$0xff]  }
  0x27   : > { %868 = vmatpush1.bf16.msra.mxu0 %v1770_v37  ;;  %v1822_v37 = vld [vmem:[%s2434_s3 + $0x70] ss:$24 sps:$4 sm:$0xff]  }
  0x28   : > { %909 = vmatpush1.bf16.msra.mxu1 %v1773_v38  ;;  %869 = vmatprep.subr.bf16.mxu0 %v1774_v39  ;;  %v1827_v38 = vld [vmem:[%s2434_s3 + $0xa4] ss:$24 sps:$4 sm:$0xff]   ;;  %v1825_v39 = vld [vmem:[%s2434_s3 + $0xa0] ss:$24 sps:$4 sm:$0xff]  }
  0x29   : > { %910 = vmatprep.subr.bf16.mxu1 %v1777_v40  ;;  %v1830_v40 = vld [vmem:[%s2434_s3 + $0xd4] ss:$24 sps:$4 sm:$0xff]  }
  0x2b   : > { %870 = vmatpush1.bf16.msra.mxu0 %v1776_v41  ;;  %v1828_v41 = vld [vmem:[%s2434_s3 + $0xd0] ss:$24 sps:$4 sm:$0xff]  }
  0x2c   : > { %911 = vmatpush1.bf16.msra.mxu1 %v1779_v42  ;;  %871 = vmatprep.subr.bf16.mxu0 %v1780_v43  ;;  %v1833_v42 = vld [vmem:[%s2434_s3 + $0x104] ss:$24 sps:$4 sm:$0xff]   ;;  %v1831_v43 = vld [vmem:[%s2434_s3 + $0x100] ss:$24 sps:$4 sm:$0xff]  }
  0x2d   : > { %912 = vmatprep.subr.bf16.mxu1 %v1783_v52  ;;  %v1848_v52 = vld [vmem:[%s2434_s3 + $0x1f4] ss:$24 sps:$4 sm:$0xff]  }
  0x2f   : > { %872 = vmatpush1.bf16.msra.mxu0 %v1782_v51  ;;  %v1843_v51 = vld [vmem:[%s2434_s3 + $0x1c0] ss:$24 sps:$4 sm:$0xff]  }
  0x30   : > { %913 = vmatpush1.bf16.msra.mxu1 %v1785_v53  ;;  %873 = vmatprep.subr.bf16.mxu0 %v1786_v54  ;;  %v1846_v53 = vld [vmem:[%s2434_s3 + $0x1f0] ss:$24 sps:$4 sm:$0xff]   ;;  %v1851_v54 = vld [vmem:[%s2434_s3 + $0x224] ss:$24 sps:$4 sm:$0xff]  }
  0x31   : > { %914 = vmatprep.subr.bf16.mxu1 %v1789_v56  ;;  %v1854_v56 = vld [vmem:[%s2434_s3 + $0x254] ss:$24 sps:$4 sm:$0xff]  }
  0x33   : > { %874 = vmatpush1.bf16.msra.mxu0 %v1788_v55  ;;  %v1849_v55 = vld [vmem:[%s2434_s3 + $0x220] ss:$24 sps:$4 sm:$0xff]  }
  0x34   : > { %915 = vmatpush1.bf16.msra.mxu1 %v1791_v57  ;;  %875 = vmatprep.subr.bf16.mxu0 %v1792_v58  ;;  %v1852_v57 = vld [vmem:[%s2434_s3 + $0x250] ss:$24 sps:$4 sm:$0xff]   ;;  %v1857_v58 = vld [vmem:[%s2434_s3 + $0x284] ss:$24 sps:$4 sm:$0xff]  }
  0x35   : > { %916 = vmatprep.subr.bf16.mxu1 %v1795_v60  ;;  %v1860_v60 = vld [vmem:[%s2434_s3 + $0x2b4] ss:$24 sps:$4 sm:$0xff]  }
  0x37   : > { %876 = vmatpush1.bf16.msra.mxu0 %v1794_v59  ;;  %v1855_v59 = vld [vmem:[%s2434_s3 + $0x280] ss:$24 sps:$4 sm:$0xff]  }
  0x38   : > { %917 = vmatpush1.bf16.msra.mxu1 %v1797_v61  ;;  %877 = vmatprep.subr.bf16.mxu0 %v1798_v62  ;;  %v1858_v61 = vld [vmem:[%s2434_s3 + $0x2b0] ss:$24 sps:$4 sm:$0xff]   ;;  %v1863_v62 = vld [vmem:[%s2434_s3 + $0x2e4] ss:$24 sps:$4 sm:$0xff]  }
  0x39   : > { %918 = vmatprep.subr.bf16.mxu1 %v1801_v63  ;;  %v1861_v63 = vld [vmem:[%s2434_s3 + $0x2e0] ss:$24 sps:$4 sm:$0xff]  }
  0xa0   : > { %v232_v44 = vpop.xlane.xlu0 %231 }
  0xa1   : > { %v234_v45 = vmul.f32 0.00390625, %v232_v44  ;;  %v1836_v44 = vld [vmem:[%s2434_s3 + $0x134] ss:$24 sps:$4 sm:$0xff]  }
  0xa3   : > { %v2115_v46 = vsub.f32 %v1984_v0, %v234_v45  ;;  %v2118_v47 = vsub.f32 %v1987_v1, %v234_v45  ;;  %v1800_v0 = vld [vmem:[%s2434_s3 + $0x270] ss:$24 sps:$4 sm:$0xff]  }
  0xa4   : > { %v1803_v1 = vld [vmem:[%s2434_s3 + $0x278] ss:$24 sps:$4 sm:$0xff]   ;;  %878 = vmatpush1.bf16.msra.mxu0 %v1800_v0  ;;  %v1932_v0 = vmov 0.0  }
  0xa5   : > { %v237_v48 = vmul.f32 %v2115_v46, %v2115_v46  ;;  %v238_v49 = vmul.f32 %v2118_v47, %v2118_v47  ;;  %919 = vmatpush1.bf16.msra.mxu1 %v1803_v1  ;;  %879 = vmatprep.subr.bf16.mxu0 %v1804_v2  ;;  %v1834_v45 = vld [vmem:[%s2434_s3 + $0x130] ss:$24 sps:$4 sm:$0xff]   ;;  %v1934_v1 = vmov 1935823168  }
  0xa6   : > { %920 = vmatprep.subr.bf16.mxu1 %v1807_v3  ;;  %v983_v2 = vunpack.c.l.s4 %v1934_v1  ;;  %v1866_v1 = vld [vmem:[%s2435_s4 + $0x4] ss:$8 sps:$4 sm:$0xff]  }
  0xa7   : > { %v239_v50 = vadd.f32 %v238_v49, %v237_v48  ;;  %v1842_v48 = vld [vmem:[%s2434_s3 + $0x194] ss:$24 sps:$4 sm:$0xff]   ;;  %v1840_v49 = vld [vmem:[%s2434_s3 + $0x190] ss:$24 sps:$4 sm:$0xff]  }
  0xa8   : > { %880 = vmatpush1.bf16.msra.mxu0 %v1806_v4  ;;  %v984_v3 = vunpack.c.0.s8 %v983_v2 }
  0xa9   : > { %240 = vadd.xlane.f32.xlu0 %v239_v50  ;;  %921 = vmatpush1.bf16.msra.mxu1 %v1809_v5  ;;  %v1845_v50 = vld [vmem:[%s2434_s3 + $0x1c4] ss:$24 sps:$4 sm:$0xff]  }
  0xaa   : > { %881 = vmatprep.subr.bf16.mxu0 %v1810_v6  ;;  %922 = vmatprep.subr.bf16.mxu1 %v1813_v7  ;;  %v987_v4 = vsub.s32 %v984_v3, %v2196_v15 }
  0xac   : > { %882 = vmatpush1.bf16.msra.mxu0 %v1812_v8 }
  0xad   : > { %923 = vmatpush1.bf16.msra.mxu1 %v1815_v9  ;;  %933 = vmatprep.subr.bf16.mxu0 %v1818_v10 }
  0xae   : > { %1697 = vmatprep.subr.bf16.mxu1 %v1932_v0 }
 0x136   : > { %v241_v11 = vpop.xlane.xlu0 %240 }
 0x137   : > { %v242_v12 = vmul.f32 0.00390625, %v241_v11 }
 0x139   : > { %v243_v14 = vadd.f32 1e-05, %v242_v12 }
 0x13b   : > { %1912 = vrsqrt.f32 %v243_v14 }
 0x145   : > { %v1913_v22 = vpop.eup %1912 }
 0x146   : > { %v246_v23 = vmul.f32 %v1913_v22, %v2118_v47  ;;  %v245_v25 = vmul.f32 %v1913_v22, %v2115_v46  ;;  %v1839_v46 = vld [vmem:[%s2434_s3 + $0x164] ss:$24 sps:$4 sm:$0xff]   ;;  %v1837_v47 = vld [vmem:[%s2434_s3 + $0x160] ss:$24 sps:$4 sm:$0xff]  }
 0x148   : > { %v259_v27 = vmul.f32 %v255_v20, %v246_v23  ;;  %v258_v28 = vmul.f32 %v251_v21, %v245_v25 }
 0x14a   : > { %v272_v29 = vadd.f32 %v268_v24, %v259_v27  ;;  %v271_v30 = vadd.f32 %v264_v26, %v258_v28 }
 0x14c   : > { %v274_v31 = vpack.c.bf16 %v272_v29, %v272_v29  ;;  %v2211_v33 = vpack.c.bf16 %v271_v30, %v271_v30 }
 0x14e   : > { %883 = vmatprep.mubr.bf16.mxu0 %v274_v31  ;;  %924 = vmatprep.mubr.bf16.mxu1 %v274_v31 }
 0x14f   : > { %884 = vmatmul.mubr.bf16.vlgmr.msra.gmra.mrb[0].mxu0 %v2211_v33  ;;  %925 = vmatmul.mubr.bf16.vlgmr.msra.gmra.mrb[0].mxu1 %v2211_v33 }
 0x150   : > { %934 = vmatpush1.bf16.msra.mxu0 %v1816_v32  ;;  %965 = vmatprep.mubr.bf16.mxu0 %v274_v31 }
 0x151   : > { %935 = vmatprep.subr.bf16.mxu0 %v1821_v34  ;;  %1699 = vmatprep.mubr.msk.bf16.mxu1 %vm1933_vm0, %v1932_v0 }
 0x154   : > { %936 = vmatpush1.bf16.msra.mxu0 %v1819_v35 }
 0x155   : > { %937 = vmatprep.subr.bf16.mxu0 %v1824_v36 }
 0x158   : > { %938 = vmatpush1.bf16.msra.mxu0 %v1822_v37 }
 0x159   : > { %939 = vmatprep.subr.bf16.mxu0 %v1827_v38 }
 0x15c   : > { %940 = vmatpush1.bf16.msra.mxu0 %v1825_v39 }
 0x15d   : > { %941 = vmatprep.subr.bf16.mxu0 %v1830_v40 }
 0x160   : > { %942 = vmatpush1.bf16.msra.mxu0 %v1828_v41 }
 0x161   : > { %943 = vmatprep.subr.bf16.mxu0 %v1833_v42 }
 0x164   : > { %944 = vmatpush1.bf16.msra.mxu0 %v1831_v43 }
 0x165   : > { %945 = vmatprep.subr.bf16.mxu0 %v1836_v44 }
 0x168   : > { %946 = vmatpush1.bf16.msra.mxu0 %v1834_v45 }
 0x169   : > { %947 = vmatprep.subr.bf16.mxu0 %v1839_v46 }
 0x16c   : > { %948 = vmatpush1.bf16.msra.mxu0 %v1837_v47 }
 0x16d   : > { %949 = vmatprep.subr.bf16.mxu0 %v1842_v48 }
 0x170   : > { %950 = vmatpush1.bf16.msra.mxu0 %v1840_v49 }
 0x171   : > { %951 = vmatprep.subr.bf16.mxu0 %v1845_v50 }
 0x174   : > { %952 = vmatpush1.bf16.msra.mxu0 %v1843_v51 }
 0x175   : > { %953 = vmatprep.subr.bf16.mxu0 %v1848_v52 }
 0x178   : > { %954 = vmatpush1.bf16.msra.mxu0 %v1846_v53 }
 0x179   : > { %955 = vmatprep.subr.bf16.mxu0 %v1851_v54 }
 0x17c   : > { %956 = vmatpush1.bf16.msra.mxu0 %v1849_v55 }
 0x17d   : > { %957 = vmatprep.subr.bf16.mxu0 %v1854_v56 }
 0x180   : > { %958 = vmatpush1.bf16.msra.mxu0 %v1852_v57 }
 0x181   : > { %959 = vmatprep.subr.bf16.mxu0 %v1857_v58 }
 0x184   : > { %960 = vmatpush1.bf16.msra.mxu0 %v1855_v59 }
 0x185   : > { %961 = vmatprep.subr.bf16.mxu0 %v1860_v60 }
 0x188   : > { %962 = vmatpush1.bf16.msra.mxu0 %v1858_v61 }
 0x189   : > { %963 = vmatprep.subr.bf16.mxu0 %v1863_v62 }
 0x18c   : > { %964 = vmatpush1.bf16.msra.mxu0 %v1861_v63 }
 0x18d   : > { %1685 = vmatprep.subr.bf16.mxu0 %v1932_v0 }
 0x18f   : > { %966 = vmatmul.mubr.bf16.vlgmr.msra.gmra.mrb[4].mxu0 %v2211_v33 }
 0x190   : > { %1687 = vmatprep.mubr.msk.bf16.mxu0 %vm1933_vm0, %v1932_v0 }
 0x222   : > { %v885_v5 = vpop.f32.mrb[0].mxu0  ;;  %v926_v6 = vpop.f32.mrb[0].mxu1 }
 0x223   : > { %v974_v7 = vmul.f32 0.088388346, %v885_v5  ;;  %v887_v8 = vpop.f32.mrb[1].mxu0  ;;  %v928_v9 = vpop.f32.mrb[1].mxu1 }
 0x224   : > { %v975_v10 = vmul.f32 0.088388346, %v887_v8  ;;  %v1000_v11 = vcombine.low %v926_v6, %v928_v9  ;;  %v1001_v12 = vcombine.high %v926_v6, %v928_v9  ;;  %v889_v13 = vpop.f32.mrb[2].mxu0  ;;  %v930_v14 = vpop.f32.mrb[2].mxu1  ;;  %v1869_v6 = vld [vmem:[%s2435_s4 + $0x14] ss:$8 sps:$4 sm:$0xff]  }
 0x225   : > { %v890_v16 = vpop.f32.mrb[3].mxu0  ;;  %v931_v17 = vpop.f32.mrb[3].mxu1  ;;  %v1870_v8 = vld [vmem:[%s2435_s4 + $0x20] ss:$8 sps:$4 sm:$0xff]   ;;  %v1875_v9 = vld [vmem:[%s2435_s4 + $0x34] ss:$8 sps:$4 sm:$0xff]  }
 0x226   : > { %v978_v18 = vcombine.low %v974_v7, %v975_v10  ;;  %v979_v19 = vcombine.high %v974_v7, %v975_v10  ;;  %v1010_v20 = vrot.slane %v1000_v11, %v987_v4  ;;  %v1017_v21 = vrot.slane %v1001_v12, %v987_v4  ;;  %v1867_v7 = vld [vmem:[%s2435_s4 + $0x10] ss:$8 sps:$4 sm:$0xff]   ;;  %v1878_v11 = vld [vmem:[%s2435_s4 + $0x44] ss:$8 sps:$4 sm:$0xff]   ;;  %v1876_v12 = vld [vmem:[%s2435_s4 + $0x40] ss:$8 sps:$4 sm:$0xff]  }
 0x227   : > { %v1873_v10 = vld [vmem:[%s2435_s4 + $0x30] ss:$8 sps:$4 sm:$0xff]   ;;  %v1881_v13 = vld [vmem:[%s2435_s4 + $0x54] ss:$8 sps:$4 sm:$0xff]   ;;  %v1884_v16 = vld [vmem:[%s2435_s4 + $0x64] ss:$8 sps:$4 sm:$0xff]  }
 0x228   : > { %v988_v22 = vrot.slane %v978_v18, %v987_v4  ;;  %v995_v23 = vrot.slane %v979_v19, %v987_v4  ;;  %v1018_v24 = vpack.c.bf16 %v1010_v20, %v1010_v20  ;;  %v1019_v25 = vpack.c.bf16 %v1017_v21, %v1017_v21  ;;  %v1879_v14 = vld [vmem:[%s2435_s4 + $0x50] ss:$8 sps:$4 sm:$0xff]   ;;  %v1882_v17 = vld [vmem:[%s2435_s4 + $0x60] ss:$8 sps:$4 sm:$0xff]   ;;  %v1887_v18 = vld [vmem:[%s2435_s4 + $0x74] ss:$8 sps:$4 sm:$0xff]  }
 0x229   : > { %v1885_v19 = vld [vmem:[%s2435_s4 + $0x70] ss:$8 sps:$4 sm:$0xff]   ;;  %v1890_v20 = vld [vmem:[%s2435_s4 + $0x84] ss:$8 sps:$4 sm:$0xff]   ;;  %v1888_v21 = vld [vmem:[%s2435_s4 + $0x80] ss:$8 sps:$4 sm:$0xff]  }
 0x22a   : > { %1686 = vmatpush3.bf16.xpose.msra.mxu0 %v1018_v24  ;;  %v996_v15 = vpack.c.bf16 %v988_v22, %v988_v22  ;;  %v997_v26 = vpack.c.bf16 %v995_v23, %v995_v23  ;;  %v1893_v22 = vld [vmem:[%s2435_s4 + $0x94] ss:$8 sps:$4 sm:$0xff]   ;;  %v1891_v23 = vld [vmem:[%s2435_s4 + $0x90] ss:$8 sps:$4 sm:$0xff]   ;;  %v1896_v24 = vld [vmem:[%s2435_s4 + $0xa4] ss:$8 sps:$4 sm:$0xff]  }
 0x22b   : > { %1691 = vmatprep.subr.bf16.mxu0 %v1932_v0 }
 0x231   : > { %1688 = vmatmul.mubr.bf16.vlgmr.msra.gmra.mrb[8].mxu0 %v996_v15  ;;  %v1894_v15 = vld [vmem:[%s2435_s4 + $0xa0] ss:$8 sps:$4 sm:$0xff]  }
 0x232   : > { %1692 = vmatpush3.bf16.xpose.msra.mxu0 %v1019_v25  ;;  %1693 = vmatprep.mubr.msk.bf16.mxu0 %vm1933_vm0, %v1932_v0  ;;  %v1899_v25 = vld [vmem:[%s2435_s4 + $0xb4] ss:$8 sps:$4 sm:$0xff]  }
 0x239   : > { %1694 = vmatmul.mubr.bf16.vlgmr.msra.gmra.mrb[12].mxu0 %v997_v26  ;;  %v1897_v26 = vld [vmem:[%s2435_s4 + $0xb0] ss:$8 sps:$4 sm:$0xff]  }
 0x262   : > { %v967_v27 = vpop.f32.mrb[4].mxu0 }
 0x263   : > { %v969_v28 = vpop.f32.mrb[5].mxu0 }
 0x264   : > { %v1022_v29 = vcombine.low %v967_v27, %v969_v28  ;;  %v1023_v30 = vcombine.high %v967_v27, %v969_v28  ;;  %v971_v31 = vpop.f32.mrb[6].mxu0  ;;  %v1902_v27 = vld [vmem:[%s2435_s4 + $0xc4] ss:$8 sps:$4 sm:$0xff]   ;;  %v1900_v28 = vld [vmem:[%s2435_s4 + $0xc0] ss:$8 sps:$4 sm:$0xff]  }
 0x265   : > { %v972_v32 = vpop.f32.mrb[7].mxu0  ;;  %v1906_v31 = vld [vmem:[%s2435_s4 + $0xe0] ss:$8 sps:$4 sm:$0xff]  }
 0x266   : > { %v1032_v33 = vrot.slane %v1022_v29, %v987_v4  ;;  %v1039_v34 = vrot.slane %v1023_v30, %v987_v4  ;;  %v1864_v4 = vld [vmem:[%s2435_s4] ss:$8 sps:$4 sm:$0xff]   ;;  %v1905_v29 = vld [vmem:[%s2435_s4 + $0xd4] ss:$8 sps:$4 sm:$0xff]   ;;  %v1903_v30 = vld [vmem:[%s2435_s4 + $0xd0] ss:$8 sps:$4 sm:$0xff]  }
 0x267   : > { %v1908_v32 = vld [vmem:[%s2435_s4 + $0xe4] ss:$8 sps:$4 sm:$0xff]  }
 0x268   : > { %v1040_v35 = vpack.c.bf16 %v1032_v33, %v1032_v33  ;;  %v1041_v36 = vpack.c.bf16 %v1039_v34, %v1039_v34  ;;  %v1911_v33 = vld [vmem:[%s2435_s4 + $0xf4] ss:$8 sps:$4 sm:$0xff]   ;;  %v1909_v34 = vld [vmem:[%s2435_s4 + $0xf0] ss:$8 sps:$4 sm:$0xff]  }
 0x26a   : > { %v1152_v37 = vsel %vm1150_vm1, %v1040_v35, 0  ;;  %v1198_v38 = vsel %vm1150_vm1, %v1041_v36, 0 }
 0x26b   : > { %1698 = vmatpush3.bf16.msra.mxu1 %v1152_v37 }
 0x26c   : > { %1703 = vmatprep.subr.bf16.mxu1 %v1932_v0 }
 0x304   : > { %v1076_v39 = vpop.f32.mrb[8].mxu0 }
 0x305   : > { %v1689_v40 = vpop.f32.mrb[9].mxu0  ;;  %v1123_v41 = vsel %vm1122_vm2, %v1076_v39, -inf }
 0x306   : > { %1124 = vmax.xlane.f32.xlu1 %v1123_v41  ;;  %v1079_v42 = vpop.f32.mrb[10].mxu0 }
 0x307   : > { %v1690_v43 = vpop.f32.mrb[11].mxu0 }
 0x30c   : > { %v1116_v44 = vpop.f32.mrb[12].mxu0 }
 0x30d   : > { %v1695_v45 = vpop.f32.mrb[13].mxu0  ;;  %v1126_v46 = vsel %vm1122_vm2, %v1116_v44, -inf }
 0x30e   : > { %1127 = vmax.xlane.f32.xlu1 %v1126_v46  ;;  %v1119_v47 = vpop.f32.mrb[14].mxu0  ;;  %v1922_v46 = vld [vmem:[%s1981_s23] sm:$0xff] }
 0x30f   : > { %v1696_v48 = vpop.f32.mrb[15].mxu0 }
 0x393   : > { %v1125_v49 = vpop.xlane.xlu1 %1124 }
 0x394   : > { %v1129_v50 = vsub.f32 %v1076_v39, %v1125_v49  ;;  %v1923_v49 = vld [vmem:[%s1981_s23 + $0x8] sm:$0xff] }
 0x396   : > { %v1131_v51 = vmul.f32 1.442695, %v1129_v50 }
 0x398   : > { %1914 = vpow2.f32 %v1131_v51 }
 0x39b   : > { %v1128_v52 = vpop.xlane.xlu1 %1127 }
 0x39c   : > { %v1130_v53 = vsub.f32 %v1116_v44, %v1128_v52 }
 0x39e   : > { %v1133_v54 = vmul.f32 1.442695, %v1130_v53 }
 0x3a0   : > { %1916 = vpow2.f32 %v1133_v54 }
 0x3a2   : > { %v1915_v55 = vpop.eup %1914 }
 0x3a3   : > { %v1135_v56 = vsel %vm1122_vm2, %v1915_v55, 0.0 }
 0x3a4   : > { %1136 = vadd.xlane.f32.xlu0 %v1135_v56 }
 0x3aa   : > { %v1917_v57 = vpop.eup %1916 }
 0x3ab   : > { %v1138_v58 = vsel %vm1122_vm2, %v1917_v57, 0.0 }
 0x3ac   : > { %1139 = vadd.xlane.f32.xlu1 %v1138_v58 }
 0x431   : > { %v1137_v59 = vpop.xlane.xlu0 %1136 }
 0x432   : > { %1918 = vrcp.f32 %v1137_v59 }
 0x439   : > { %v1140_v60 = vpop.xlane.xlu1 %1139 }
 0x43a   : > { %1920 = vrcp.f32 %v1140_v60 }
 0x43c   : > { %v1919_v61 = vpop.eup %1918 }
 0x43d   : > { %v1143_v62 = vmul.f32 %v1919_v61, %v1915_v55 }
 0x43f   : > { %v1145_v63 = vpack.c.bf16 %v1143_v62, %v1143_v62 }
 0x441   : > { %1700 = vmatmul.mubr.msk.bf16.vlgmr.msra.gmra.mrb[4].mxu1 %vm1122_vm2, %v1145_v63 }
 0x442   : > { %1704 = vmatpush3.bf16.msra.mxu1 %v1198_v38  ;;  %1705 = vmatprep.mubr.msk.bf16.mxu1 %vm1933_vm0, %v1932_v0  ;;  %v1872_v0 = vld [vmem:[%s2435_s4 + $0x24] ss:$8 sps:$4 sm:$0xff]  }
 0x443   : > { %1434 = vmatprep.subr.bf16.mxu1 %v1866_v1 }
 0x444   : > { %v1921_v2 = vpop.eup %1920 }
 0x445   : > { %v1144_v3 = vmul.f32 %v1921_v2, %v1917_v57 }
 0x447   : > { %v1146_v5 = vpack.c.bf16 %v1144_v3, %v1144_v3 }
 0x449   : > { %1706 = vmatmul.mubr.msk.bf16.vlgmr.msra.gmra.mrb[8].mxu1 %vm1122_vm2, %v1146_v5 }
 0x44a   : > { %1435 = vmatpush1.bf16.msra.mxu1 %v1864_v4 }
 0x44b   : > { %1436 = vmatprep.subr.bf16.mxu1 %v1869_v6 }
 0x44e   : > { %1437 = vmatpush1.bf16.msra.mxu1 %v1867_v7 }
 0x44f   : > { %1438 = vmatprep.subr.bf16.mxu1 %v1872_v0 }
 0x452   : > { %1439 = vmatpush1.bf16.msra.mxu1 %v1870_v8 }
 0x453   : > { %1440 = vmatprep.subr.bf16.mxu1 %v1875_v9 }
 0x456   : > { %1441 = vmatpush1.bf16.msra.mxu1 %v1873_v10 }
 0x457   : > { %1442 = vmatprep.subr.bf16.mxu1 %v1878_v11 }
 0x45a   : > { %1443 = vmatpush1.bf16.msra.mxu1 %v1876_v12 }
 0x45b   : > { %1444 = vmatprep.subr.bf16.mxu1 %v1881_v13 }
 0x45e   : > { %1445 = vmatpush1.bf16.msra.mxu1 %v1879_v14 }
 0x45f   : > { %1446 = vmatprep.subr.bf16.mxu1 %v1884_v16 }
 0x462   : > { %1447 = vmatpush1.bf16.msra.mxu1 %v1882_v17 }
 0x463   : > { %1448 = vmatprep.subr.bf16.mxu1 %v1887_v18 }
 0x466   : > { %1449 = vmatpush1.bf16.msra.mxu1 %v1885_v19 }
 0x467   : > { %1450 = vmatprep.subr.bf16.mxu1 %v1890_v20 }
 0x46a   : > { %1451 = vmatpush1.bf16.msra.mxu1 %v1888_v21 }
 0x46b   : > { %1452 = vmatprep.subr.bf16.mxu1 %v1893_v22 }
 0x46e   : > { %1453 = vmatpush1.bf16.msra.mxu1 %v1891_v23 }
 0x46f   : > { %1454 = vmatprep.subr.bf16.mxu1 %v1896_v24 }
 0x472   : > { %1455 = vmatpush1.bf16.msra.mxu1 %v1894_v15 }
 0x473   : > { %1456 = vmatprep.subr.bf16.mxu1 %v1899_v25 }
 0x476   : > { %1457 = vmatpush1.bf16.msra.mxu1 %v1897_v26 }
 0x477   : > { %1458 = vmatprep.subr.bf16.mxu1 %v1902_v27 }
 0x47a   : > { %1459 = vmatpush1.bf16.msra.mxu1 %v1900_v28 }
 0x47b   : > { %1460 = vmatprep.subr.bf16.mxu1 %v1905_v29 }
 0x47e   : > { %1461 = vmatpush1.bf16.msra.mxu1 %v1903_v30 }
 0x47f   : > { %1462 = vmatprep.subr.bf16.mxu1 %v1908_v32 }
 0x482   : > { %1463 = vmatpush1.bf16.msra.mxu1 %v1906_v31 }
 0x483   : > { %1464 = vmatprep.subr.bf16.mxu1 %v1911_v33 }
 0x486   : > { %1465 = vmatpush1.bf16.msra.mxu1 %v1909_v34 }
 0x514   : > { %v1188_v35 = vpop.f32.mrb[4].mxu1 }
 0x515   : > { %v1701_v36 = vpop.f32.mrb[5].mxu1  ;;  %v1240_v42 = vpack.c.bf16 %v1188_v35, %v1188_v35 }
 0x516   : > { %v1191_v37 = vpop.f32.mrb[6].mxu1 }
 0x517   : > { %v1702_v38 = vpop.f32.mrb[7].mxu1 }
 0x51c   : > { %v1234_v39 = vpop.f32.mrb[8].mxu1 }
 0x51d   : > { %v1241_v40 = vpack.c.bf16 %v1234_v39, %v1234_v39  ;;  %v1707_v41 = vpop.f32.mrb[9].mxu1 }
 0x51e   : > { %v1237_v43 = vpop.f32.mrb[10].mxu1 }
 0x51f   : > { %v1708_v44 = vpop.f32.mrb[11].mxu1  ;;  %1466 = vmatprep.mubr.bf16.mxu1 %v1241_v40 }
 0x520   : > { %1467 = vmatmul.mubr.bf16.vlgmr.msra.gmra.mrb[12].mxu1 %v1240_v42 }
 0x5f3   : > { %v1468_v45 = vpop.f32.mrb[12].mxu1 }
 0x5f4   : > { %v1475_v47 = vadd.f32 %v1922_v46, %v1468_v45  ;;  %v1470_v48 = vpop.f32.mrb[13].mxu1 }
 0x5f5   : > { %v1476_v50 = vadd.f32 %v1923_v49, %v1470_v48  ;;  %v1472_v51 = vpop.f32.mrb[14].mxu1 }
 0x5f6   : > { %1477 = vst [vmem:[%s224_s9] sm:$0xff] %v1475_v47  ;;  %v1473_v52 = vpop.f32.mrb[15].mxu1 }
 0x5f7   : > { %1478 = vst [vmem:[%s224_s9 + $0x8] sm:$0xff] %v1476_v50 }
 0x5f8 PF: > { %s15_s18 = sadd.s32 1, %s1930_s18  }
 0x5f9   : > { %p12_p4 = scmp.ge.s32.totalorder %s15_s18, 4  }
 0x5fb   :  { %14 = sbr.rel (!%p12_p4) target bundleno = 1 (0x1), region = 70 }

// kernel: gpt2_forward.7
= control target key start
LH: loop header
LB: loop body
LE: loop exit
PB: predicated region body
PF: predicated region fallthrough
CT: control target
= control target key end

     0   :  { %14 = vsyncpa [#allocation6], 0  ;;  %s2345_s30 = smov 0   ;;  %s2347_s10 = smov 0   ;;  %s2776_s0 = inlined_call_operand.vmem [shape: f32[16,256], index: 0, kind: input, shape index: {}]   ;;  %s2777_s1 = inlined_call_operand.vmem [shape: f32[1,256], index: 1, kind: input, shape index: {}]   ;;  %s2778_s2 = inlined_call_operand.vmem [shape: f32[1,256], index: 2, kind: input, shape index: {}]   ;;  %s2779_s3 = inlined_call_operand.vmem [shape: bf16[256,1024], index: 3, kind: input, shape index: {}]   ;;  %s2780_s4 = inlined_call_operand.vmem [shape: f32[1,1024], index: 4, kind: input, shape index: {}]   ;;  %s2781_s5 = inlined_call_operand.vmem [shape: bf16[1024,256], index: 5, kind: input, shape index: {}]   ;;  %s2782_s6 = inlined_call_operand.vmem [shape: f32[1,256], index: 6, kind: input, shape index: {}]   ;;  %s2783_s7 = inlined_call_operand.vmem [shape: f32[1,256], index: 7, kind: input, shape index: {}]   ;;  %s2784_s8 = inlined_call_operand.vmem [shape: f32[1,256], index: 8, kind: input, shape index: {}]   ;;  %s2785_s9 = inlined_call_operand.hbm [shape: f32[16,256], index: 9, kind: output, shape index: {}]  }
   0x1   :  { %s2349_s11 = smov 0   ;;  %s2351_s12 = smov 0  }
   0x2   :  { %s2353_s13 = smov 0  }
   0x3 LB: > { %s29_s15 = sadd.s32 1, %s2286_s12  ;;  %p114_p1 = scmp.ne.s32.totalorder %s2278_s10, %s2274_s30  ;;  %s2290_s13 = sphi %s2353_s13, %s20_s13   ;;  %s2286_s12 = sphi %s2351_s12, %s2791_s12   ;;  %s2282_s11 = sphi %s2349_s11, %s2790_s11   ;;  %s2278_s10 = sphi %s2347_s10, %s2789_s10   ;;  %s2274_s30 = sphi %s2345_s30, %s2788_s30  }
   0x4   : > { %p30_p0 = scmp.ge.s32.totalorder %s29_s15, 2  ;;  %p115_p2 = scmp.eq.s32.totalorder %s2290_s13, 0 }
   0x5   : > { %s107_s17 = sadd.s32 1, %s2278_s10  ;;  %p1823_p5 = scmp.ge.s32.totalorder %s2290_s13, 2 }
   0x6   : > { %s2793_s15 = smov (%p30_p0, %s29_s15), 0  ;;  %p116_p3 = por %p115_p2, %p114_p1 }
   0x7   : > { %s104_s16 = ssub.s32 %s2286_s12, %s2793_s15  ;;  %306 = sbr.rel (%p1823_p5) target bundleno = 50 (0x32), region = 40 }
   0x8   : > { %p105_p4 = scmp.eq.s32.totalorder %s104_s16, 0 }
   0xa   : > { %s2381_s18 = scalar_select %p105_p4, %s2278_s10, %s107_s17  }
   0xe   : > { %309 = sbr.rel (!%p116_p3) target bundleno = 50 (0x32), region = 44  ;;  %s311_s19 = sand.u32 (%p116_p3), 1, %s2278_s10  }
   0xf   : > { %s1967_s20 = sshll.u32 (%p116_p3), %s2286_s12, 4  ;;  %s1824_s21 = sshll.u32 (%p116_p3), %s311_s19, 9 }
  0x10   : > { %s2389_s24 = scalar_lea.vmem (%p116_p3), %s2779_s3, %s1967_s20  ;;  %s2394_s25 = scalar_lea.vmem (%p116_p3), [#allocation4], %s1824_s21 }
  0x11   : > { %v329_v0 = vld [vmem:[%s2389_s24] sm:$0xff] (%p116_p3)  ;;  %v331_v1 = vld [vmem:[%s2389_s24 + $0x8] sm:$0xff] (%p116_p3) }
  0x12   : > { %v333_v2 = vld [vmem:[%s2389_s24 + $0x20] sm:$0xff] (%p116_p3)  ;;  %330 = vst [vmem:[%s2394_s25] sm:$0xff] (%p116_p3), %v329_v0  ;;  %332 = vst [vmem:[%s2394_s25 + $0x8] sm:$0xff] (%p116_p3), %v331_v1  ;;  %v335_v3 = vld [vmem:[%s2389_s24 + $0x28] sm:$0xff] (%p116_p3) }
  0x13   : > { %334 = vst [vmem:[%s2394_s25 + $0x10] sm:$0xff] (%p116_p3), %v333_v2  ;;  %v337_v4 = vld [vmem:[%s2389_s24 + $0x40] sm:$0xff] (%p116_p3)  ;;  %v339_v5 = vld [vmem:[%s2389_s24 + $0x48] sm:$0xff] (%p116_p3)  ;;  %336 = vst [vmem:[%s2394_s25 + $0x18] sm:$0xff] (%p116_p3), %v335_v3 }
  0x14   : > { %338 = vst [vmem:[%s2394_s25 + $0x20] sm:$0xff] (%p116_p3), %v337_v4  ;;  %340 = vst [vmem:[%s2394_s25 + $0x28] sm:$0xff] (%p116_p3), %v339_v5  ;;  %v341_v6 = vld [vmem:[%s2389_s24 + $0x60] sm:$0xff] (%p116_p3)  ;;  %v343_v7 = vld [vmem:[%s2389_s24 + $0x68] sm:$0xff] (%p116_p3) }
  0x15   : > { %v345_v8 = vld [vmem:[%s2389_s24 + $0x80] sm:$0xff]  ;;  %342 = vst [vmem:[%s2394_s25 + $0x30] sm:$0xff] %v341_v6  ;;  %344 = vst [vmem:[%s2394_s25 + $0x38] sm:$0xff] %v343_v7  ;;  %v347_v9 = vld [vmem:[%s2389_s24 + $0x88] sm:$0xff] }
  0x16   : > { %346 = vst [vmem:[%s2394_s25 + $0x40] sm:$0xff] %v345_v8  ;;  %v349_v10 = vld [vmem:[%s2389_s24 + $0xa0] sm:$0xff]  ;;  %v351_v11 = vld [vmem:[%s2389_s24 + $0xa8] sm:$0xff]  ;;  %348 = vst [vmem:[%s2394_s25 + $0x48] sm:$0xff] %v347_v9 }
  0x17   : > { %350 = vst [vmem:[%s2394_s25 + $0x50] sm:$0xff] %v349_v10  ;;  %352 = vst [vmem:[%s2394_s25 + $0x58] sm:$0xff] %v351_v11  ;;  %v353_v12 = vld [vmem:[%s2389_s24 + $0xc0] sm:$0xff]  ;;  %v355_v13 = vld [vmem:[%s2389_s24 + $0xc8] sm:$0xff] }
  0x18   : > { %v357_v14 = vld [vmem:[%s2389_s24 + $0xe0] sm:$0xff]  ;;  %354 = vst [vmem:[%s2394_s25 + $0x60] sm:$0xff] %v353_v12  ;;  %356 = vst [vmem:[%s2394_s25 + $0x68] sm:$0xff] %v355_v13  ;;  %v359_v15 = vld [vmem:[%s2389_s24 + $0xe8] sm:$0xff] }
  0x19   : > { %358 = vst [vmem:[%s2394_s25 + $0x70] sm:$0xff] %v357_v14  ;;  %v361_v16 = vld [vmem:[%s2389_s24 + $0x100] sm:$0xff]  ;;  %v363_v17 = vld [vmem:[%s2389_s24 + $0x108] sm:$0xff]  ;;  %360 = vst [vmem:[%s2394_s25 + $0x78] sm:$0xff] %v359_v15 }
  0x1a   : > { %362 = vst [vmem:[%s2394_s25 + $0x80] sm:$0xff] %v361_v16  ;;  %364 = vst [vmem:[%s2394_s25 + $0x88] sm:$0xff] %v363_v17  ;;  %v365_v18 = vld [vmem:[%s2389_s24 + $0x120] sm:$0xff]  ;;  %v367_v19 = vld [vmem:[%s2389_s24 + $0x128] sm:$0xff] }
  0x1b   : > { %v369_v20 = vld [vmem:[%s2389_s24 + $0x140] sm:$0xff]  ;;  %366 = vst [vmem:[%s2394_s25 + $0x90] sm:$0xff] %v365_v18  ;;  %368 = vst [vmem:[%s2394_s25 + $0x98] sm:$0xff] %v367_v19  ;;  %v371_v21 = vld [vmem:[%s2389_s24 + $0x148] sm:$0xff] }
  0x1c   : > { %370 = vst [vmem:[%s2394_s25 + $0xa0] sm:$0xff] %v369_v20  ;;  %v373_v22 = vld [vmem:[%s2389_s24 + $0x160] sm:$0xff]  ;;  %v375_v23 = vld [vmem:[%s2389_s24 + $0x168] sm:$0xff]  ;;  %372 = vst [vmem:[%s2394_s25 + $0xa8] sm:$0xff] %v371_v21 }
  0x1d   : > { %374 = vst [vmem:[%s2394_s25 + $0xb0] sm:$0xff] %v373_v22  ;;  %376 = vst [vmem:[%s2394_s25 + $0xb8] sm:$0xff] %v375_v23  ;;  %v377_v24 = vld [vmem:[%s2389_s24 + $0x180] sm:$0xff]  ;;  %v379_v25 = vld [vmem:[%s2389_s24 + $0x188] sm:$0xff] }
  0x1e   : > { %v381_v26 = vld [vmem:[%s2389_s24 + $0x1a0] sm:$0xff]  ;;  %378 = vst [vmem:[%s2394_s25 + $0xc0] sm:$0xff] %v377_v24  ;;  %380 = vst [vmem:[%s2394_s25 + $0xc8] sm:$0xff] %v379_v25  ;;  %v383_v27 = vld [vmem:[%s2389_s24 + $0x1a8] sm:$0xff] }
  0x1f   : > { %382 = vst [vmem:[%s2394_s25 + $0xd0] sm:$0xff] %v381_v26  ;;  %v385_v28 = vld [vmem:[%s2389_s24 + $0x1c0] sm:$0xff]  ;;  %v387_v29 = vld [vmem:[%s2389_s24 + $0x1c8] sm:$0xff]  ;;  %384 = vst [vmem:[%s2394_s25 + $0xd8] sm:$0xff] %v383_v27 }
  0x20   : > { %386 = vst [vmem:[%s2394_s25 + $0xe0] sm:$0xff] %v385_v28  ;;  %388 = vst [vmem:[%s2394_s25 + $0xe8] sm:$0xff] %v387_v29  ;;  %v389_v30 = vld [vmem:[%s2389_s24 + $0x1e0] sm:$0xff]  ;;  %v391_v31 = vld [vmem:[%s2389_s24 + $0x1e8] sm:$0xff] }
  0x21   : > { %v393_v32 = vld [vmem:[%s2389_s24 + $0x200] sm:$0xff]  ;;  %390 = vst [vmem:[%s2394_s25 + $0xf0] sm:$0xff] %v389_v30  ;;  %392 = vst [vmem:[%s2394_s25 + $0xf8] sm:$0xff] %v391_v31  ;;  %v395_v33 = vld [vmem:[%s2389_s24 + $0x208] sm:$0xff] }
  0x22   : > { %394 = vst [vmem:[%s2394_s25 + $0x100] sm:$0xff] %v393_v32  ;;  %v397_v34 = vld [vmem:[%s2389_s24 + $0x220] sm:$0xff]  ;;  %v399_v35 = vld [vmem:[%s2389_s24 + $0x228] sm:$0xff]  ;;  %396 = vst [vmem:[%s2394_s25 + $0x108] sm:$0xff] %v395_v33 }
  0x23   : > { %398 = vst [vmem:[%s2394_s25 + $0x110] sm:$0xff] %v397_v34  ;;  %400 = vst [vmem:[%s2394_s25 + $0x118] sm:$0xff] %v399_v35  ;;  %v401_v36 = vld [vmem:[%s2389_s24 + $0x240] sm:$0xff]  ;;  %v403_v37 = vld [vmem:[%s2389_s24 + $0x248] sm:$0xff] }
  0x24   : > { %v405_v38 = vld [vmem:[%s2389_s24 + $0x260] sm:$0xff]  ;;  %402 = vst [vmem:[%s2394_s25 + $0x120] sm:$0xff] %v401_v36  ;;  %404 = vst [vmem:[%s2394_s25 + $0x128] sm:$0xff] %v403_v37  ;;  %v407_v39 = vld [vmem:[%s2389_s24 + $0x268] sm:$0xff] }
  0x25   : > { %406 = vst [vmem:[%s2394_s25 + $0x130] sm:$0xff] %v405_v38  ;;  %v409_v40 = vld [vmem:[%s2389_s24 + $0x280] sm:$0xff]  ;;  %v411_v41 = vld [vmem:[%s2389_s24 + $0x288] sm:$0xff]  ;;  %408 = vst [vmem:[%s2394_s25 + $0x138] sm:$0xff] %v407_v39 }
  0x26   : > { %410 = vst [vmem:[%s2394_s25 + $0x140] sm:$0xff] %v409_v40  ;;  %412 = vst [vmem:[%s2394_s25 + $0x148] sm:$0xff] %v411_v41  ;;  %v413_v42 = vld [vmem:[%s2389_s24 + $0x2a0] sm:$0xff]  ;;  %v415_v43 = vld [vmem:[%s2389_s24 + $0x2a8] sm:$0xff] }
  0x27   : > { %v417_v44 = vld [vmem:[%s2389_s24 + $0x2c0] sm:$0xff]  ;;  %414 = vst [vmem:[%s2394_s25 + $0x150] sm:$0xff] %v413_v42  ;;  %416 = vst [vmem:[%s2394_s25 + $0x158] sm:$0xff] %v415_v43  ;;  %v419_v45 = vld [vmem:[%s2389_s24 + $0x2c8] sm:$0xff] }
  0x28   : > { %418 = vst [vmem:[%s2394_s25 + $0x160] sm:$0xff] %v417_v44  ;;  %v421_v46 = vld [vmem:[%s2389_s24 + $0x2e0] sm:$0xff]  ;;  %v423_v47 = vld [vmem:[%s2389_s24 + $0x2e8] sm:$0xff]  ;;  %420 = vst [vmem:[%s2394_s25 + $0x168] sm:$0xff] %v419_v45 }
  0x29   : > { %422 = vst [vmem:[%s2394_s25 + $0x170] sm:$0xff] %v421_v46  ;;  %424 = vst [vmem:[%s2394_s25 + $0x178] sm:$0xff] %v423_v47  ;;  %v425_v48 = vld [vmem:[%s2389_s24 + $0x300] sm:$0xff]  ;;  %v427_v49 = vld [vmem:[%s2389_s24 + $0x308] sm:$0xff] }
  0x2a   : > { %v429_v50 = vld [vmem:[%s2389_s24 + $0x320] sm:$0xff]  ;;  %426 = vst [vmem:[%s2394_s25 + $0x180] sm:$0xff] %v425_v48  ;;  %428 = vst [vmem:[%s2394_s25 + $0x188] sm:$0xff] %v427_v49  ;;  %v431_v51 = vld [vmem:[%s2389_s24 + $0x328] sm:$0xff] }
  0x2b   : > { %430 = vst [vmem:[%s2394_s25 + $0x190] sm:$0xff] %v429_v50  ;;  %v433_v52 = vld [vmem:[%s2389_s24 + $0x340] sm:$0xff]  ;;  %v435_v53 = vld [vmem:[%s2389_s24 + $0x348] sm:$0xff]  ;;  %432 = vst [vmem:[%s2394_s25 + $0x198] sm:$0xff] %v431_v51 }
  0x2c   : > { %434 = vst [vmem:[%s2394_s25 + $0x1a0] sm:$0xff] %v433_v52  ;;  %436 = vst [vmem:[%s2394_s25 + $0x1a8] sm:$0xff] %v435_v53  ;;  %v437_v54 = vld [vmem:[%s2389_s24 + $0x360] sm:$0xff]  ;;  %v439_v55 = vld [vmem:[%s2389_s24 + $0x368] sm:$0xff] }
  0x2d   : > { %v441_v56 = vld [vmem:[%s2389_s24 + $0x380] sm:$0xff]  ;;  %438 = vst [vmem:[%s2394_s25 + $0x1b0] sm:$0xff] %v437_v54  ;;  %440 = vst [vmem:[%s2394_s25 + $0x1b8] sm:$0xff] %v439_v55  ;;  %v443_v57 = vld [vmem:[%s2389_s24 + $0x388] sm:$0xff] }
  0x2e   : > { %442 = vst [vmem:[%s2394_s25 + $0x1c0] sm:$0xff] %v441_v56  ;;  %v445_v58 = vld [vmem:[%s2389_s24 + $0x3a0] sm:$0xff]  ;;  %v447_v59 = vld [vmem:[%s2389_s24 + $0x3a8] sm:$0xff]  ;;  %444 = vst [vmem:[%s2394_s25 + $0x1c8] sm:$0xff] %v443_v57 }
  0x2f   : > { %446 = vst [vmem:[%s2394_s25 + $0x1d0] sm:$0xff] %v445_v58  ;;  %448 = vst [vmem:[%s2394_s25 + $0x1d8] sm:$0xff] %v447_v59  ;;  %v449_v60 = vld [vmem:[%s2389_s24 + $0x3c0] sm:$0xff]  ;;  %v451_v61 = vld [vmem:[%s2389_s24 + $0x3c8] sm:$0xff] }
  0x30   : > { %v453_v62 = vld [vmem:[%s2389_s24 + $0x3e0] sm:$0xff]  ;;  %450 = vst [vmem:[%s2394_s25 + $0x1e0] sm:$0xff] %v449_v60  ;;  %452 = vst [vmem:[%s2394_s25 + $0x1e8] sm:$0xff] %v451_v61  ;;  %v455_v63 = vld [vmem:[%s2389_s24 + $0x3e8] sm:$0xff] }
  0x31   : > { %454 = vst [vmem:[%s2394_s25 + $0x1f0] sm:$0xff] %v453_v62  ;;  %456 = vst [vmem:[%s2394_s25 + $0x1f8] sm:$0xff] %v455_v63 }
  0x32 PF: > { %p1827_p6 = scmp.ge.s32.totalorder %s2290_s13, 1  ;;  %p479_p7 = scmp.lt.s32.totalorder %s2290_s13, 3 }
  0x34   : > { %p480_p8 = pnand %p1827_p6, %p479_p7 }
  0x35   : > { %s486_s26 = sand.u32 (!%p480_p8), 1, %s2274_s30   ;;  %s1829_s27 = sshll.u32 (!%p480_p8), %s2282_s11, 2 }
  0x36   : > { %483 = sbr.rel (%p480_p8) target bundleno = 1307 (0x51b), region = 75  ;;  %s1828_s28 = sshll.u32 (!%p480_p8), %s486_s26, 9 }
  0x37   : > { %p541_p9 = scmp.lt.s32.totalorder (!%p480_p8), %s1829_s27, 7  ;;  %s1830_s29 = sshll.u32 (!%p480_p8), %s2282_s11, 6 }
  0x38   : > { %p546_p10 = scmp.lt.s32.totalorder (!%p480_p8), %s1830_s29, 127  ;;  %s2537_s30 = scalar_lea.vmem (!%p480_p8), [#allocation4], %s1828_s28 }
  0x39   : > { %p1833_p11 = scmp.ne.s32.totalorder (!%p480_p8), %s2282_s11, 0 }
  0x3d   : > { %s2795_s27 = smov (!%p541_p9, %s1829_s27), 7  ;;  %s2797_s29 = smov (!%p546_p10, %s1830_s29), 127 }
  0x3e   : > { %s543_s19 = scalar_lea.vmem %s2780_s4, %s2795_s27  ;;  %s1968_s20 = sshll.u32 %s2797_s29, 3  ;;  %v557_v0 = vld [vmem:[%s2776_s0] sm:$0xff] (!%p1833_p11)  ;;  %v558_v1 = vld [vmem:[%s2776_s0 + $0x8] sm:$0xff] (!%p1833_p11)  ;;  %v559_v2 = vld [vmem:[%s2776_s0 + $0x10] sm:$0xff] (!%p1833_p11)  ;;  %v597_v23 = vlaneseq (!%p1833_p11) }
  0x3f   : > { %s2535_s23 = scalar_lea.vmem %s2781_s5, %s1968_s20  ;;  %556 = sbr.rel (%p1833_p11) target bundleno = 385 (0x181), region = 83  ;;  %v563_v3 = vadd.f32 (!%p1833_p11), %v558_v1, %v557_v0  ;;  %630 = vst [vmem:[#allocation2] sm:$0xff] (!%p1833_p11), %v557_v0  ;;  %631 = vst [vmem:[#allocation2 + $0x8] sm:$0xff] (!%p1833_p11), %v558_v1  ;;  %v560_v4 = vld [vmem:[%s2776_s0 + $0x18] sm:$0xff] (!%p1833_p11)  ;;  %v561_v30 = vld [vmem:[%s2777_s1] sm:$0x3] (!%p1833_p11) }
  0x40   : > { %632 = vst [vmem:[#allocation2 + $0x10] sm:$0xff] (!%p1833_p11), %v559_v2  ;;  %633 = vst [vmem:[#allocation2 + $0x18] sm:$0xff] (!%p1833_p11), %v560_v4  ;;  %v566_v5 = vadd.f32 (!%p1833_p11), %v560_v4, %v559_v2  ;;  %v598_v27 = vshrl.u32 (!%p1833_p11), %v597_v23, 7  ;;  %v562_v32 = vld [vmem:[%s2778_s2] sm:$0x3] (!%p1833_p11) }
  0x41   : > { %564 = vadd.xlane.f32.xlu0 (!%p1833_p11), %v563_v3 }
  0x42   : > { %v599_v28 = vsub.s32 (!%p1833_p11), 0, %v598_v27  ;;  %v603_v29 = vsub.s32 (!%p1833_p11), 1, %v598_v27 }
  0x44   : > { %v600_v33 = vrot.slane (!%p1833_p11), %v561_v30, %v599_v28  ;;  %v604_v34 = vrot.slane (!%p1833_p11), %v561_v30, %v603_v29  ;;  %v615_v38 = vrot.slane (!%p1833_p11), %v562_v32, %v599_v28  ;;  %v619_v39 = vrot.slane (!%p1833_p11), %v562_v32, %v603_v29 }
  0x45   : > { %567 = vadd.xlane.f32.xlu0 (!%p1833_p11), %v566_v5 }
  0xce   : > { %v565_v6 = vpop.xlane.xlu0 %564 }
  0xcf   : > { %v570_v7 = vmul.f32 0.00390625, %v565_v6 }
  0xd1   : > { %v572_v8 = vsub.f32 %v557_v0, %v570_v7  ;;  %v573_v9 = vsub.f32 %v558_v1, %v570_v7 }
  0xd2   : > { %v568_v10 = vpop.xlane.xlu0 %567 }
  0xd3   : > { %v571_v11 = vmul.f32 0.00390625, %v568_v10  ;;  %v576_v12 = vmul.f32 %v572_v8, %v572_v8  ;;  %v577_v13 = vmul.f32 %v573_v9, %v573_v9 }
  0xd5   : > { %v574_v14 = vsub.f32 %v559_v2, %v571_v11  ;;  %v575_v15 = vsub.f32 %v560_v4, %v571_v11  ;;  %v580_v16 = vadd.f32 %v577_v13, %v576_v12 }
  0xd7   : > { %581 = vadd.xlane.f32.xlu1 %v580_v16  ;;  %v578_v17 = vmul.f32 %v574_v14, %v574_v14  ;;  %v579_v18 = vmul.f32 %v575_v15, %v575_v15 }
  0xd9   : > { %v583_v19 = vadd.f32 %v579_v18, %v578_v17 }
  0xdb   : > { %584 = vadd.xlane.f32.xlu1 %v583_v19 }
 0x164   : > { %v582_v20 = vpop.xlane.xlu1 %581 }
 0x165   : > { %v586_v21 = vmul.f32 0.00390625, %v582_v20 }
 0x167   : > { %v588_v22 = vadd.f32 1e-05, %v586_v21 }
 0x168   : > { %v585_v24 = vpop.xlane.xlu1 %584 }
 0x169   : > { %2022 = vrsqrt.f32 %v588_v22  ;;  %v587_v25 = vmul.f32 0.00390625, %v585_v24 }
 0x16b   : > { %v589_v26 = vadd.f32 1e-05, %v587_v25 }
 0x16d   : > { %2024 = vrsqrt.f32 %v589_v26 }
 0x173   : > { %v2023_v31 = vpop.eup %2022 }
 0x174   : > { %v592_v35 = vmul.f32 %v2023_v31, %v572_v8  ;;  %v593_v36 = vmul.f32 %v2023_v31, %v573_v9 }
 0x176   : > { %v607_v40 = vmul.f32 %v600_v33, %v592_v35  ;;  %v608_v41 = vmul.f32 %v604_v34, %v593_v36 }
 0x177   : > { %v2025_v37 = vpop.eup %2024 }
 0x178   : > { %v594_v42 = vmul.f32 %v2025_v37, %v574_v14  ;;  %v595_v43 = vmul.f32 %v2025_v37, %v575_v15  ;;  %v622_v46 = vadd.f32 %v615_v38, %v607_v40  ;;  %v623_v47 = vadd.f32 %v619_v39, %v608_v41 }
 0x17a   : > { %v609_v44 = vmul.f32 %v600_v33, %v594_v42  ;;  %v610_v45 = vmul.f32 %v604_v34, %v595_v43 }
 0x17c   : > { %v624_v48 = vadd.f32 %v615_v38, %v609_v44  ;;  %v625_v49 = vadd.f32 %v619_v39, %v610_v45 }
 0x17e   : > { %v626_v50 = vpack.c.bf16 %v624_v48, %v622_v46  ;;  %v627_v51 = vpack.c.bf16 %v625_v49, %v623_v47 }
 0x180   : > { %628 = vst [vmem:[#allocation3] sm:$0xff] %v626_v50  ;;  %629 = vst [vmem:[#allocation3 + $0x8] sm:$0xff] %v627_v51 }
 0x181 PF: > { %v2026_v52 = vld [vmem:[%s2537_s30 + $0x4] ss:$16 sps:$4 sm:$0xff]   ;;  %v2028_v53 = vld [vmem:[%s2537_s30] ss:$16 sps:$4 sm:$0xff]   ;;  %v2076_v31 = vld [vmem:[%s2537_s30 + $0xc] ss:$16 sps:$4 sm:$0xff]  }
 0x182   : > { %1042 = vmatprep.subr.bf16.mxu1 %v2026_v52  ;;  %v2029_v54 = vld [vmem:[%s2537_s30 + $0x24] ss:$16 sps:$4 sm:$0xff]   ;;  %v2031_v55 = vld [vmem:[%s2537_s30 + $0x20] ss:$16 sps:$4 sm:$0xff]   ;;  %v2074_v34 = vld [vmem:[%s2537_s30 + $0x8] ss:$16 sps:$4 sm:$0xff]  }
 0x183   : > { %1043 = vmatpush1.bf16.msra.mxu1 %v2028_v53  ;;  %v2032_v56 = vld [vmem:[%s2537_s30 + $0x44] ss:$16 sps:$4 sm:$0xff]   ;;  %v2034_v57 = vld [vmem:[%s2537_s30 + $0x40] ss:$16 sps:$4 sm:$0xff]   ;;  %v2079_v35 = vld [vmem:[%s2537_s30 + $0x2c] ss:$16 sps:$4 sm:$0xff]  }
 0x184   : > { %1044 = vmatprep.subr.bf16.mxu1 %v2029_v54  ;;  %v2035_v58 = vld [vmem:[%s2537_s30 + $0x64] ss:$16 sps:$4 sm:$0xff]   ;;  %v2037_v59 = vld [vmem:[%s2537_s30 + $0x60] ss:$16 sps:$4 sm:$0xff]   ;;  %v2077_v38 = vld [vmem:[%s2537_s30 + $0x28] ss:$16 sps:$4 sm:$0xff]  }
 0x185   : > { %v2038_v60 = vld [vmem:[%s2537_s30 + $0x84] ss:$16 sps:$4 sm:$0xff]   ;;  %v2040_v61 = vld [vmem:[%s2537_s30 + $0x80] ss:$16 sps:$4 sm:$0xff]   ;;  %v2082_v39 = vld [vmem:[%s2537_s30 + $0x4c] ss:$16 sps:$4 sm:$0xff]  }
 0x186   : > { %v2041_v62 = vld [vmem:[%s2537_s30 + $0xa4] ss:$16 sps:$4 sm:$0xff]   ;;  %v2043_v63 = vld [vmem:[%s2537_s30 + $0xa0] ss:$16 sps:$4 sm:$0xff]   ;;  %v2080_v42 = vld [vmem:[%s2537_s30 + $0x48] ss:$16 sps:$4 sm:$0xff]  }
 0x187   : > { %1045 = vmatpush1.bf16.msra.mxu1 %v2031_v55  ;;  %v2044_v0 = vld [vmem:[%s2537_s30 + $0xc4] ss:$16 sps:$4 sm:$0xff]   ;;  %v2571_v1 = vld [vmem:[#allocation3 + $0x8] sm:$0xff]  ;;  %v2046_v2 = vld [vmem:[%s2537_s30 + $0xc0] ss:$16 sps:$4 sm:$0xff]   ;;  %p1962_p12 = scmp.ne.s32.totalorder %s2282_s11, 1 }
 0x188   : > { %1046 = vmatprep.subr.bf16.mxu1 %v2032_v56  ;;  %1074 = vmatprep.mubr.bf16.mxu1 %v2571_v1  ;;  %v2047_v3 = vld [vmem:[%s2537_s30 + $0xe4] ss:$16 sps:$4 sm:$0xff]   ;;  %v2049_v4 = vld [vmem:[%s2537_s30 + $0xe0] ss:$16 sps:$4 sm:$0xff]   ;;  %v2085_v43 = vld [vmem:[%s2537_s30 + $0x6c] ss:$16 sps:$4 sm:$0xff]  }
 0x189   : > { %v2050_v5 = vld [vmem:[%s2537_s30 + $0x104] ss:$16 sps:$4 sm:$0xff]   ;;  %v2052_v6 = vld [vmem:[%s2537_s30 + $0x100] ss:$16 sps:$4 sm:$0xff]   ;;  %v2083_v46 = vld [vmem:[%s2537_s30 + $0x68] ss:$16 sps:$4 sm:$0xff]  }
 0x18a   : > { %v2053_v7 = vld [vmem:[%s2537_s30 + $0x124] ss:$16 sps:$4 sm:$0xff]   ;;  %v2055_v8 = vld [vmem:[%s2537_s30 + $0x120] ss:$16 sps:$4 sm:$0xff]   ;;  %v2088_v47 = vld [vmem:[%s2537_s30 + $0x8c] ss:$16 sps:$4 sm:$0xff]  }
 0x18b   : > { %1047 = vmatpush1.bf16.msra.mxu1 %v2034_v57  ;;  %v2056_v9 = vld [vmem:[%s2537_s30 + $0x144] ss:$16 sps:$4 sm:$0xff]   ;;  %v2058_v10 = vld [vmem:[%s2537_s30 + $0x140] ss:$16 sps:$4 sm:$0xff]   ;;  %v2086_v50 = vld [vmem:[%s2537_s30 + $0x88] ss:$16 sps:$4 sm:$0xff]  }
 0x18c   : > { %1048 = vmatprep.subr.bf16.mxu1 %v2035_v58  ;;  %v2059_v11 = vld [vmem:[%s2537_s30 + $0x164] ss:$16 sps:$4 sm:$0xff]   ;;  %v2061_v12 = vld [vmem:[%s2537_s30 + $0x160] ss:$16 sps:$4 sm:$0xff]   ;;  %v2091_v51 = vld [vmem:[%s2537_s30 + $0xac] ss:$16 sps:$4 sm:$0xff]  }
 0x18d   : > { %v2062_v13 = vld [vmem:[%s2537_s30 + $0x184] ss:$16 sps:$4 sm:$0xff]   ;;  %v2124_v15 = vld [vmem:[%s2535_s23] ss:$8 sps:$4 sm:$0xff]   ;;  %v2127_v18 = vld [vmem:[%s2535_s23 + $0x10] ss:$8 sps:$4 sm:$0xff]  }
 0x18e   : > { %v2122_v14 = vld [vmem:[%s2535_s23 + $0x4] ss:$8 sps:$4 sm:$0xff]   ;;  %v2125_v16 = vld [vmem:[%s2535_s23 + $0x14] ss:$8 sps:$4 sm:$0xff]   ;;  %v2064_v17 = vld [vmem:[%s2537_s30 + $0x180] ss:$16 sps:$4 sm:$0xff]  }
 0x18f   : > { %1049 = vmatpush1.bf16.msra.mxu1 %v2037_v59  ;;  %1528 = vmatprep.subr.bf16.mxu0 %v2122_v14  ;;  %v2065_v19 = vld [vmem:[%s2537_s30 + $0x1a4] ss:$16 sps:$4 sm:$0xff]   ;;  %v2067_v21 = vld [vmem:[%s2537_s30 + $0x1a0] ss:$16 sps:$4 sm:$0xff]   ;;  %v2089_v54 = vld [vmem:[%s2537_s30 + $0xa8] ss:$16 sps:$4 sm:$0xff]  }
 0x190   : > { %1050 = vmatprep.subr.bf16.mxu1 %v2038_v60  ;;  %1529 = vmatpush1.bf16.msra.mxu0 %v2124_v15  ;;  %v2128_v20 = vld [vmem:[%s2535_s23 + $0x24] ss:$8 sps:$4 sm:$0xff]   ;;  %v2130_v22 = vld [vmem:[%s2535_s23 + $0x20] ss:$8 sps:$4 sm:$0xff]   ;;  %v2131_v24 = vld [vmem:[%s2535_s23 + $0x34] ss:$8 sps:$4 sm:$0xff]  }
 0x191   : > { %1530 = vmatprep.subr.bf16.mxu0 %v2125_v16  ;;  %v2068_v23 = vld [vmem:[%s2537_s30 + $0x1c4] ss:$16 sps:$4 sm:$0xff]   ;;  %v2070_v25 = vld [vmem:[%s2537_s30 + $0x1c0] ss:$16 sps:$4 sm:$0xff]   ;;  %v2094_v55 = vld [vmem:[%s2537_s30 + $0xcc] ss:$16 sps:$4 sm:$0xff]  }
 0x192   : > { %v2133_v26 = vld [vmem:[%s2535_s23 + $0x30] ss:$8 sps:$4 sm:$0xff]   ;;  %v2071_v27 = vld [vmem:[%s2537_s30 + $0x1e4] ss:$16 sps:$4 sm:$0xff]   ;;  %v2136_v30 = vld [vmem:[%s2535_s23 + $0x40] ss:$8 sps:$4 sm:$0xff]  }
 0x193   : > { %1051 = vmatpush1.bf16.msra.mxu1 %v2040_v61  ;;  %v2134_v28 = vld [vmem:[%s2535_s23 + $0x44] ss:$8 sps:$4 sm:$0xff]   ;;  %v2073_v29 = vld [vmem:[%s2537_s30 + $0x1e0] ss:$16 sps:$4 sm:$0xff]   ;;  %v2137_v32 = vld [vmem:[%s2535_s23 + $0x54] ss:$8 sps:$4 sm:$0xff]  }
 0x194   : > { %1052 = vmatprep.subr.bf16.mxu1 %v2041_v62  ;;  %1531 = vmatpush1.bf16.msra.mxu0 %v2127_v18  ;;  %v2605_v33 = vld [vmem:[#allocation3] sm:$0xff]  ;;  %v2139_v36 = vld [vmem:[%s2535_s23 + $0x50] ss:$8 sps:$4 sm:$0xff]   ;;  %v2143_v41 = vld [vmem:[%s2535_s23 + $0x74] ss:$8 sps:$4 sm:$0xff]  }
 0x195   : > { %1532 = vmatprep.subr.bf16.mxu0 %v2128_v20  ;;  %v2140_v37 = vld [vmem:[%s2535_s23 + $0x64] ss:$8 sps:$4 sm:$0xff]   ;;  %v2142_v40 = vld [vmem:[%s2535_s23 + $0x60] ss:$8 sps:$4 sm:$0xff]   ;;  %v2145_v44 = vld [vmem:[%s2535_s23 + $0x70] ss:$8 sps:$4 sm:$0xff]  }
 0x196   : > { %v2146_v45 = vld [vmem:[%s2535_s23 + $0x84] ss:$8 sps:$4 sm:$0xff]   ;;  %v2148_v48 = vld [vmem:[%s2535_s23 + $0x80] ss:$8 sps:$4 sm:$0xff]   ;;  %v2149_v49 = vld [vmem:[%s2535_s23 + $0x94] ss:$8 sps:$4 sm:$0xff]  }
 0x197   : > { %1053 = vmatpush1.bf16.msra.mxu1 %v2043_v63  ;;  %v2151_v52 = vld [vmem:[%s2535_s23 + $0x90] ss:$8 sps:$4 sm:$0xff]   ;;  %v2152_v53 = vld [vmem:[%s2535_s23 + $0xa4] ss:$8 sps:$4 sm:$0xff]   ;;  %v2154_v56 = vld [vmem:[%s2535_s23 + $0xa0] ss:$8 sps:$4 sm:$0xff]  }
 0x198   : > { %1054 = vmatprep.subr.bf16.mxu1 %v2044_v0  ;;  %1533 = vmatpush1.bf16.msra.mxu0 %v2130_v22  ;;  %v2155_v57 = vld [vmem:[%s2535_s23 + $0xb4] ss:$8 sps:$4 sm:$0xff]   ;;  %v2092_v58 = vld [vmem:[%s2537_s30 + $0xc8] ss:$16 sps:$4 sm:$0xff]   ;;  %v2158_v61 = vld [vmem:[%s2535_s23 + $0xc4] ss:$8 sps:$4 sm:$0xff]  }
 0x199   : > { %1534 = vmatprep.subr.bf16.mxu0 %v2131_v24  ;;  %v2097_v59 = vld [vmem:[%s2537_s30 + $0xec] ss:$16 sps:$4 sm:$0xff]   ;;  %v2157_v60 = vld [vmem:[%s2535_s23 + $0xb0] ss:$8 sps:$4 sm:$0xff]   ;;  %v2160_v0 = vld [vmem:[%s2535_s23 + $0xc0] ss:$8 sps:$4 sm:$0xff]  }
 0x19a   : > { %v2095_v62 = vld [vmem:[%s2537_s30 + $0xe8] ss:$16 sps:$4 sm:$0xff]   ;;  %v2100_v63 = vld [vmem:[%s2537_s30 + $0x10c] ss:$16 sps:$4 sm:$0xff]  }
 0x19b   : > { %1055 = vmatpush1.bf16.msra.mxu1 %v2046_v2  ;;  %v2098_v2 = vld [vmem:[%s2537_s30 + $0x108] ss:$16 sps:$4 sm:$0xff]   ;;  %v2121_v15 = vld [vmem:[%s2537_s30 + $0x1ec] ss:$16 sps:$4 sm:$0xff]  }
 0x19c   : > { %1056 = vmatprep.subr.bf16.mxu1 %v2047_v3  ;;  %1535 = vmatpush1.bf16.msra.mxu0 %v2133_v26  ;;  %v2103_v3 = vld [vmem:[%s2537_s30 + $0x12c] ss:$16 sps:$4 sm:$0xff]   ;;  %v2116_v14 = vld [vmem:[%s2537_s30 + $0x1c8] ss:$16 sps:$4 sm:$0xff]   ;;  %v2673_v26 = vld [vmem:[%s543_s19] sm:$0xf] }
 0x19d   : > { %1536 = vmatprep.subr.bf16.mxu0 %v2134_v28  ;;  %v2119_v16 = vld [vmem:[%s2537_s30 + $0x1e8] ss:$16 sps:$4 sm:$0xff]   ;;  %v2164_v18 = vld [vmem:[%s2535_s23 + $0xe4] ss:$8 sps:$4 sm:$0xff]   ;;  %v2167_v20 = vld [vmem:[%s2535_s23 + $0xf4] ss:$8 sps:$4 sm:$0xff]  }
 0x19e   : > { %v2172_v22 = vld [vmem:[%s2535_s23 + $0x104] ss:$8 sps:$4 sm:$0xff]  }
 0x19f   : > { %1057 = vmatpush1.bf16.msra.mxu1 %v2049_v4  ;;  %v2101_v4 = vld [vmem:[%s2537_s30 + $0x128] ss:$16 sps:$4 sm:$0xff]  }
 0x1a0   : > { %1058 = vmatprep.subr.bf16.mxu1 %v2050_v5  ;;  %1537 = vmatpush1.bf16.msra.mxu0 %v2136_v30  ;;  %v2106_v5 = vld [vmem:[%s2537_s30 + $0x14c] ss:$16 sps:$4 sm:$0xff]  }
 0x1a1   : > { %1538 = vmatprep.subr.bf16.mxu0 %v2137_v32 }
 0x1a3   : > { %1059 = vmatpush1.bf16.msra.mxu1 %v2052_v6  ;;  %v2104_v6 = vld [vmem:[%s2537_s30 + $0x148] ss:$16 sps:$4 sm:$0xff]  }
 0x1a4   : > { %1060 = vmatprep.subr.bf16.mxu1 %v2053_v7  ;;  %1539 = vmatpush1.bf16.msra.mxu0 %v2139_v36  ;;  %v2109_v7 = vld [vmem:[%s2537_s30 + $0x16c] ss:$16 sps:$4 sm:$0xff]  }
 0x1a5   : > { %1540 = vmatprep.subr.bf16.mxu0 %v2140_v37 }
 0x1a7   : > { %1061 = vmatpush1.bf16.msra.mxu1 %v2055_v8  ;;  %v2107_v8 = vld [vmem:[%s2537_s30 + $0x168] ss:$16 sps:$4 sm:$0xff]  }
 0x1a8   : > { %1062 = vmatprep.subr.bf16.mxu1 %v2056_v9  ;;  %1541 = vmatpush1.bf16.msra.mxu0 %v2142_v40  ;;  %v2112_v9 = vld [vmem:[%s2537_s30 + $0x18c] ss:$16 sps:$4 sm:$0xff]  }
 0x1a9   : > { %1542 = vmatprep.subr.bf16.mxu0 %v2143_v41 }
 0x1ab   : > { %1063 = vmatpush1.bf16.msra.mxu1 %v2058_v10  ;;  %v2110_v10 = vld [vmem:[%s2537_s30 + $0x188] ss:$16 sps:$4 sm:$0xff]  }
 0x1ac   : > { %1064 = vmatprep.subr.bf16.mxu1 %v2059_v11  ;;  %1543 = vmatpush1.bf16.msra.mxu0 %v2145_v44  ;;  %v2115_v11 = vld [vmem:[%s2537_s30 + $0x1ac] ss:$16 sps:$4 sm:$0xff]   ;;  %v2170_v44 = vld [vmem:[%s2535_s23 + $0x100] ss:$8 sps:$4 sm:$0xff]  }
 0x1ad   : > { %1544 = vmatprep.subr.bf16.mxu0 %v2146_v45  ;;  %v2175_v45 = vld [vmem:[%s2535_s23 + $0x114] ss:$8 sps:$4 sm:$0xff]  }
 0x1af   : > { %1065 = vmatpush1.bf16.msra.mxu1 %v2061_v12  ;;  %v2113_v12 = vld [vmem:[%s2537_s30 + $0x1a8] ss:$16 sps:$4 sm:$0xff]  }
 0x1b0   : > { %1066 = vmatprep.subr.bf16.mxu1 %v2062_v13  ;;  %1545 = vmatpush1.bf16.msra.mxu0 %v2148_v48  ;;  %v2118_v13 = vld [vmem:[%s2537_s30 + $0x1cc] ss:$16 sps:$4 sm:$0xff]   ;;  %v2176_v48 = vld [vmem:[%s2535_s23 + $0x120] ss:$8 sps:$4 sm:$0xff]  }
 0x1b1   : > { %1546 = vmatprep.subr.bf16.mxu0 %v2149_v49  ;;  %v2181_v49 = vld [vmem:[%s2535_s23 + $0x134] ss:$8 sps:$4 sm:$0xff]  }
 0x1b3   : > { %1067 = vmatpush1.bf16.msra.mxu1 %v2064_v17  ;;  %v2163_v17 = vld [vmem:[%s2535_s23 + $0xd0] ss:$8 sps:$4 sm:$0xff]  }
 0x1b4   : > { %1068 = vmatprep.subr.bf16.mxu1 %v2065_v19  ;;  %1547 = vmatpush1.bf16.msra.mxu0 %v2151_v52  ;;  %v2166_v19 = vld [vmem:[%s2535_s23 + $0xe0] ss:$8 sps:$4 sm:$0xff]  }
 0x1b5   : > { %1548 = vmatprep.subr.bf16.mxu0 %v2152_v53  ;;  %v2182_v52 = vld [vmem:[%s2535_s23 + $0x140] ss:$8 sps:$4 sm:$0xff]   ;;  %v2187_v53 = vld [vmem:[%s2535_s23 + $0x154] ss:$8 sps:$4 sm:$0xff]  }
 0x1b7   : > { %1069 = vmatpush1.bf16.msra.mxu1 %v2067_v21  ;;  %v2169_v21 = vld [vmem:[%s2535_s23 + $0xf0] ss:$8 sps:$4 sm:$0xff]  }
 0x1b8   : > { %1070 = vmatprep.subr.bf16.mxu1 %v2068_v23  ;;  %1549 = vmatpush1.bf16.msra.mxu0 %v2154_v56  ;;  %v702_v23 = vlaneseq  ;;  %v2188_v56 = vld [vmem:[%s2535_s23 + $0x160] ss:$8 sps:$4 sm:$0xff]  }
 0x1b9   : > { %1550 = vmatprep.subr.bf16.mxu0 %v2155_v57  ;;  %v2193_v57 = vld [vmem:[%s2535_s23 + $0x174] ss:$8 sps:$4 sm:$0xff]  }
 0x1ba   : > { %v2663_v24 = vshrl.u32 %v702_v23, 7 }
 0x1bb   : > { %1071 = vmatpush1.bf16.msra.mxu1 %v2070_v25 }
 0x1bc   : > { %1072 = vmatprep.subr.bf16.mxu1 %v2071_v27  ;;  %1551 = vmatpush1.bf16.msra.mxu0 %v2157_v60  ;;  %v2666_v25 = vsub.s32 0, %v2663_v24  ;;  %v2676_v27 = vsub.s32 1, %v2663_v24  ;;  %v2194_v60 = vld [vmem:[%s2535_s23 + $0x180] ss:$8 sps:$4 sm:$0xff]  }
 0x1bd   : > { %1552 = vmatprep.subr.bf16.mxu0 %v2158_v61  ;;  %v2199_v61 = vld [vmem:[%s2535_s23 + $0x194] ss:$8 sps:$4 sm:$0xff]  }
 0x1be   : > { %v705_v28 = vrot.slane %v2673_v26, %v2666_v25 }
 0x1bf   : > { %1073 = vmatpush1.bf16.msra.mxu1 %v2073_v29  ;;  %v709_v29 = vrot.slane %v2673_v26, %v2676_v27 }
 0x1c0   : > { %1085 = vmatprep.subr.bf16.mxu1 %v2076_v31  ;;  %1553 = vmatpush1.bf16.msra.mxu0 %v2160_v0  ;;  %v2200_v0 = vld [vmem:[%s2535_s23 + $0x1a0] ss:$8 sps:$4 sm:$0xff]  }
 0x1c2   : > { %1075 = vmatmul.mubr.bf16.vlgmr.msra.gmra.mrb[0].mxu1 %v2605_v33 }
 0x1c3   : > { %1086 = vmatpush1.bf16.msra.mxu1 %v2074_v34  ;;  %1117 = vmatprep.mubr.bf16.mxu1 %v2571_v1  ;;  %v2161_v1 = vld [vmem:[%s2535_s23 + $0xd4] ss:$8 sps:$4 sm:$0xff]  }
 0x1c4   : > { %1087 = vmatprep.subr.bf16.mxu1 %v2079_v35  ;;  %1554 = vmatprep.subr.bf16.mxu0 %v2161_v1  ;;  %v2205_v1 = vld [vmem:[%s2535_s23 + $0x1b4] ss:$8 sps:$4 sm:$0xff]  }
 0x1c5   : > { %1555 = vmatpush1.bf16.msra.mxu0 %v2163_v17 }
 0x1c6   : > { %1556 = vmatprep.subr.bf16.mxu0 %v2164_v18 }
 0x1c7   : > { %1088 = vmatpush1.bf16.msra.mxu1 %v2077_v38 }
 0x1c8   : > { %1089 = vmatprep.subr.bf16.mxu1 %v2082_v39 }
 0x1c9   : > { %1557 = vmatpush1.bf16.msra.mxu0 %v2166_v19 }
 0x1ca   : > { %1558 = vmatprep.subr.bf16.mxu0 %v2167_v20 }
 0x1cb   : > { %1090 = vmatpush1.bf16.msra.mxu1 %v2080_v42 }
 0x1cc   : > { %1091 = vmatprep.subr.bf16.mxu1 %v2085_v43 }
 0x1cd   : > { %1559 = vmatpush1.bf16.msra.mxu0 %v2169_v21 }
 0x1ce   : > { %1571 = vmatprep.subr.bf16.mxu0 %v2172_v22  ;;  %v2215_v22 = vld [vmem:[%s2535_s23 + $0x1f0] ss:$8 sps:$4 sm:$0xff]  }
 0x1cf   : > { %1092 = vmatpush1.bf16.msra.mxu1 %v2083_v46  ;;  %v2173_v46 = vld [vmem:[%s2535_s23 + $0x110] ss:$8 sps:$4 sm:$0xff]  }
 0x1d0   : > { %1093 = vmatprep.subr.bf16.mxu1 %v2088_v47  ;;  %v2178_v47 = vld [vmem:[%s2535_s23 + $0x124] ss:$8 sps:$4 sm:$0xff]  }
 0x1d3   : > { %1094 = vmatpush1.bf16.msra.mxu1 %v2086_v50  ;;  %v2179_v50 = vld [vmem:[%s2535_s23 + $0x130] ss:$8 sps:$4 sm:$0xff]  }
 0x1d4   : > { %1095 = vmatprep.subr.bf16.mxu1 %v2091_v51  ;;  %v2184_v51 = vld [vmem:[%s2535_s23 + $0x144] ss:$8 sps:$4 sm:$0xff]  }
 0x1d7   : > { %1096 = vmatpush1.bf16.msra.mxu1 %v2089_v54  ;;  %v2185_v54 = vld [vmem:[%s2535_s23 + $0x150] ss:$8 sps:$4 sm:$0xff]  }
 0x1d8   : > { %1097 = vmatprep.subr.bf16.mxu1 %v2094_v55  ;;  %v2190_v55 = vld [vmem:[%s2535_s23 + $0x164] ss:$8 sps:$4 sm:$0xff]  }
 0x1db   : > { %1098 = vmatpush1.bf16.msra.mxu1 %v2092_v58  ;;  %v2191_v58 = vld [vmem:[%s2535_s23 + $0x170] ss:$8 sps:$4 sm:$0xff]  }
 0x1dc   : > { %1099 = vmatprep.subr.bf16.mxu1 %v2097_v59  ;;  %v2196_v59 = vld [vmem:[%s2535_s23 + $0x184] ss:$8 sps:$4 sm:$0xff]  }
 0x1df   : > { %1100 = vmatpush1.bf16.msra.mxu1 %v2095_v62  ;;  %v2197_v62 = vld [vmem:[%s2535_s23 + $0x190] ss:$8 sps:$4 sm:$0xff]  }
 0x1e0   : > { %1101 = vmatprep.subr.bf16.mxu1 %v2100_v63  ;;  %v2202_v63 = vld [vmem:[%s2535_s23 + $0x1a4] ss:$8 sps:$4 sm:$0xff]  }
 0x1e3   : > { %1102 = vmatpush1.bf16.msra.mxu1 %v2098_v2  ;;  %v2203_v2 = vld [vmem:[%s2535_s23 + $0x1b0] ss:$8 sps:$4 sm:$0xff]  }
 0x1e4   : > { %1103 = vmatprep.subr.bf16.mxu1 %v2103_v3  ;;  %v2208_v3 = vld [vmem:[%s2535_s23 + $0x1c4] ss:$8 sps:$4 sm:$0xff]  }
 0x1e7   : > { %1104 = vmatpush1.bf16.msra.mxu1 %v2101_v4  ;;  %v2206_v4 = vld [vmem:[%s2535_s23 + $0x1c0] ss:$8 sps:$4 sm:$0xff]  }
 0x1e8   : > { %1105 = vmatprep.subr.bf16.mxu1 %v2106_v5  ;;  %v2211_v5 = vld [vmem:[%s2535_s23 + $0x1d4] ss:$8 sps:$4 sm:$0xff]  }
 0x1eb   : > { %1106 = vmatpush1.bf16.msra.mxu1 %v2104_v6  ;;  %v712_v6 = vsub.s32 2, %v2663_v24 }
 0x1ec   : > { %1107 = vmatprep.subr.bf16.mxu1 %v2109_v7  ;;  %v716_v7 = vsub.s32 3, %v2663_v24 }
 0x1ef   : > { %1108 = vmatpush1.bf16.msra.mxu1 %v2107_v8  ;;  %v2209_v8 = vld [vmem:[%s2535_s23 + $0x1d0] ss:$8 sps:$4 sm:$0xff]  }
 0x1f0   : > { %1109 = vmatprep.subr.bf16.mxu1 %v2112_v9  ;;  %v713_v9 = vrot.slane %v2673_v26, %v712_v6 }
 0x1f3   : > { %1110 = vmatpush1.bf16.msra.mxu1 %v2110_v10  ;;  %v2214_v10 = vld [vmem:[%s2535_s23 + $0x1e4] ss:$8 sps:$4 sm:$0xff]  }
 0x1f4   : > { %1111 = vmatprep.subr.bf16.mxu1 %v2115_v11  ;;  %v717_v11 = vrot.slane %v2673_v26, %v716_v7 }
 0x1f7   : > { %1112 = vmatpush1.bf16.msra.mxu1 %v2113_v12 }
 0x1f8   : > { %1113 = vmatprep.subr.bf16.mxu1 %v2118_v13  ;;  %v2212_v13 = vld [vmem:[%s2535_s23 + $0x1e0] ss:$8 sps:$4 sm:$0xff]  }
 0x1fb   : > { %1114 = vmatpush1.bf16.msra.mxu1 %v2116_v14 }
 0x1fc   : > { %1115 = vmatprep.subr.bf16.mxu1 %v2121_v15 }
 0x1ff   : > { %1116 = vmatpush1.bf16.msra.mxu1 %v2119_v16  ;;  %v2217_v16 = vld [vmem:[%s2535_s23 + $0x1f4] ss:$8 sps:$4 sm:$0xff]  }
 0x202   : > { %1118 = vmatmul.mubr.bf16.vlgmr.msra.gmra.mrb[4].mxu1 %v2605_v33 }
 0x295   : > { %v1076_v30 = vpop.f32.mrb[0].mxu1 }
 0x296   : > { %v1077_v31 = vadd.f32 %v1076_v30, %v705_v28  ;;  %v1078_v32 = vpop.f32.mrb[1].mxu1 }
 0x297   : > { %v1079_v33 = vadd.f32 %v1078_v32, %v709_v29  ;;  %v1080_v34 = vpop.f32.mrb[2].mxu1  ;;  %v1137_v32 = vld [vmem:[#allocation2 + $0x8] sm:$0xff] }
 0x298   : > { %v1128_v35 = vmax.f32 %v1077_v31, 0.0  ;;  %v1081_v36 = vadd.f32 %v1080_v34, %v705_v28  ;;  %v1082_v37 = vpop.f32.mrb[3].mxu1  ;;  %v1136_v31 = vld [vmem:[#allocation2] sm:$0xff]  ;;  %v1138_v34 = vld [vmem:[#allocation2 + $0x10] sm:$0xff] }
 0x299   : > { %v1083_v38 = vadd.f32 %v1082_v37, %v709_v29  ;;  %v1129_v40 = vmax.f32 %v1079_v33, 0.0  ;;  %v1139_v37 = vld [vmem:[#allocation2 + $0x18] sm:$0xff] }
 0x29a   : > { %v1132_v39 = vmax.f32 %v1081_v36, 0.0 }
 0x29b   : > { %v1133_v41 = vmax.f32 %v1083_v38, 0.0 }
 0x29c   : > { %v1140_v42 = vpack.c.bf16 %v1132_v39, %v1128_v35 }
 0x29d   : > { %v1141_v43 = vpack.c.bf16 %v1133_v41, %v1129_v40 }
 0x29f   : > { %1560 = vmatprep.mubr.bf16.mxu0 %v1141_v43 }
 0x2a0   : > { %1561 = vmatmul.mubr.bf16.vlgmr.msra.gmra.mrb[0].mxu0 %v1140_v42 }
 0x2a1   : > { %1572 = vmatpush1.bf16.msra.mxu0 %v2170_v44 }
 0x2a2   : > { %1573 = vmatprep.subr.bf16.mxu0 %v2175_v45  ;;  %v1630_v45 = vld [vmem:[%s2782_s6] sm:$0x3] (!%p1962_p12) }
 0x2a5   : > { %1574 = vmatpush1.bf16.msra.mxu0 %v2173_v46  ;;  %v1635_v46 = vrot.slane (!%p1962_p12), %v1630_v45, %v2666_v25 }
 0x2a6   : > { %1575 = vmatprep.subr.bf16.mxu0 %v2178_v47  ;;  %v1639_v47 = vrot.slane (!%p1962_p12), %v1630_v45, %v2676_v27 }
 0x2a9   : > { %1576 = vmatpush1.bf16.msra.mxu0 %v2176_v48 }
 0x2aa   : > { %1577 = vmatprep.subr.bf16.mxu0 %v2181_v49 }
 0x2ad   : > { %1578 = vmatpush1.bf16.msra.mxu0 %v2179_v50 }
 0x2ae   : > { %1579 = vmatprep.subr.bf16.mxu0 %v2184_v51 }
 0x2b1   : > { %1580 = vmatpush1.bf16.msra.mxu0 %v2182_v52 }
 0x2b2   : > { %1581 = vmatprep.subr.bf16.mxu0 %v2187_v53 }
 0x2b5   : > { %1582 = vmatpush1.bf16.msra.mxu0 %v2185_v54 }
 0x2b6   : > { %1583 = vmatprep.subr.bf16.mxu0 %v2190_v55 }
 0x2b9   : > { %1584 = vmatpush1.bf16.msra.mxu0 %v2188_v56 }
 0x2ba   : > { %1585 = vmatprep.subr.bf16.mxu0 %v2193_v57 }
 0x2bd   : > { %1586 = vmatpush1.bf16.msra.mxu0 %v2191_v58 }
 0x2be   : > { %1587 = vmatprep.subr.bf16.mxu0 %v2196_v59 }
 0x2c1   : > { %1588 = vmatpush1.bf16.msra.mxu0 %v2194_v60 }
 0x2c2   : > { %1589 = vmatprep.subr.bf16.mxu0 %v2199_v61 }
 0x2c5   : > { %1590 = vmatpush1.bf16.msra.mxu0 %v2197_v62 }
 0x2c6   : > { %1591 = vmatprep.subr.bf16.mxu0 %v2202_v63 }
 0x2c9   : > { %1592 = vmatpush1.bf16.msra.mxu0 %v2200_v0 }
 0x2ca   : > { %1593 = vmatprep.subr.bf16.mxu0 %v2205_v1 }
 0x2cd   : > { %1594 = vmatpush1.bf16.msra.mxu0 %v2203_v2 }
 0x2ce   : > { %1595 = vmatprep.subr.bf16.mxu0 %v2208_v3 }
 0x2d1   : > { %1596 = vmatpush1.bf16.msra.mxu0 %v2206_v4 }
 0x2d2   : > { %1597 = vmatprep.subr.bf16.mxu0 %v2211_v5 }
 0x2d5   : > { %v1119_v12 = vpop.f32.mrb[4].mxu1  ;;  %1598 = vmatpush1.bf16.msra.mxu0 %v2209_v8 }
 0x2d6   : > { %v1120_v14 = vadd.f32 %v1119_v12, %v713_v9  ;;  %v1121_v15 = vpop.f32.mrb[5].mxu1  ;;  %1599 = vmatprep.subr.bf16.mxu0 %v2214_v10  ;;  %v1646_v12 = vld [vmem:[%s2783_s7] sm:$0x3] (!%p1962_p12) }
 0x2d7   : > { %v1122_v17 = vadd.f32 %v1121_v15, %v717_v11  ;;  %v1123_v18 = vpop.f32.mrb[6].mxu1  ;;  %v1689_v15 = vrot.slane (!%p1962_p12), %v1646_v12, %v2676_v27 }
 0x2d8   : > { %v1124_v19 = vadd.f32 %v1123_v18, %v713_v9  ;;  %v1125_v20 = vpop.f32.mrb[7].mxu1  ;;  %v1130_v23 = vmax.f32 %v1120_v14, 0.0  ;;  %v1685_v14 = vrot.slane (!%p1962_p12), %v1646_v12, %v2666_v25 }
 0x2d9   : > { %v1126_v21 = vadd.f32 %v1125_v20, %v717_v11  ;;  %1600 = vmatpush1.bf16.msra.mxu0 %v2212_v13  ;;  %v1131_v28 = vmax.f32 %v1122_v17, 0.0  ;;  %v1647_v13 = vld [vmem:[%s2784_s8] sm:$0x3] (!%p1962_p12) }
 0x2da   : > { %v1134_v24 = vmax.f32 %v1124_v19, 0.0  ;;  %1601 = vmatprep.subr.bf16.mxu0 %v2217_v16  ;;  %v1700_v17 = vrot.slane (!%p1962_p12), %v1647_v13, %v2666_v25  ;;  %v1704_v18 = vrot.slane (!%p1962_p12), %v1647_v13, %v2676_v27 }
 0x2db   : > { %v1135_v29 = vmax.f32 %v1126_v21, 0.0 }
 0x2dc   : > { %v1142_v26 = vpack.c.bf16 %v1134_v24, %v1130_v23 }
 0x2dd   : > { %v1143_v30 = vpack.c.bf16 %v1135_v29, %v1131_v28  ;;  %1602 = vmatpush1.bf16.msra.mxu0 %v2215_v22 }
 0x2df   : > { %1603 = vmatprep.mubr.bf16.mxu0 %v1143_v30 }
 0x2e0   : > { %1604 = vmatmul.mubr.bf16.vlgmr.msra.gmra.mrb[0].mxu0 %v1142_v26 }
 0x3b3   : > { %v1605_v33 = vpop.f32.mrb[0].mxu0  ;;  %1625 = sbr.rel (%p1962_p12) target bundleno = 1281 (0x501), region = 87 }
 0x3b4   : > { %v1614_v35 = vadd.f32 %v1605_v33, %v1136_v31  ;;  %v1607_v36 = vpop.f32.mrb[1].mxu0 }
 0x3b5   : > { %v1615_v38 = vadd.f32 %v1607_v36, %v1137_v32  ;;  %v1609_v39 = vpop.f32.mrb[2].mxu0 }
 0x3b6   : > { %1618 = vst [vmem:[#allocation2] sm:$0xff] %v1614_v35  ;;  %v1616_v40 = vadd.f32 %v1609_v39, %v1138_v34  ;;  %v1611_v41 = vpop.f32.mrb[3].mxu0 }
 0x3b7   : > { %1619 = vst [vmem:[#allocation2 + $0x8] sm:$0xff] %v1615_v38  ;;  %v1617_v42 = vadd.f32 %v1611_v41, %v1139_v37 }
 0x3b8   : > { %1620 = vst [vmem:[#allocation2 + $0x10] sm:$0xff] %v1616_v40 }
 0x3b9   : > { %1621 = vst [vmem:[#allocation2 + $0x18] sm:$0xff] %v1617_v42 }
 0x3bd   : > { %v1626_v43 = vld [vmem:[#allocation2] sm:$0xff] }
 0x3be   : > { %v1627_v44 = vld [vmem:[#allocation2 + $0x8] sm:$0xff]  ;;  %v1642_v50 = vadd.f32 %v1635_v46, %v1626_v43 }
 0x3bf   : > { %v1628_v48 = vld [vmem:[#allocation2 + $0x10] sm:$0xff]  ;;  %v1643_v51 = vadd.f32 %v1639_v47, %v1627_v44 }
 0x3c0   : > { %v1629_v49 = vld [vmem:[#allocation2 + $0x18] sm:$0xff]  ;;  %v1644_v52 = vadd.f32 %v1635_v46, %v1628_v48 }
 0x3c1   : > { %v1645_v53 = vadd.f32 %v1639_v47, %v1629_v49  ;;  %v1648_v54 = vadd.f32 %v1643_v51, %v1642_v50 }
 0x3c3   : > { %1649 = vadd.xlane.f32.xlu0 %v1648_v54  ;;  %v1651_v55 = vadd.f32 %v1645_v53, %v1644_v52 }
 0x3c7   : > { %1652 = vadd.xlane.f32.xlu0 %v1651_v55 }
 0x450   : > { %v1650_v56 = vpop.xlane.xlu0 %1649 }
 0x451   : > { %v1655_v57 = vmul.f32 0.00390625, %v1650_v56 }
 0x453   : > { %v1657_v58 = vsub.f32 %v1642_v50, %v1655_v57  ;;  %v1658_v59 = vsub.f32 %v1643_v51, %v1655_v57 }
 0x454   : > { %v1653_v60 = vpop.xlane.xlu0 %1652 }
 0x455   : > { %v1656_v61 = vmul.f32 0.00390625, %v1653_v60  ;;  %v1661_v62 = vmul.f32 %v1657_v58, %v1657_v58  ;;  %v1662_v63 = vmul.f32 %v1658_v59, %v1658_v59 }
 0x457   : > { %v1659_v0 = vsub.f32 %v1644_v52, %v1656_v61  ;;  %v1660_v1 = vsub.f32 %v1645_v53, %v1656_v61  ;;  %v1665_v2 = vadd.f32 %v1662_v63, %v1661_v62 }
 0x459   : > { %1666 = vadd.xlane.f32.xlu1 %v1665_v2  ;;  %v1663_v3 = vmul.f32 %v1659_v0, %v1659_v0  ;;  %v1664_v4 = vmul.f32 %v1660_v1, %v1660_v1 }
 0x45b   : > { %v1668_v5 = vadd.f32 %v1664_v4, %v1663_v3 }
 0x45d   : > { %1669 = vadd.xlane.f32.xlu1 %v1668_v5 }
 0x4e6   : > { %v1667_v6 = vpop.xlane.xlu1 %1666 }
 0x4e7   : > { %v1671_v7 = vmul.f32 0.00390625, %v1667_v6 }
 0x4e9   : > { %v1673_v8 = vadd.f32 1e-05, %v1671_v7 }
 0x4ea   : > { %v1670_v9 = vpop.xlane.xlu1 %1669 }
 0x4eb   : > { %2218 = vrsqrt.f32 %v1673_v8  ;;  %v1672_v10 = vmul.f32 0.00390625, %v1670_v9 }
 0x4ed   : > { %v1674_v11 = vadd.f32 1e-05, %v1672_v10 }
 0x4ef   : > { %2220 = vrsqrt.f32 %v1674_v11 }
 0x4f5   : > { %v2219_v16 = vpop.eup %2218 }
 0x4f6   : > { %v1677_v19 = vmul.f32 %v2219_v16, %v1657_v58  ;;  %v1678_v20 = vmul.f32 %v2219_v16, %v1658_v59 }
 0x4f8   : > { %v1692_v21 = vmul.f32 %v1685_v14, %v1677_v19  ;;  %v1693_v22 = vmul.f32 %v1689_v15, %v1678_v20 }
 0x4f9   : > { %v2221_v23 = vpop.eup %2220 }
 0x4fa   : > { %v1707_v24 = vadd.f32 %v1700_v17, %v1692_v21  ;;  %v1708_v28 = vadd.f32 %v1704_v18, %v1693_v22  ;;  %v1679_v29 = vmul.f32 %v2221_v23, %v1659_v0  ;;  %v1680_v26 = vmul.f32 %v2221_v23, %v1660_v1 }
 0x4fc   : > { %1711 = vst [vmem:[#allocation5] sm:$0xff] %v1707_v24  ;;  %1712 = vst [vmem:[#allocation5 + $0x8] sm:$0xff] %v1708_v28  ;;  %v1694_v30 = vmul.f32 %v1685_v14, %v1679_v29  ;;  %v1695_v31 = vmul.f32 %v1689_v15, %v1680_v26 }
 0x4fe   : > { %v1709_v32 = vadd.f32 %v1700_v17, %v1694_v30  ;;  %v1710_v33 = vadd.f32 %v1704_v18, %v1695_v31 }
 0x500   : > { %1713 = vst [vmem:[#allocation5 + $0x10] sm:$0xff] %v1709_v32  ;;  %1714 = vst [vmem:[#allocation5 + $0x18] sm:$0xff] %v1710_v33 }
 0x501 PF: > { %s2786_s16 = sadd.s32 4294967295, %s2290_s13   ;;  %s2292_s28 = smov [#allocation5]  }
 0x502   : > { %p2735_p13 = scmp.eq.s32.totalorder %s2786_s16, 1  ;;  %s1725_s17 = sshll.u32 %s2292_s28, 4  ;;  %s1726_s17 = int_to_ptr.vmem [resolvable:$true] %s1725_s17 }
 0x503   : > { %s2222_s14 = scalar_lea.vmem %s1726_s17, 512  ;;  %p2229_p3 = scmp.lt.s32.totalorder %s1726_s17, %s1726_s17 }
 0x504   : > { %p2223_p0 = scmp.ne.s32.totalorder %s1726_s17, %s2222_s14  ;;  %p2230_p4 = scmp.lt.s32.totalorder %s2222_s14, %s2222_s14 }
 0x506   : > { %p2224_p1 = pnand %p2223_p0, %p2735_p13  ;;  %p2231_p5 = por %p2230_p4, %p2229_p3 }
 0x508   : > { %p2225_p2 = pneg %p2224_p1 }
 0x50a   : > { %p2232_p6 = pnand %p2231_p5, %p2225_p2 }
 0x50c   : > { %2235 = shalt.err (!%p2232_p6)
}
 0x50d   : > { %s2236_s22 = scalar_lea.hbm %s2785_s9, 512 }
 0x50e   : > { %p2237_p7 = scmp.ne.s32.totalorder %s2785_s9, %s2236_s22  ;;  %p2242_p10 = scmp.lt.u32.totalorder %s2236_s22, %s2785_s9 }
 0x510   : > { %p2238_p8 = pnand %p2237_p7, %p2735_p13 }
 0x512   : > { %p2239_p9 = pneg %p2238_p8 }
 0x514   : > { %p2244_p11 = pnand %p2242_p10, %p2239_p9 }
 0x516   : > { %2247 = shalt.err (!%p2244_p11)
}
 0x517   : > { %s2293_s11 = smov 256   ;;  %s2294_s23 = smov 16  }
 0x518   : > { %1974 = dma.vmem_to_hbm [thread:$0]  (%p2735_p13), %s1726_s17, 512, %s2785_s9, [#allocation6], %s2293_s11, %s2293_s11, %s2294_s23  }
 0x519   : > { %2269 = dma.done.wait (%p2735_p13), [#allocation6], 512  }
 0x51a   : > { %2271 = vsyncadd (%p2735_p13), [#allocation6], 4294966784 }
 0x51b PF: > { %s20_s13 = sadd.s32 1, %s2290_s13   ;;  %s2788_s30 = smov %s2278_s10 }
 0x51c   : > { %p17_p12 = scmp.ge.s32.totalorder %s20_s13, 4   ;;  %s2789_s10 = smov %s2381_s18 }
 0x51d   : > { %s2790_s11 = smov %s2286_s12  ;;  %s2791_s12 = smov %s2793_s15 }
 0x51e   :  { %19 = sbr.rel (!%p17_p12) target bundleno = 3 (0x3), region = 129 }
 0x525   :  { %1741 = vsyncpa [#allocation6], 1 }
 0x526   :  { %1743 = vsyncpa [#allocation6 + $0x1], 1 }

</bundles_post_ra>
